<compile_context>
chip_gen: v7x
topology: tpu7x:2x2x1
jax: 0.10.0
libtpu: 0.0.40
codegen_flags: <defaults>
</compile_context>

<pallas_src>
import functools

import jax
import jax.numpy as jnp
from jax import lax
from jax.experimental import pallas as pl
from jax.experimental.pallas import tpu as pltpu


def _gru_kernel(xf_ref, xb_ref, h0_ref,
                wih_f_ref, bx_f_ref, wih_b_ref, bx_b_ref,
                whh_ref, bhn_ref, wfc_ref, bfc_ref,
                out_ref,
                xpf_ref, xpb_ref, hf_ref, hb_ref,
                *, tc, hp, t_actual, t_pad):
    g = pl.program_id(0)
    n_chunks = pl.num_programs(0)
    bp = xf_ref.shape[1]
    e = xf_ref.shape[2]

    # ---- init resident hidden states from the learned h0 (broadcast over B) --
    @pl.when(g == 0)
    def _():
        hf_ref[...] = jnp.broadcast_to(h0_ref[0:1, :], (bp, hp))
        hb_ref[...] = jnp.broadcast_to(h0_ref[1:2, :], (bp, hp))

    # ---- input projections for this chunk: one large MXU matmul / direction --
    # xp = x @ W_ih_fused + (b_ih + b_hh folded for r,z; b_in for n); bf16 store.
    xf = xf_ref[...].reshape(tc * bp, e)                       # bf16
    xb = xb_ref[...].reshape(tc * bp, e)
    xpf_ref[...] = (jnp.dot(xf, wih_f_ref[...],
                            preferred_element_type=jnp.float32)
                    + bx_f_ref[...]).astype(jnp.bfloat16).reshape(tc, bp, 3 * hp)
    xpb_ref[...] = (jnp.dot(xb, wih_b_ref[...],
                            preferred_element_type=jnp.float32)
                    + bx_b_ref[...]).astype(jnp.bfloat16).reshape(tc, bp, 3 * hp)

    # ---- loop-invariant reads / broadcasts hoisted out of the recurrence -----
    whh = whh_ref[...]                                         # [2hp, 6hp] bf16
    bhn_f = jnp.broadcast_to(bhn_ref[:, 0:hp], (bp, hp))
    bhn_b = jnp.broadcast_to(bhn_ref[:, hp:2 * hp], (bp, hp))

    def fused_step(i, h_f, h_b, *, mask):
        # One 2*hp-deep, 6*hp-wide recurrent matmul covers BOTH directions
        # (block-diagonal weights; all slices on 128-lane boundaries).
        lhs = jnp.concatenate([h_f, h_b], axis=1).astype(jnp.bfloat16)
        hh = jnp.dot(lhs, whh, preferred_element_type=jnp.float32)  # [bp, 6hp]
        xpf_t = xpf_ref[i]                                     # [bp, 3hp] bf16
        xpb_t = xpb_ref[tc - 1 - i]
        # forward direction
        r_f = jax.nn.sigmoid(xpf_t[:, 0:hp] + hh[:, 0:hp])
        z_f = jax.nn.sigmoid(xpf_t[:, hp:2 * hp] + hh[:, hp:2 * hp])
        n_f = jnp.tanh(xpf_t[:, 2 * hp:3 * hp]
                       + r_f * (hh[:, 2 * hp:3 * hp] + bhn_f))
        hf_new = (1.0 - z_f) * n_f + z_f * h_f
        # backward direction
        r_b = jax.nn.sigmoid(xpb_t[:, 0:hp] + hh[:, 3 * hp:4 * hp])
        z_b = jax.nn.sigmoid(xpb_t[:, hp:2 * hp] + hh[:, 4 * hp:5 * hp])
        n_b = jnp.tanh(xpb_t[:, 2 * hp:3 * hp]
                       + r_b * (hh[:, 5 * hp:6 * hp] + bhn_b))
        hb_new = (1.0 - z_b) * n_b + z_b * h_b
        if mask:  # static flag: only boundary chunks carry the padding selects
            j = g * tc + i
            hf_new = jnp.where(j < t_actual, hf_new, h_f)
            hb_new = jnp.where(j >= (t_pad - t_actual), hb_new, h_b)
        return hf_new, hb_new

    unroll = min(8, tc)

    def run_loop(mask):
        def step(i, carry):
            return fused_step(i, *carry, mask=mask)
        h_f, h_b = lax.fori_loop(0, tc, step, (hf_ref[...], hb_ref[...]),
                                 unroll=unroll)
        hf_ref[...] = h_f
        hb_ref[...] = h_b

    if t_pad != t_actual:   # static: padding exists -> masked loop on boundaries
        boundary = jnp.logical_or(g == 0, g == n_chunks - 1)

        @pl.when(boundary)
        def _():
            run_loop(True)

        @pl.when(jnp.logical_not(boundary))
        def _():
            run_loop(False)
    else:
        run_loop(False)

    # ---- final: h = [h_fwd | h_bwd]; fc + sigmoid ----------------------------
    @pl.when(g == n_chunks - 1)
    def _():
        h_f = hf_ref[...]
        h_b = hb_ref[...]
        wfc = wfc_ref[...]                                     # [2*hp, 1]
        logits = (jnp.dot(h_f, wfc[0:hp, :], preferred_element_type=jnp.float32)
                  + jnp.dot(h_b, wfc[hp:2 * hp, :],
                            preferred_element_type=jnp.float32)
                  + bfc_ref[...])                              # [bp, 1]
        out_ref[...] = jax.nn.sigmoid(logits).astype(out_ref.dtype)


def pack_params(raw, hp=128):
    """Re-pack PyTorch-layout GRU/FC weights into the kernel layout:
    gate-fused, transposed, bias-folded, padded to Hp lanes, bf16 weights,
    with the two directions' recurrent weights packed block-diagonally."""
    E = raw["weight_ih_l0"].shape[1]
    H = raw["weight_hh_l0"].shape[1]
    assert hp >= H and hp % 128 == 0

    def pack_dir(w_ih, w_hh, b_ih, b_hh):
        w_ih = w_ih.reshape(3, H, E)        # PyTorch gate order: r, z, n
        w_hh = w_hh.reshape(3, H, H)
        b_ih = b_ih.reshape(3, H)
        b_hh = b_hh.reshape(3, H)
        wih = jnp.zeros((E, 3 * hp), jnp.float32)
        whh = jnp.zeros((hp, 3 * hp), jnp.float32)
        bx = jnp.zeros((1, 3 * hp), jnp.float32)
        for gi in range(3):
            wih = wih.at[:, gi * hp:gi * hp + H].set(w_ih[gi].T)
            whh = whh.at[:H, gi * hp:gi * hp + H].set(w_hh[gi].T)
        # Fold biases: b_r = b_ir + b_hr, b_z = b_iz + b_hz, x-side b_n = b_in;
        # b_hn stays separate (it sits inside r * (W_hn h + b_hn)).
        bx = bx.at[0, 0:H].set(b_ih[0] + b_hh[0])
        bx = bx.at[0, hp:hp + H].set(b_ih[1] + b_hh[1])
        bx = bx.at[0, 2 * hp:2 * hp + H].set(b_ih[2])
        bhn = jnp.zeros((1, hp), jnp.float32).at[0, :H].set(b_hh[2])
        return wih.astype(jnp.bfloat16), whh, bx, bhn

    wih_f, whh_f, bx_f, bhn_f = pack_dir(raw["weight_ih_l0"],
                                         raw["weight_hh_l0"],
                                         raw["bias_ih_l0"], raw["bias_hh_l0"])
    wih_b, whh_b, bx_b, bhn_b = pack_dir(raw["weight_ih_l0_reverse"],
                                         raw["weight_hh_l0_reverse"],
                                         raw["bias_ih_l0_reverse"],
                                         raw["bias_hh_l0_reverse"])

    # Block-diagonal recurrent weights: [h_f | h_b] @ whh_blk gives both
    # directions' gate pre-activations in one 256-deep MXU matmul.
    whh_blk = jnp.zeros((2 * hp, 6 * hp), jnp.float32)
    whh_blk = whh_blk.at[0:hp, 0:3 * hp].set(whh_f)
    whh_blk = whh_blk.at[hp:2 * hp, 3 * hp:6 * hp].set(whh_b)
    whh_blk = whh_blk.astype(jnp.bfloat16)

    bhn = jnp.concatenate([bhn_f, bhn_b], axis=1)              # [1, 2*hp]

    h0 = jnp.zeros((2, hp), jnp.float32).at[:, :H].set(raw["hidden"][:, 0, :])
    wfc_src = raw["fc_weight"].T                               # [2H, 1]
    wfc = jnp.zeros((2 * hp, 1), jnp.float32)
    wfc = wfc.at[0:H, :].set(wfc_src[0:H, :])
    wfc = wfc.at[hp:hp + H, :].set(wfc_src[H:2 * H, :])
    bfc = raw["fc_bias"].reshape(1, 1).astype(jnp.float32)

    return dict(embedding_bf16=raw["embedding"].astype(jnp.bfloat16),
                hp=hp, h0=h0,
                wih_f=wih_f, bx_f=bx_f, wih_b=wih_b, bx_b=bx_b,
                whh_blk=whh_blk, bhn=bhn, wfc=wfc, bfc=bfc)


def rnn_forward(x_tokens, packed, *, chunk=None):
    """x_tokens: int32 [B, T] token ids. Returns sigmoid probs [B, 1] (f32)."""
    B, T = x_tokens.shape
    hp = packed["hp"]

    # Embedding lookup: bf16 table gathered directly into [T, B, E] order
    # (no f32 [B,T,E] materialization / transpose).  Dropout = identity (eval).
    x = packed["embedding_bf16"][x_tokens.T]                   # [T, B, E] bf16
    E = x.shape[-1]

    # Pad batch to a multiple of 8 sublanes; pad time to a multiple of chunk.
    bp = ((B + 7) // 8) * 8
    tc = chunk if chunk is not None else min(T, 32)
    n_chunks = (T + tc - 1) // tc
    tp = n_chunks * tc
    x = jnp.pad(x, ((0, tp - T), (0, bp - B), (0, 0)))

    kernel = functools.partial(_gru_kernel, tc=tc, hp=hp, t_actual=T, t_pad=tp)
    full = lambda g: (0, 0)   # resident (non-windowed) 2-D operands

    grid_spec = pltpu.PrefetchScalarGridSpec(
        num_scalar_prefetch=0,
        grid=(n_chunks,),
        in_specs=[
            pl.BlockSpec((tc, bp, E), lambda g: (g, 0, 0)),                 # x fwd chunks
            pl.BlockSpec((tc, bp, E), lambda g: (n_chunks - 1 - g, 0, 0)),  # x bwd chunks
            pl.BlockSpec((2, hp), full),                                    # h0
            pl.BlockSpec((E, 3 * hp), full),                                # wih_f
            pl.BlockSpec((1, 3 * hp), full),                                # bx_f
            pl.BlockSpec((E, 3 * hp), full),                                # wih_b
            pl.BlockSpec((1, 3 * hp), full),                                # bx_b
            pl.BlockSpec((2 * hp, 6 * hp), full),                           # whh (block-diag)
            pl.BlockSpec((1, 2 * hp), full),                                # bhn (f|b)
            pl.BlockSpec((2 * hp, 1), full),                                # wfc
            pl.BlockSpec((1, 1), full),                                     # bfc
        ],
        out_specs=pl.BlockSpec((bp, 1), full),
        scratch_shapes=[
            pltpu.VMEM((tc, bp, 3 * hp), jnp.bfloat16),  # xp forward (chunk)
            pltpu.VMEM((tc, bp, 3 * hp), jnp.bfloat16),  # xp backward (chunk)
            pltpu.VMEM((bp, hp), jnp.float32),           # h forward
            pltpu.VMEM((bp, hp), jnp.float32),           # h backward
        ],
    )

    out = pl.pallas_call(
        kernel,
        out_shape=jax.ShapeDtypeStruct((bp, 1), jnp.float32),
        grid_spec=grid_spec,
        compiler_params=pltpu.CompilerParams(
            dimension_semantics=("arbitrary",),          # sequential recurrence
            vmem_limit_bytes=64 * 1024 * 1024,           # <= physical on v5e/v6e/v7x
        ),
    )(x, x, packed["h0"],
      packed["wih_f"], packed["bx_f"], packed["wih_b"], packed["bx_b"],
      packed["whh_blk"], packed["bhn"],
      packed["wfc"], packed["bfc"])
    return out[:B]


def init_raw_params(key, vocab_size, embedding_dim, hidden_dim):
    """Deterministic synthetic parameters in PyTorch's native layout."""
    E, H = embedding_dim, hidden_dim
    ks = jax.random.split(key, 12)
    s = 1.0 / (H ** 0.5)
    u = lambda k, shape: jax.random.uniform(k, shape, jnp.float32, -s, s)
    emb = 0.1 * jax.random.normal(ks[0], (vocab_size, E), jnp.float32)
    emb = emb.at[0].set(0.0)  # padding_idx = 0
    return dict(
        embedding=emb,
        weight_ih_l0=u(ks[1], (3 * H, E)),
        weight_hh_l0=u(ks[2], (3 * H, H)),
        bias_ih_l0=u(ks[3], (3 * H,)),
        bias_hh_l0=u(ks[4], (3 * H,)),
        weight_ih_l0_reverse=u(ks[5], (3 * H, E)),
        weight_hh_l0_reverse=u(ks[6], (3 * H, H)),
        bias_ih_l0_reverse=u(ks[7], (3 * H,)),
        bias_hh_l0_reverse=u(ks[8], (3 * H,)),
        hidden=jax.random.normal(ks[9], (2, 1, H), jnp.float32),
        fc_weight=u(ks[10], (1, 2 * H)),
        fc_bias=u(ks[11], (1,)),
    )


def reference_forward(x_tokens, raw):
    """Pure-JAX f32 reference matching PyTorch GRU semantics (for validation)."""
    emb = raw["embedding"][x_tokens]
    B, T, E = emb.shape
    H = raw["weight_hh_l0"].shape[1]
    x_tbe = jnp.transpose(emb, (1, 0, 2))

    def run(w_ih, w_hh, b_ih, b_hh, h0, reverse):
        w_ih = w_ih.reshape(3, H, E)
        w_hh = w_hh.reshape(3, H, H)
        b_ih = b_ih.reshape(3, H)
        b_hh = b_hh.reshape(3, H)
        h = jnp.broadcast_to(h0[None, :], (B, H))
        order = range(T - 1, -1, -1) if reverse else range(T)
        for t in order:
            xt = x_tbe[t]
            r = jax.nn.sigmoid(xt @ w_ih[0].T + b_ih[0] + h @ w_hh[0].T + b_hh[0])
            z = jax.nn.sigmoid(xt @ w_ih[1].T + b_ih[1] + h @ w_hh[1].T + b_hh[1])
            n = jnp.tanh(xt @ w_ih[2].T + b_ih[2] + r * (h @ w_hh[2].T + b_hh[2]))
            h = (1.0 - z) * n + z * h
        return h

    hf = run(raw["weight_ih_l0"], raw["weight_hh_l0"], raw["bias_ih_l0"],
             raw["bias_hh_l0"], raw["hidden"][0, 0], False)
    hb = run(raw["weight_ih_l0_reverse"], raw["weight_hh_l0_reverse"],
             raw["bias_ih_l0_reverse"], raw["bias_hh_l0_reverse"],
             raw["hidden"][1, 0], True)
    h = jnp.concatenate([hf, hb], axis=-1)
    return jax.nn.sigmoid(h @ raw["fc_weight"].T + raw["fc_bias"])


if __name__ == "__main__":
    B, T, E, H, VOCAB = 2, 9, 32, 32, 50   # T=9 with chunk=4 exercises T-padding/masking

    key = jax.random.PRNGKey(0)
    pkey, xkey = jax.random.split(key)
    raw = init_raw_params(pkey, VOCAB, E, H)
    packed = pack_params(raw, hp=128)
    x_tokens = jax.random.randint(xkey, (B, T), 0, VOCAB, dtype=jnp.int32)

    out = rnn_forward(x_tokens, packed, chunk=4)
    out = jax.block_until_ready(out)

    assert out.shape == (B, 1) and out.dtype == jnp.float32
    assert bool(jnp.all((out >= 0.0) & (out <= 1.0)))
    ref = reference_forward(x_tokens, raw)
    assert bool(jnp.max(jnp.abs(out - ref)) < 2e-2), (out, ref)  # bf16 weights/xp tolerance
    print("KERNEL_OK")
</pallas_src>

<mosaic_0001>
module attributes {stable_mosaic.version = 11 : i64} {
  func.func @_gru_kernel(%arg0: i32, %arg1: memref<4x8x32xbf16, #tpu.memory_space<vmem>>, %arg2: memref<4x8x32xbf16, #tpu.memory_space<vmem>>, %arg3: memref<2x128xf32, #tpu.memory_space<vmem>>, %arg4: memref<32x384xbf16, #tpu.memory_space<vmem>>, %arg5: memref<1x384xf32, #tpu.memory_space<vmem>>, %arg6: memref<32x384xbf16, #tpu.memory_space<vmem>>, %arg7: memref<1x384xf32, #tpu.memory_space<vmem>>, %arg8: memref<256x768xbf16, #tpu.memory_space<vmem>>, %arg9: memref<1x256xf32, #tpu.memory_space<vmem>>, %arg10: memref<256x1xf32, #tpu.memory_space<vmem>>, %arg11: memref<1x1xf32, #tpu.memory_space<vmem>>, %arg12: memref<8x1xf32, #tpu.memory_space<vmem>>, %arg13: memref<4x8x384xbf16, #tpu.memory_space<vmem>>, %arg14: memref<4x8x384xbf16, #tpu.memory_space<vmem>>, %arg15: memref<8x128xf32, #tpu.memory_space<vmem>>, %arg16: memref<8x128xf32, #tpu.memory_space<vmem>>) attributes {dimension_semantics = [#tpu.dimension_semantics<arbitrary>], iteration_bounds = array<i64: 3>, scalar_prefetch = 0 : i64, scratch_operands = 4 : i64, tpu.core_type = #tpu.core_type<tc>, window_params = [{transform_indices = @transform_0, window_bounds = array<i64: 4, 8, 32>}, {transform_indices = @transform_1, window_bounds = array<i64: 4, 8, 32>}, {pipeline_mode = #tpu.pipeline_mode<synchronous>, transform_indices = @transform_2, window_bounds = array<i64: 2, 128>}, {pipeline_mode = #tpu.pipeline_mode<synchronous>, transform_indices = @transform_3, window_bounds = array<i64: 32, 384>}, {pipeline_mode = #tpu.pipeline_mode<synchronous>, transform_indices = @transform_4, window_bounds = array<i64: 1, 384>}, {pipeline_mode = #tpu.pipeline_mode<synchronous>, transform_indices = @transform_5, window_bounds = array<i64: 32, 384>}, {pipeline_mode = #tpu.pipeline_mode<synchronous>, transform_indices = @transform_6, window_bounds = array<i64: 1, 384>}, {pipeline_mode = #tpu.pipeline_mode<synchronous>, transform_indices = @transform_7, window_bounds = array<i64: 256, 768>}, {pipeline_mode = #tpu.pipeline_mode<synchronous>, transform_indices = @transform_8, window_bounds = array<i64: 1, 256>}, {pipeline_mode = #tpu.pipeline_mode<synchronous>, transform_indices = @transform_9, window_bounds = array<i64: 256, 1>}, {pipeline_mode = #tpu.pipeline_mode<synchronous>, transform_indices = @transform_10, window_bounds = array<i64: 1, 1>}, {pipeline_mode = #tpu.pipeline_mode<synchronous>, transform_indices = @transform_11, window_bounds = array<i64: 8, 1>}]} {
    %c0_i32 = arith.constant 0 : i32
    %0 = arith.cmpi eq, %arg0, %c0_i32 : i32
    %1 = arith.extui %0 : i1 to i32
    %c0_i32_0 = arith.constant 0 : i32
    %2 = arith.cmpi ne, %1, %c0_i32_0 : i32
    scf.if %2 {
      %c0_31 = arith.constant 0 : index
      %c0_32 = arith.constant 0 : index
      %41 = vector.load %arg3[%c0_31, %c0_32] : memref<2x128xf32, #tpu.memory_space<vmem>>, vector<1x128xf32>
      %42 = vector.shape_cast %41 : vector<1x128xf32> to vector<1x128xf32>
      %43 = vector.broadcast %42 : vector<1x128xf32> to vector<8x128xf32>
      %c0_33 = arith.constant 0 : index
      %c0_34 = arith.constant 0 : index
      %44 = vector.load %arg15[%c0_33, %c0_34] : memref<8x128xf32, #tpu.memory_space<vmem>>, vector<8x128xf32>
      tpu.vector_store %arg15[%c0_33, %c0_34], %43 {strides = array<i32>} : memref<8x128xf32, #tpu.memory_space<vmem>>, vector<8x128xf32>,
      %c1 = arith.constant 1 : index
      %c0_35 = arith.constant 0 : index
      %45 = vector.load %arg3[%c1, %c0_35] : memref<2x128xf32, #tpu.memory_space<vmem>>, vector<1x128xf32>
      %46 = vector.shape_cast %45 : vector<1x128xf32> to vector<1x128xf32>
      %47 = vector.broadcast %46 : vector<1x128xf32> to vector<8x128xf32>
      %c0_36 = arith.constant 0 : index
      %c0_37 = arith.constant 0 : index
      %48 = vector.load %arg16[%c0_36, %c0_37] : memref<8x128xf32, #tpu.memory_space<vmem>>, vector<8x128xf32>
      tpu.vector_store %arg16[%c0_36, %c0_37], %47 {strides = array<i32>} : memref<8x128xf32, #tpu.memory_space<vmem>>, vector<8x128xf32>,
    } else {
    }
    %c0 = arith.constant 0 : index
    %c0_1 = arith.constant 0 : index
    %c0_2 = arith.constant 0 : index
    %3 = vector.load %arg1[%c0, %c0_1, %c0_2] : memref<4x8x32xbf16, #tpu.memory_space<vmem>>, vector<4x8x32xbf16>
    %4 = vector.shape_cast %3 : vector<4x8x32xbf16> to vector<32x32xbf16>
    %c0_3 = arith.constant 0 : index
    %c0_4 = arith.constant 0 : index
    %c0_5 = arith.constant 0 : index
    %5 = vector.load %arg2[%c0_3, %c0_4, %c0_5] : memref<4x8x32xbf16, #tpu.memory_space<vmem>>, vector<4x8x32xbf16>
    %6 = vector.shape_cast %5 : vector<4x8x32xbf16> to vector<32x32xbf16>
    %c0_6 = arith.constant 0 : index
    %c0_7 = arith.constant 0 : index
    %7 = vector.load %arg4[%c0_6, %c0_7] : memref<32x384xbf16, #tpu.memory_space<vmem>>, vector<32x384xbf16>
    %cst = arith.constant dense<0.000000e+00> : vector<32x384xf32>
    %8 = tpu.matmul %4, %7, %cst {dimension_numbers = #tpu.dot_dimension_numbers<[1], [0], [0], [1], [0, 0, 1, 1], [], []>} : vector<32x32xbf16>, vector<32x384xbf16>, vector<32x384xf32> -> vector<32x384xf32>
    %c0_8 = arith.constant 0 : index
    %c0_9 = arith.constant 0 : index
    %9 = vector.load %arg5[%c0_8, %c0_9] : memref<1x384xf32, #tpu.memory_space<vmem>>, vector<1x384xf32>
    %10 = vector.broadcast %9 : vector<1x384xf32> to vector<32x384xf32>
    %11 = arith.addf %8, %10 : vector<32x384xf32>
    %12 = arith.truncf %11 : vector<32x384xf32> to vector<32x384xbf16>
    %13 = vector.shape_cast %12 : vector<32x384xbf16> to vector<4x8x384xbf16>
    %c0_10 = arith.constant 0 : index
    %c0_11 = arith.constant 0 : index
    %c0_12 = arith.constant 0 : index
    %14 = vector.load %arg13[%c0_10, %c0_11, %c0_12] : memref<4x8x384xbf16, #tpu.memory_space<vmem>>, vector<4x8x384xbf16>
    tpu.vector_store %arg13[%c0_10, %c0_11, %c0_12], %13 {strides = array<i32>} : memref<4x8x384xbf16, #tpu.memory_space<vmem>>, vector<4x8x384xbf16>,
    %c0_13 = arith.constant 0 : index
    %c0_14 = arith.constant 0 : index
    %15 = vector.load %arg6[%c0_13, %c0_14] : memref<32x384xbf16, #tpu.memory_space<vmem>>, vector<32x384xbf16>
    %cst_15 = arith.constant dense<0.000000e+00> : vector<32x384xf32>
    %16 = tpu.matmul %6, %15, %cst_15 {dimension_numbers = #tpu.dot_dimension_numbers<[1], [0], [0], [1], [0, 0, 1, 1], [], []>} : vector<32x32xbf16>, vector<32x384xbf16>, vector<32x384xf32> -> vector<32x384xf32>
    %c0_16 = arith.constant 0 : index
    %c0_17 = arith.constant 0 : index
    %17 = vector.load %arg7[%c0_16, %c0_17] : memref<1x384xf32, #tpu.memory_space<vmem>>, vector<1x384xf32>
    %18 = vector.broadcast %17 : vector<1x384xf32> to vector<32x384xf32>
    %19 = arith.addf %16, %18 : vector<32x384xf32>
    %20 = arith.truncf %19 : vector<32x384xf32> to vector<32x384xbf16>
    %21 = vector.shape_cast %20 : vector<32x384xbf16> to vector<4x8x384xbf16>
    %c0_18 = arith.constant 0 : index
    %c0_19 = arith.constant 0 : index
    %c0_20 = arith.constant 0 : index
    %22 = vector.load %arg14[%c0_18, %c0_19, %c0_20] : memref<4x8x384xbf16, #tpu.memory_space<vmem>>, vector<4x8x384xbf16>
    tpu.vector_store %arg14[%c0_18, %c0_19, %c0_20], %21 {strides = array<i32>} : memref<4x8x384xbf16, #tpu.memory_space<vmem>>, vector<4x8x384xbf16>,
    %c0_21 = arith.constant 0 : index
    %c0_22 = arith.constant 0 : index
    %23 = vector.load %arg8[%c0_21, %c0_22] : memref<256x768xbf16, #tpu.memory_space<vmem>>, vector<256x768xbf16>
    %c0_23 = arith.constant 0 : index
    %c0_24 = arith.constant 0 : index
    %24 = vector.load %arg9[%c0_23, %c0_24] : memref<1x256xf32, #tpu.memory_space<vmem>>, vector<1x128xf32>
    %25 = vector.shape_cast %24 : vector<1x128xf32> to vector<1x128xf32>
    %26 = vector.broadcast %25 : vector<1x128xf32> to vector<8x128xf32>
    %c0_25 = arith.constant 0 : index
    %c128 = arith.constant 128 : index
    %27 = vector.load %arg9[%c0_25, %c128] : memref<1x256xf32, #tpu.memory_space<vmem>>, vector<1x128xf32>
    %28 = vector.shape_cast %27 : vector<1x128xf32> to vector<1x128xf32>
    %29 = vector.broadcast %28 : vector<1x128xf32> to vector<8x128xf32>
    %c0_i32_26 = arith.constant 0 : i32
    %30 = arith.cmpi eq, %arg0, %c0_i32_26 : i32
    %c2_i32 = arith.constant 2 : i32
    %31 = arith.cmpi eq, %arg0, %c2_i32 : i32
    %32 = arith.ori %30, %31 : i1
    %33 = arith.extui %32 : i1 to i32
    %c0_i32_27 = arith.constant 0 : i32
    %34 = arith.cmpi ne, %33, %c0_i32_27 : i32
    scf.if %34 {
      %c0_31 = arith.constant 0 : index
      %c0_32 = arith.constant 0 : index
      %41 = vector.load %arg15[%c0_31, %c0_32] : memref<8x128xf32, #tpu.memory_space<vmem>>, vector<8x128xf32>
      %c0_33 = arith.constant 0 : index
      %c0_34 = arith.constant 0 : index
      %42 = vector.load %arg16[%c0_33, %c0_34] : memref<8x128xf32, #tpu.memory_space<vmem>>, vector<8x128xf32>
      %c0_i32_35 = arith.constant 0 : i32
      %43 = tpu.concatenate %41, %42 in 1 : vector<8x128xf32>, vector<8x128xf32> -> vector<8x256xf32>
      %44 = arith.truncf %43 : vector<8x256xf32> to vector<8x256xbf16>
      %cst_36 = arith.constant dense<0.000000e+00> : vector<8x768xf32>
      %45 = tpu.matmul %44, %23, %cst_36 {dimension_numbers = #tpu.dot_dimension_numbers<[1], [0], [0], [1], [0, 0, 1, 1], [], []>} : vector<8x256xbf16>, vector<256x768xbf16>, vector<8x768xf32> -> vector<8x768xf32>
      %46 = arith.index_cast %c0_i32_35 : i32 to index
      %c0_37 = arith.constant 0 : index
      %c0_38 = arith.constant 0 : index
      %47 = vector.load %arg13[%46, %c0_37, %c0_38] : memref<4x8x384xbf16, #tpu.memory_space<vmem>>, vector<1x8x384xbf16>
      %48 = vector.shape_cast %47 : vector<1x8x384xbf16> to vector<8x384xbf16>
      %c3_i32 = arith.constant 3 : i32
      %49 = arith.subi %c3_i32, %c0_i32_35 : i32
      %50 = arith.index_cast %49 : i32 to index
      %c0_39 = arith.constant 0 : index
      %c0_40 = arith.constant 0 : index
      %51 = vector.load %arg14[%50, %c0_39, %c0_40] : memref<4x8x384xbf16, #tpu.memory_space<vmem>>, vector<1x8x384xbf16>
      %52 = vector.shape_cast %51 : vector<1x8x384xbf16> to vector<8x384xbf16>
      %53 = vector.extract_strided_slice %48 {offsets = [0, 0], sizes = [8, 128], strides = [1, 1]} : vector<8x384xbf16> to vector<8x128xbf16>
      %54 = vector.extract_strided_slice %45 {offsets = [0, 0], sizes = [8, 128], strides = [1, 1]} : vector<8x768xf32> to vector<8x128xf32>
      %55 = arith.extf %53 : vector<8x128xbf16> to vector<8x128xf32>
      %56 = arith.addf %55, %54 : vector<8x128xf32>
      %57 = arith.negf %56 : vector<8x128xf32>
      %58 = math.exp %57 : vector<8x128xf32>
      %cst_41 = arith.constant 1.000000e+00 : f32
      %59 = vector.broadcast %cst_41 : f32 to vector<8x128xf32>
      %60 = arith.addf %59, %58 : vector<8x128xf32>
      %61 = arith.divf %59, %60 : vector<8x128xf32>
      %62 = vector.extract_strided_slice %48 {offsets = [0, 128], sizes = [8, 128], strides = [1, 1]} : vector<8x384xbf16> to vector<8x128xbf16>
      %63 = vector.extract_strided_slice %45 {offsets = [0, 128], sizes = [8, 128], strides = [1, 1]} : vector<8x768xf32> to vector<8x128xf32>
      %64 = arith.extf %62 : vector<8x128xbf16> to vector<8x128xf32>
      %65 = arith.addf %64, %63 : vector<8x128xf32>
      %66 = arith.negf %65 : vector<8x128xf32>
      %67 = math.exp %66 : vector<8x128xf32>
      %cst_42 = arith.constant 1.000000e+00 : f32
      %68 = vector.broadcast %cst_42 : f32 to vector<8x128xf32>
      %69 = arith.addf %68, %67 : vector<8x128xf32>
      %70 = arith.divf %68, %69 : vector<8x128xf32>
      %71 = vector.extract_strided_slice %48 {offsets = [0, 256], sizes = [8, 128], strides = [1, 1]} : vector<8x384xbf16> to vector<8x128xbf16>
      %72 = vector.extract_strided_slice %45 {offsets = [0, 256], sizes = [8, 128], strides = [1, 1]} : vector<8x768xf32> to vector<8x128xf32>
      %73 = arith.addf %72, %26 : vector<8x128xf32>
      %74 = arith.mulf %61, %73 : vector<8x128xf32>
      %75 = arith.extf %71 : vector<8x128xbf16> to vector<8x128xf32>
      %76 = arith.addf %75, %74 : vector<8x128xf32>
      %77 = math.tanh %76 : vector<8x128xf32>
      %cst_43 = arith.constant 1.000000e+00 : f32
      %78 = vector.broadcast %cst_43 : f32 to vector<8x128xf32>
      %79 = arith.subf %78, %70 : vector<8x128xf32>
      %80 = arith.mulf %79, %77 : vector<8x128xf32>
      %81 = arith.mulf %70, %41 : vector<8x128xf32>
      %82 = arith.addf %80, %81 : vector<8x128xf32>
      %83 = vector.extract_strided_slice %52 {offsets = [0, 0], sizes = [8, 128], strides = [1, 1]} : vector<8x384xbf16> to vector<8x128xbf16>
      %84 = vector.extract_strided_slice %45 {offsets = [0, 384], sizes = [8, 128], strides = [1, 1]} : vector<8x768xf32> to vector<8x128xf32>
      %85 = arith.extf %83 : vector<8x128xbf16> to vector<8x128xf32>
      %86 = arith.addf %85, %84 : vector<8x128xf32>
      %87 = arith.negf %86 : vector<8x128xf32>
      %88 = math.exp %87 : vector<8x128xf32>
      %cst_44 = arith.constant 1.000000e+00 : f32
      %89 = vector.broadcast %cst_44 : f32 to vector<8x128xf32>
      %90 = arith.addf %89, %88 : vector<8x128xf32>
      %91 = arith.divf %89, %90 : vector<8x128xf32>
      %92 = vector.extract_strided_slice %52 {offsets = [0, 128], sizes = [8, 128], strides = [1, 1]} : vector<8x384xbf16> to vector<8x128xbf16>
      %93 = vector.extract_strided_slice %45 {offsets = [0, 512], sizes = [8, 128], strides = [1, 1]} : vector<8x768xf32> to vector<8x128xf32>
      %94 = arith.extf %92 : vector<8x128xbf16> to vector<8x128xf32>
      %95 = arith.addf %94, %93 : vector<8x128xf32>
      %96 = arith.negf %95 : vector<8x128xf32>
      %97 = math.exp %96 : vector<8x128xf32>
      %cst_45 = arith.constant 1.000000e+00 : f32
      %98 = vector.broadcast %cst_45 : f32 to vector<8x128xf32>
      %99 = arith.addf %98, %97 : vector<8x128xf32>
      %100 = arith.divf %98, %99 : vector<8x128xf32>
      %101 = vector.extract_strided_slice %52 {offsets = [0, 256], sizes = [8, 128], strides = [1, 1]} : vector<8x384xbf16> to vector<8x128xbf16>
      %102 = vector.extract_strided_slice %45 {offsets = [0, 640], sizes = [8, 128], strides = [1, 1]} : vector<8x768xf32> to vector<8x128xf32>
      %103 = arith.addf %102, %29 : vector<8x128xf32>
      %104 = arith.mulf %91, %103 : vector<8x128xf32>
      %105 = arith.extf %101 : vector<8x128xbf16> to vector<8x128xf32>
      %106 = arith.addf %105, %104 : vector<8x128xf32>
      %107 = math.tanh %106 : vector<8x128xf32>
      %cst_46 = arith.constant 1.000000e+00 : f32
      %108 = vector.broadcast %cst_46 : f32 to vector<8x128xf32>
      %109 = arith.subf %108, %100 : vector<8x128xf32>
      %110 = arith.mulf %109, %107 : vector<8x128xf32>
      %111 = arith.mulf %100, %42 : vector<8x128xf32>
      %112 = arith.addf %110, %111 : vector<8x128xf32>
      %c4_i32 = arith.constant 4 : i32
      %113 = arith.muli %arg0, %c4_i32 : i32
      %114 = arith.addi %113, %c0_i32_35 : i32
      %c9_i32 = arith.constant 9 : i32
      %115 = arith.cmpi slt, %114, %c9_i32 : i32
      %116 = arith.select %115, %82, %41 : vector<8x128xf32>
      %c3_i32_47 = arith.constant 3 : i32
      %117 = arith.cmpi sge, %114, %c3_i32_47 : i32
      %118 = arith.select %117, %112, %42 : vector<8x128xf32>
      %c1_i32 = arith.constant 1 : i32
      %119 = tpu.concatenate %116, %118 in 1 : vector<8x128xf32>, vector<8x128xf32> -> vector<8x256xf32>
      %120 = arith.truncf %119 : vector<8x256xf32> to vector<8x256xbf16>
      %cst_48 = arith.constant dense<0.000000e+00> : vector<8x768xf32>
      %121 = tpu.matmul %120, %23, %cst_48 {dimension_numbers = #tpu.dot_dimension_numbers<[1], [0], [0], [1], [0, 0, 1, 1], [], []>} : vector<8x256xbf16>, vector<256x768xbf16>, vector<8x768xf32> -> vector<8x768xf32>
      %122 = arith.index_cast %c1_i32 : i32 to index
      %c0_49 = arith.constant 0 : index
      %c0_50 = arith.constant 0 : index
      %123 = vector.load %arg13[%122, %c0_49, %c0_50] : memref<4x8x384xbf16, #tpu.memory_space<vmem>>, vector<1x8x384xbf16>
      %124 = vector.shape_cast %123 : vector<1x8x384xbf16> to vector<8x384xbf16>
      %c3_i32_51 = arith.constant 3 : i32
      %125 = arith.subi %c3_i32_51, %c1_i32 : i32
      %126 = arith.index_cast %125 : i32 to index
      %c0_52 = arith.constant 0 : index
      %c0_53 = arith.constant 0 : index
      %127 = vector.load %arg14[%126, %c0_52, %c0_53] : memref<4x8x384xbf16, #tpu.memory_space<vmem>>, vector<1x8x384xbf16>
      %128 = vector.shape_cast %127 : vector<1x8x384xbf16> to vector<8x384xbf16>
      %129 = vector.extract_strided_slice %124 {offsets = [0, 0], sizes = [8, 128], strides = [1, 1]} : vector<8x384xbf16> to vector<8x128xbf16>
      %130 = vector.extract_strided_slice %121 {offsets = [0, 0], sizes = [8, 128], strides = [1, 1]} : vector<8x768xf32> to vector<8x128xf32>
      %131 = arith.extf %129 : vector<8x128xbf16> to vector<8x128xf32>
      %132 = arith.addf %131, %130 : vector<8x128xf32>
      %133 = arith.negf %132 : vector<8x128xf32>
      %134 = math.exp %133 : vector<8x128xf32>
      %cst_54 = arith.constant 1.000000e+00 : f32
      %135 = vector.broadcast %cst_54 : f32 to vector<8x128xf32>
      %136 = arith.addf %135, %134 : vector<8x128xf32>
      %137 = arith.divf %135, %136 : vector<8x128xf32>
      %138 = vector.extract_strided_slice %124 {offsets = [0, 128], sizes = [8, 128], strides = [1, 1]} : vector<8x384xbf16> to vector<8x128xbf16>
      %139 = vector.extract_strided_slice %121 {offsets = [0, 128], sizes = [8, 128], strides = [1, 1]} : vector<8x768xf32> to vector<8x128xf32>
      %140 = arith.extf %138 : vector<8x128xbf16> to vector<8x128xf32>
      %141 = arith.addf %140, %139 : vector<8x128xf32>
      %142 = arith.negf %141 : vector<8x128xf32>
      %143 = math.exp %142 : vector<8x128xf32>
      %cst_55 = arith.constant 1.000000e+00 : f32
      %144 = vector.broadcast %cst_55 : f32 to vector<8x128xf32>
      %145 = arith.addf %144, %143 : vector<8x128xf32>
      %146 = arith.divf %144, %145 : vector<8x128xf32>
      %147 = vector.extract_strided_slice %124 {offsets = [0, 256], sizes = [8, 128], strides = [1, 1]} : vector<8x384xbf16> to vector<8x128xbf16>
      %148 = vector.extract_strided_slice %121 {offsets = [0, 256], sizes = [8, 128], strides = [1, 1]} : vector<8x768xf32> to vector<8x128xf32>
      %149 = arith.addf %148, %26 : vector<8x128xf32>
      %150 = arith.mulf %137, %149 : vector<8x128xf32>
      %151 = arith.extf %147 : vector<8x128xbf16> to vector<8x128xf32>
      %152 = arith.addf %151, %150 : vector<8x128xf32>
      %153 = math.tanh %152 : vector<8x128xf32>
      %cst_56 = arith.constant 1.000000e+00 : f32
      %154 = vector.broadcast %cst_56 : f32 to vector<8x128xf32>
      %155 = arith.subf %154, %146 : vector<8x128xf32>
      %156 = arith.mulf %155, %153 : vector<8x128xf32>
      %157 = arith.mulf %146, %116 : vector<8x128xf32>
      %158 = arith.addf %156, %157 : vector<8x128xf32>
      %159 = vector.extract_strided_slice %128 {offsets = [0, 0], sizes = [8, 128], strides = [1, 1]} : vector<8x384xbf16> to vector<8x128xbf16>
      %160 = vector.extract_strided_slice %121 {offsets = [0, 384], sizes = [8, 128], strides = [1, 1]} : vector<8x768xf32> to vector<8x128xf32>
      %161 = arith.extf %159 : vector<8x128xbf16> to vector<8x128xf32>
      %162 = arith.addf %161, %160 : vector<8x128xf32>
      %163 = arith.negf %162 : vector<8x128xf32>
      %164 = math.exp %163 : vector<8x128xf32>
      %cst_57 = arith.constant 1.000000e+00 : f32
      %165 = vector.broadcast %cst_57 : f32 to vector<8x128xf32>
      %166 = arith.addf %165, %164 : vector<8x128xf32>
      %167 = arith.divf %165, %166 : vector<8x128xf32>
      %168 = vector.extract_strided_slice %128 {offsets = [0, 128], sizes = [8, 128], strides = [1, 1]} : vector<8x384xbf16> to vector<8x128xbf16>
      %169 = vector.extract_strided_slice %121 {offsets = [0, 512], sizes = [8, 128], strides = [1, 1]} : vector<8x768xf32> to vector<8x128xf32>
      %170 = arith.extf %168 : vector<8x128xbf16> to vector<8x128xf32>
      %171 = arith.addf %170, %169 : vector<8x128xf32>
      %172 = arith.negf %171 : vector<8x128xf32>
      %173 = math.exp %172 : vector<8x128xf32>
      %cst_58 = arith.constant 1.000000e+00 : f32
      %174 = vector.broadcast %cst_58 : f32 to vector<8x128xf32>
      %175 = arith.addf %174, %173 : vector<8x128xf32>
      %176 = arith.divf %174, %175 : vector<8x128xf32>
      %177 = vector.extract_strided_slice %128 {offsets = [0, 256], sizes = [8, 128], strides = [1, 1]} : vector<8x384xbf16> to vector<8x128xbf16>
      %178 = vector.extract_strided_slice %121 {offsets = [0, 640], sizes = [8, 128], strides = [1, 1]} : vector<8x768xf32> to vector<8x128xf32>
      %179 = arith.addf %178, %29 : vector<8x128xf32>
      %180 = arith.mulf %167, %179 : vector<8x128xf32>
      %181 = arith.extf %177 : vector<8x128xbf16> to vector<8x128xf32>
      %182 = arith.addf %181, %180 : vector<8x128xf32>
      %183 = math.tanh %182 : vector<8x128xf32>
      %cst_59 = arith.constant 1.000000e+00 : f32
      %184 = vector.broadcast %cst_59 : f32 to vector<8x128xf32>
      %185 = arith.subf %184, %176 : vector<8x128xf32>
      %186 = arith.mulf %185, %183 : vector<8x128xf32>
      %187 = arith.mulf %176, %118 : vector<8x128xf32>
      %188 = arith.addf %186, %187 : vector<8x128xf32>
      %c4_i32_60 = arith.constant 4 : i32
      %189 = arith.muli %arg0, %c4_i32_60 : i32
      %190 = arith.addi %189, %c1_i32 : i32
      %c9_i32_61 = arith.constant 9 : i32
      %191 = arith.cmpi slt, %190, %c9_i32_61 : i32
      %192 = arith.select %191, %158, %116 : vector<8x128xf32>
      %c3_i32_62 = arith.constant 3 : i32
      %193 = arith.cmpi sge, %190, %c3_i32_62 : i32
      %194 = arith.select %193, %188, %118 : vector<8x128xf32>
      %c2_i32_63 = arith.constant 2 : i32
      %195 = tpu.concatenate %192, %194 in 1 : vector<8x128xf32>, vector<8x128xf32> -> vector<8x256xf32>
      %196 = arith.truncf %195 : vector<8x256xf32> to vector<8x256xbf16>
      %cst_64 = arith.constant dense<0.000000e+00> : vector<8x768xf32>
      %197 = tpu.matmul %196, %23, %cst_64 {dimension_numbers = #tpu.dot_dimension_numbers<[1], [0], [0], [1], [0, 0, 1, 1], [], []>} : vector<8x256xbf16>, vector<256x768xbf16>, vector<8x768xf32> -> vector<8x768xf32>
      %198 = arith.index_cast %c2_i32_63 : i32 to index
      %c0_65 = arith.constant 0 : index
      %c0_66 = arith.constant 0 : index
      %199 = vector.load %arg13[%198, %c0_65, %c0_66] : memref<4x8x384xbf16, #tpu.memory_space<vmem>>, vector<1x8x384xbf16>
      %200 = vector.shape_cast %199 : vector<1x8x384xbf16> to vector<8x384xbf16>
      %c3_i32_67 = arith.constant 3 : i32
      %201 = arith.subi %c3_i32_67, %c2_i32_63 : i32
      %202 = arith.index_cast %201 : i32 to index
      %c0_68 = arith.constant 0 : index
      %c0_69 = arith.constant 0 : index
      %203 = vector.load %arg14[%202, %c0_68, %c0_69] : memref<4x8x384xbf16, #tpu.memory_space<vmem>>, vector<1x8x384xbf16>
      %204 = vector.shape_cast %203 : vector<1x8x384xbf16> to vector<8x384xbf16>
      %205 = vector.extract_strided_slice %200 {offsets = [0, 0], sizes = [8, 128], strides = [1, 1]} : vector<8x384xbf16> to vector<8x128xbf16>
      %206 = vector.extract_strided_slice %197 {offsets = [0, 0], sizes = [8, 128], strides = [1, 1]} : vector<8x768xf32> to vector<8x128xf32>
      %207 = arith.extf %205 : vector<8x128xbf16> to vector<8x128xf32>
      %208 = arith.addf %207, %206 : vector<8x128xf32>
      %209 = arith.negf %208 : vector<8x128xf32>
      %210 = math.exp %209 : vector<8x128xf32>
      %cst_70 = arith.constant 1.000000e+00 : f32
      %211 = vector.broadcast %cst_70 : f32 to vector<8x128xf32>
      %212 = arith.addf %211, %210 : vector<8x128xf32>
      %213 = arith.divf %211, %212 : vector<8x128xf32>
      %214 = vector.extract_strided_slice %200 {offsets = [0, 128], sizes = [8, 128], strides = [1, 1]} : vector<8x384xbf16> to vector<8x128xbf16>
      %215 = vector.extract_strided_slice %197 {offsets = [0, 128], sizes = [8, 128], strides = [1, 1]} : vector<8x768xf32> to vector<8x128xf32>
      %216 = arith.extf %214 : vector<8x128xbf16> to vector<8x128xf32>
      %217 = arith.addf %216, %215 : vector<8x128xf32>
      %218 = arith.negf %217 : vector<8x128xf32>
      %219 = math.exp %218 : vector<8x128xf32>
      %cst_71 = arith.constant 1.000000e+00 : f32
      %220 = vector.broadcast %cst_71 : f32 to vector<8x128xf32>
      %221 = arith.addf %220, %219 : vector<8x128xf32>
      %222 = arith.divf %220, %221 : vector<8x128xf32>
      %223 = vector.extract_strided_slice %200 {offsets = [0, 256], sizes = [8, 128], strides = [1, 1]} : vector<8x384xbf16> to vector<8x128xbf16>
      %224 = vector.extract_strided_slice %197 {offsets = [0, 256], sizes = [8, 128], strides = [1, 1]} : vector<8x768xf32> to vector<8x128xf32>
      %225 = arith.addf %224, %26 : vector<8x128xf32>
      %226 = arith.mulf %213, %225 : vector<8x128xf32>
      %227 = arith.extf %223 : vector<8x128xbf16> to vector<8x128xf32>
      %228 = arith.addf %227, %226 : vector<8x128xf32>
      %229 = math.tanh %228 : vector<8x128xf32>
      %cst_72 = arith.constant 1.000000e+00 : f32
      %230 = vector.broadcast %cst_72 : f32 to vector<8x128xf32>
      %231 = arith.subf %230, %222 : vector<8x128xf32>
      %232 = arith.mulf %231, %229 : vector<8x128xf32>
      %233 = arith.mulf %222, %192 : vector<8x128xf32>
      %234 = arith.addf %232, %233 : vector<8x128xf32>
      %235 = vector.extract_strided_slice %204 {offsets = [0, 0], sizes = [8, 128], strides = [1, 1]} : vector<8x384xbf16> to vector<8x128xbf16>
      %236 = vector.extract_strided_slice %197 {offsets = [0, 384], sizes = [8, 128], strides = [1, 1]} : vector<8x768xf32> to vector<8x128xf32>
      %237 = arith.extf %235 : vector<8x128xbf16> to vector<8x128xf32>
      %238 = arith.addf %237, %236 : vector<8x128xf32>
      %239 = arith.negf %238 : vector<8x128xf32>
      %240 = math.exp %239 : vector<8x128xf32>
      %cst_73 = arith.constant 1.000000e+00 : f32
      %241 = vector.broadcast %cst_73 : f32 to vector<8x128xf32>
      %242 = arith.addf %241, %240 : vector<8x128xf32>
      %243 = arith.divf %241, %242 : vector<8x128xf32>
      %244 = vector.extract_strided_slice %204 {offsets = [0, 128], sizes = [8, 128], strides = [1, 1]} : vector<8x384xbf16> to vector<8x128xbf16>
      %245 = vector.extract_strided_slice %197 {offsets = [0, 512], sizes = [8, 128], strides = [1, 1]} : vector<8x768xf32> to vector<8x128xf32>
      %246 = arith.extf %244 : vector<8x128xbf16> to vector<8x128xf32>
      %247 = arith.addf %246, %245 : vector<8x128xf32>
      %248 = arith.negf %247 : vector<8x128xf32>
      %249 = math.exp %248 : vector<8x128xf32>
      %cst_74 = arith.constant 1.000000e+00 : f32
      %250 = vector.broadcast %cst_74 : f32 to vector<8x128xf32>
      %251 = arith.addf %250, %249 : vector<8x128xf32>
      %252 = arith.divf %250, %251 : vector<8x128xf32>
      %253 = vector.extract_strided_slice %204 {offsets = [0, 256], sizes = [8, 128], strides = [1, 1]} : vector<8x384xbf16> to vector<8x128xbf16>
      %254 = vector.extract_strided_slice %197 {offsets = [0, 640], sizes = [8, 128], strides = [1, 1]} : vector<8x768xf32> to vector<8x128xf32>
      %255 = arith.addf %254, %29 : vector<8x128xf32>
      %256 = arith.mulf %243, %255 : vector<8x128xf32>
      %257 = arith.extf %253 : vector<8x128xbf16> to vector<8x128xf32>
      %258 = arith.addf %257, %256 : vector<8x128xf32>
      %259 = math.tanh %258 : vector<8x128xf32>
      %cst_75 = arith.constant 1.000000e+00 : f32
      %260 = vector.broadcast %cst_75 : f32 to vector<8x128xf32>
      %261 = arith.subf %260, %252 : vector<8x128xf32>
      %262 = arith.mulf %261, %259 : vector<8x128xf32>
      %263 = arith.mulf %252, %194 : vector<8x128xf32>
      %264 = arith.addf %262, %263 : vector<8x128xf32>
      %c4_i32_76 = arith.constant 4 : i32
      %265 = arith.muli %arg0, %c4_i32_76 : i32
      %266 = arith.addi %265, %c2_i32_63 : i32
      %c9_i32_77 = arith.constant 9 : i32
      %267 = arith.cmpi slt, %266, %c9_i32_77 : i32
      %268 = arith.select %267, %234, %192 : vector<8x128xf32>
      %c3_i32_78 = arith.constant 3 : i32
      %269 = arith.cmpi sge, %266, %c3_i32_78 : i32
      %270 = arith.select %269, %264, %194 : vector<8x128xf32>
      %c3_i32_79 = arith.constant 3 : i32
      %271 = tpu.concatenate %268, %270 in 1 : vector<8x128xf32>, vector<8x128xf32> -> vector<8x256xf32>
      %272 = arith.truncf %271 : vector<8x256xf32> to vector<8x256xbf16>
      %cst_80 = arith.constant dense<0.000000e+00> : vector<8x768xf32>
      %273 = tpu.matmul %272, %23, %cst_80 {dimension_numbers = #tpu.dot_dimension_numbers<[1], [0], [0], [1], [0, 0, 1, 1], [], []>} : vector<8x256xbf16>, vector<256x768xbf16>, vector<8x768xf32> -> vector<8x768xf32>
      %274 = arith.index_cast %c3_i32_79 : i32 to index
      %c0_81 = arith.constant 0 : index
      %c0_82 = arith.constant 0 : index
      %275 = vector.load %arg13[%274, %c0_81, %c0_82] : memref<4x8x384xbf16, #tpu.memory_space<vmem>>, vector<1x8x384xbf16>
      %276 = vector.shape_cast %275 : vector<1x8x384xbf16> to vector<8x384xbf16>
      %c3_i32_83 = arith.constant 3 : i32
      %277 = arith.subi %c3_i32_83, %c3_i32_79 : i32
      %278 = arith.index_cast %277 : i32 to index
      %c0_84 = arith.constant 0 : index
      %c0_85 = arith.constant 0 : index
      %279 = vector.load %arg14[%278, %c0_84, %c0_85] : memref<4x8x384xbf16, #tpu.memory_space<vmem>>, vector<1x8x384xbf16>
      %280 = vector.shape_cast %279 : vector<1x8x384xbf16> to vector<8x384xbf16>
      %281 = vector.extract_strided_slice %276 {offsets = [0, 0], sizes = [8, 128], strides = [1, 1]} : vector<8x384xbf16> to vector<8x128xbf16>
      %282 = vector.extract_strided_slice %273 {offsets = [0, 0], sizes = [8, 128], strides = [1, 1]} : vector<8x768xf32> to vector<8x128xf32>
      %283 = arith.extf %281 : vector<8x128xbf16> to vector<8x128xf32>
      %284 = arith.addf %283, %282 : vector<8x128xf32>
      %285 = arith.negf %284 : vector<8x128xf32>
      %286 = math.exp %285 : vector<8x128xf32>
      %cst_86 = arith.constant 1.000000e+00 : f32
      %287 = vector.broadcast %cst_86 : f32 to vector<8x128xf32>
      %288 = arith.addf %287, %286 : vector<8x128xf32>
      %289 = arith.divf %287, %288 : vector<8x128xf32>
      %290 = vector.extract_strided_slice %276 {offsets = [0, 128], sizes = [8, 128], strides = [1, 1]} : vector<8x384xbf16> to vector<8x128xbf16>
      %291 = vector.extract_strided_slice %273 {offsets = [0, 128], sizes = [8, 128], strides = [1, 1]} : vector<8x768xf32> to vector<8x128xf32>
      %292 = arith.extf %290 : vector<8x128xbf16> to vector<8x128xf32>
      %293 = arith.addf %292, %291 : vector<8x128xf32>
      %294 = arith.negf %293 : vector<8x128xf32>
      %295 = math.exp %294 : vector<8x128xf32>
      %cst_87 = arith.constant 1.000000e+00 : f32
      %296 = vector.broadcast %cst_87 : f32 to vector<8x128xf32>
      %297 = arith.addf %296, %295 : vector<8x128xf32>
      %298 = arith.divf %296, %297 : vector<8x128xf32>
      %299 = vector.extract_strided_slice %276 {offsets = [0, 256], sizes = [8, 128], strides = [1, 1]} : vector<8x384xbf16> to vector<8x128xbf16>
      %300 = vector.extract_strided_slice %273 {offsets = [0, 256], sizes = [8, 128], strides = [1, 1]} : vector<8x768xf32> to vector<8x128xf32>
      %301 = arith.addf %300, %26 : vector<8x128xf32>
      %302 = arith.mulf %289, %301 : vector<8x128xf32>
      %303 = arith.extf %299 : vector<8x128xbf16> to vector<8x128xf32>
      %304 = arith.addf %303, %302 : vector<8x128xf32>
      %305 = math.tanh %304 : vector<8x128xf32>
      %cst_88 = arith.constant 1.000000e+00 : f32
      %306 = vector.broadcast %cst_88 : f32 to vector<8x128xf32>
      %307 = arith.subf %306, %298 : vector<8x128xf32>
      %308 = arith.mulf %307, %305 : vector<8x128xf32>
      %309 = arith.mulf %298, %268 : vector<8x128xf32>
      %310 = arith.addf %308, %309 : vector<8x128xf32>
      %311 = vector.extract_strided_slice %280 {offsets = [0, 0], sizes = [8, 128], strides = [1, 1]} : vector<8x384xbf16> to vector<8x128xbf16>
      %312 = vector.extract_strided_slice %273 {offsets = [0, 384], sizes = [8, 128], strides = [1, 1]} : vector<8x768xf32> to vector<8x128xf32>
      %313 = arith.extf %311 : vector<8x128xbf16> to vector<8x128xf32>
      %314 = arith.addf %313, %312 : vector<8x128xf32>
      %315 = arith.negf %314 : vector<8x128xf32>
      %316 = math.exp %315 : vector<8x128xf32>
      %cst_89 = arith.constant 1.000000e+00 : f32
      %317 = vector.broadcast %cst_89 : f32 to vector<8x128xf32>
      %318 = arith.addf %317, %316 : vector<8x128xf32>
      %319 = arith.divf %317, %318 : vector<8x128xf32>
      %320 = vector.extract_strided_slice %280 {offsets = [0, 128], sizes = [8, 128], strides = [1, 1]} : vector<8x384xbf16> to vector<8x128xbf16>
      %321 = vector.extract_strided_slice %273 {offsets = [0, 512], sizes = [8, 128], strides = [1, 1]} : vector<8x768xf32> to vector<8x128xf32>
      %322 = arith.extf %320 : vector<8x128xbf16> to vector<8x128xf32>
      %323 = arith.addf %322, %321 : vector<8x128xf32>
      %324 = arith.negf %323 : vector<8x128xf32>
      %325 = math.exp %324 : vector<8x128xf32>
      %cst_90 = arith.constant 1.000000e+00 : f32
      %326 = vector.broadcast %cst_90 : f32 to vector<8x128xf32>
      %327 = arith.addf %326, %325 : vector<8x128xf32>
      %328 = arith.divf %326, %327 : vector<8x128xf32>
      %329 = vector.extract_strided_slice %280 {offsets = [0, 256], sizes = [8, 128], strides = [1, 1]} : vector<8x384xbf16> to vector<8x128xbf16>
      %330 = vector.extract_strided_slice %273 {offsets = [0, 640], sizes = [8, 128], strides = [1, 1]} : vector<8x768xf32> to vector<8x128xf32>
      %331 = arith.addf %330, %29 : vector<8x128xf32>
      %332 = arith.mulf %319, %331 : vector<8x128xf32>
      %333 = arith.extf %329 : vector<8x128xbf16> to vector<8x128xf32>
      %334 = arith.addf %333, %332 : vector<8x128xf32>
      %335 = math.tanh %334 : vector<8x128xf32>
      %cst_91 = arith.constant 1.000000e+00 : f32
      %336 = vector.broadcast %cst_91 : f32 to vector<8x128xf32>
      %337 = arith.subf %336, %328 : vector<8x128xf32>
      %338 = arith.mulf %337, %335 : vector<8x128xf32>
      %339 = arith.mulf %328, %270 : vector<8x128xf32>
      %340 = arith.addf %338, %339 : vector<8x128xf32>
      %c4_i32_92 = arith.constant 4 : i32
      %341 = arith.muli %arg0, %c4_i32_92 : i32
      %342 = arith.addi %341, %c3_i32_79 : i32
      %c9_i32_93 = arith.constant 9 : i32
      %343 = arith.cmpi slt, %342, %c9_i32_93 : i32
      %344 = arith.select %343, %310, %268 : vector<8x128xf32>
      %c3_i32_94 = arith.constant 3 : i32
      %345 = arith.cmpi sge, %342, %c3_i32_94 : i32
      %346 = arith.select %345, %340, %270 : vector<8x128xf32>
      %c4_i32_95 = arith.constant 4 : i32
      %c0_96 = arith.constant 0 : index
      %c0_97 = arith.constant 0 : index
      %347 = vector.load %arg15[%c0_96, %c0_97] : memref<8x128xf32, #tpu.memory_space<vmem>>, vector<8x128xf32>
      tpu.vector_store %arg15[%c0_96, %c0_97], %344 {strides = array<i32>} : memref<8x128xf32, #tpu.memory_space<vmem>>, vector<8x128xf32>,
      %c0_98 = arith.constant 0 : index
      %c0_99 = arith.constant 0 : index
      %348 = vector.load %arg16[%c0_98, %c0_99] : memref<8x128xf32, #tpu.memory_space<vmem>>, vector<8x128xf32>
      tpu.vector_store %arg16[%c0_98, %c0_99], %346 {strides = array<i32>} : memref<8x128xf32, #tpu.memory_space<vmem>>, vector<8x128xf32>,
    } else {
    }
    %true = arith.constant true
    %35 = arith.xori %32, %true : i1
    %36 = arith.extui %35 : i1 to i32
    %c0_i32_28 = arith.constant 0 : i32
    %37 = arith.cmpi ne, %36, %c0_i32_28 : i32
    scf.if %37 {
      %c0_31 = arith.constant 0 : index
      %c0_32 = arith.constant 0 : index
      %41 = vector.load %arg15[%c0_31, %c0_32] : memref<8x128xf32, #tpu.memory_space<vmem>>, vector<8x128xf32>
      %c0_33 = arith.constant 0 : index
      %c0_34 = arith.constant 0 : index
      %42 = vector.load %arg16[%c0_33, %c0_34] : memref<8x128xf32, #tpu.memory_space<vmem>>, vector<8x128xf32>
      %c0_i32_35 = arith.constant 0 : i32
      %43 = tpu.concatenate %41, %42 in 1 : vector<8x128xf32>, vector<8x128xf32> -> vector<8x256xf32>
      %44 = arith.truncf %43 : vector<8x256xf32> to vector<8x256xbf16>
      %cst_36 = arith.constant dense<0.000000e+00> : vector<8x768xf32>
      %45 = tpu.matmul %44, %23, %cst_36 {dimension_numbers = #tpu.dot_dimension_numbers<[1], [0], [0], [1], [0, 0, 1, 1], [], []>} : vector<8x256xbf16>, vector<256x768xbf16>, vector<8x768xf32> -> vector<8x768xf32>
      %46 = arith.index_cast %c0_i32_35 : i32 to index
      %c0_37 = arith.constant 0 : index
      %c0_38 = arith.constant 0 : index
      %47 = vector.load %arg13[%46, %c0_37, %c0_38] : memref<4x8x384xbf16, #tpu.memory_space<vmem>>, vector<1x8x384xbf16>
      %48 = vector.shape_cast %47 : vector<1x8x384xbf16> to vector<8x384xbf16>
      %c3_i32 = arith.constant 3 : i32
      %49 = arith.subi %c3_i32, %c0_i32_35 : i32
      %50 = arith.index_cast %49 : i32 to index
      %c0_39 = arith.constant 0 : index
      %c0_40 = arith.constant 0 : index
      %51 = vector.load %arg14[%50, %c0_39, %c0_40] : memref<4x8x384xbf16, #tpu.memory_space<vmem>>, vector<1x8x384xbf16>
      %52 = vector.shape_cast %51 : vector<1x8x384xbf16> to vector<8x384xbf16>
      %53 = vector.extract_strided_slice %48 {offsets = [0, 0], sizes = [8, 128], strides = [1, 1]} : vector<8x384xbf16> to vector<8x128xbf16>
      %54 = vector.extract_strided_slice %45 {offsets = [0, 0], sizes = [8, 128], strides = [1, 1]} : vector<8x768xf32> to vector<8x128xf32>
      %55 = arith.extf %53 : vector<8x128xbf16> to vector<8x128xf32>
      %56 = arith.addf %55, %54 : vector<8x128xf32>
      %57 = arith.negf %56 : vector<8x128xf32>
      %58 = math.exp %57 : vector<8x128xf32>
      %cst_41 = arith.constant 1.000000e+00 : f32
      %59 = vector.broadcast %cst_41 : f32 to vector<8x128xf32>
      %60 = arith.addf %59, %58 : vector<8x128xf32>
      %61 = arith.divf %59, %60 : vector<8x128xf32>
      %62 = vector.extract_strided_slice %48 {offsets = [0, 128], sizes = [8, 128], strides = [1, 1]} : vector<8x384xbf16> to vector<8x128xbf16>
      %63 = vector.extract_strided_slice %45 {offsets = [0, 128], sizes = [8, 128], strides = [1, 1]} : vector<8x768xf32> to vector<8x128xf32>
      %64 = arith.extf %62 : vector<8x128xbf16> to vector<8x128xf32>
      %65 = arith.addf %64, %63 : vector<8x128xf32>
      %66 = arith.negf %65 : vector<8x128xf32>
      %67 = math.exp %66 : vector<8x128xf32>
      %cst_42 = arith.constant 1.000000e+00 : f32
      %68 = vector.broadcast %cst_42 : f32 to vector<8x128xf32>
      %69 = arith.addf %68, %67 : vector<8x128xf32>
      %70 = arith.divf %68, %69 : vector<8x128xf32>
      %71 = vector.extract_strided_slice %48 {offsets = [0, 256], sizes = [8, 128], strides = [1, 1]} : vector<8x384xbf16> to vector<8x128xbf16>
      %72 = vector.extract_strided_slice %45 {offsets = [0, 256], sizes = [8, 128], strides = [1, 1]} : vector<8x768xf32> to vector<8x128xf32>
      %73 = arith.addf %72, %26 : vector<8x128xf32>
      %74 = arith.mulf %61, %73 : vector<8x128xf32>
      %75 = arith.extf %71 : vector<8x128xbf16> to vector<8x128xf32>
      %76 = arith.addf %75, %74 : vector<8x128xf32>
      %77 = math.tanh %76 : vector<8x128xf32>
      %cst_43 = arith.constant 1.000000e+00 : f32
      %78 = vector.broadcast %cst_43 : f32 to vector<8x128xf32>
      %79 = arith.subf %78, %70 : vector<8x128xf32>
      %80 = arith.mulf %79, %77 : vector<8x128xf32>
      %81 = arith.mulf %70, %41 : vector<8x128xf32>
      %82 = arith.addf %80, %81 : vector<8x128xf32>
      %83 = vector.extract_strided_slice %52 {offsets = [0, 0], sizes = [8, 128], strides = [1, 1]} : vector<8x384xbf16> to vector<8x128xbf16>
      %84 = vector.extract_strided_slice %45 {offsets = [0, 384], sizes = [8, 128], strides = [1, 1]} : vector<8x768xf32> to vector<8x128xf32>
      %85 = arith.extf %83 : vector<8x128xbf16> to vector<8x128xf32>
      %86 = arith.addf %85, %84 : vector<8x128xf32>
      %87 = arith.negf %86 : vector<8x128xf32>
      %88 = math.exp %87 : vector<8x128xf32>
      %cst_44 = arith.constant 1.000000e+00 : f32
      %89 = vector.broadcast %cst_44 : f32 to vector<8x128xf32>
      %90 = arith.addf %89, %88 : vector<8x128xf32>
      %91 = arith.divf %89, %90 : vector<8x128xf32>
      %92 = vector.extract_strided_slice %52 {offsets = [0, 128], sizes = [8, 128], strides = [1, 1]} : vector<8x384xbf16> to vector<8x128xbf16>
      %93 = vector.extract_strided_slice %45 {offsets = [0, 512], sizes = [8, 128], strides = [1, 1]} : vector<8x768xf32> to vector<8x128xf32>
      %94 = arith.extf %92 : vector<8x128xbf16> to vector<8x128xf32>
      %95 = arith.addf %94, %93 : vector<8x128xf32>
      %96 = arith.negf %95 : vector<8x128xf32>
      %97 = math.exp %96 : vector<8x128xf32>
      %cst_45 = arith.constant 1.000000e+00 : f32
      %98 = vector.broadcast %cst_45 : f32 to vector<8x128xf32>
      %99 = arith.addf %98, %97 : vector<8x128xf32>
      %100 = arith.divf %98, %99 : vector<8x128xf32>
      %101 = vector.extract_strided_slice %52 {offsets = [0, 256], sizes = [8, 128], strides = [1, 1]} : vector<8x384xbf16> to vector<8x128xbf16>
      %102 = vector.extract_strided_slice %45 {offsets = [0, 640], sizes = [8, 128], strides = [1, 1]} : vector<8x768xf32> to vector<8x128xf32>
      %103 = arith.addf %102, %29 : vector<8x128xf32>
      %104 = arith.mulf %91, %103 : vector<8x128xf32>
      %105 = arith.extf %101 : vector<8x128xbf16> to vector<8x128xf32>
      %106 = arith.addf %105, %104 : vector<8x128xf32>
      %107 = math.tanh %106 : vector<8x128xf32>
      %cst_46 = arith.constant 1.000000e+00 : f32
      %108 = vector.broadcast %cst_46 : f32 to vector<8x128xf32>
      %109 = arith.subf %108, %100 : vector<8x128xf32>
      %110 = arith.mulf %109, %107 : vector<8x128xf32>
      %111 = arith.mulf %100, %42 : vector<8x128xf32>
      %112 = arith.addf %110, %111 : vector<8x128xf32>
      %c1_i32 = arith.constant 1 : i32
      %113 = tpu.concatenate %82, %112 in 1 : vector<8x128xf32>, vector<8x128xf32> -> vector<8x256xf32>
      %114 = arith.truncf %113 : vector<8x256xf32> to vector<8x256xbf16>
      %cst_47 = arith.constant dense<0.000000e+00> : vector<8x768xf32>
      %115 = tpu.matmul %114, %23, %cst_47 {dimension_numbers = #tpu.dot_dimension_numbers<[1], [0], [0], [1], [0, 0, 1, 1], [], []>} : vector<8x256xbf16>, vector<256x768xbf16>, vector<8x768xf32> -> vector<8x768xf32>
      %116 = arith.index_cast %c1_i32 : i32 to index
      %c0_48 = arith.constant 0 : index
      %c0_49 = arith.constant 0 : index
      %117 = vector.load %arg13[%116, %c0_48, %c0_49] : memref<4x8x384xbf16, #tpu.memory_space<vmem>>, vector<1x8x384xbf16>
      %118 = vector.shape_cast %117 : vector<1x8x384xbf16> to vector<8x384xbf16>
      %c3_i32_50 = arith.constant 3 : i32
      %119 = arith.subi %c3_i32_50, %c1_i32 : i32
      %120 = arith.index_cast %119 : i32 to index
      %c0_51 = arith.constant 0 : index
      %c0_52 = arith.constant 0 : index
      %121 = vector.load %arg14[%120, %c0_51, %c0_52] : memref<4x8x384xbf16, #tpu.memory_space<vmem>>, vector<1x8x384xbf16>
      %122 = vector.shape_cast %121 : vector<1x8x384xbf16> to vector<8x384xbf16>
      %123 = vector.extract_strided_slice %118 {offsets = [0, 0], sizes = [8, 128], strides = [1, 1]} : vector<8x384xbf16> to vector<8x128xbf16>
      %124 = vector.extract_strided_slice %115 {offsets = [0, 0], sizes = [8, 128], strides = [1, 1]} : vector<8x768xf32> to vector<8x128xf32>
      %125 = arith.extf %123 : vector<8x128xbf16> to vector<8x128xf32>
      %126 = arith.addf %125, %124 : vector<8x128xf32>
      %127 = arith.negf %126 : vector<8x128xf32>
      %128 = math.exp %127 : vector<8x128xf32>
      %cst_53 = arith.constant 1.000000e+00 : f32
      %129 = vector.broadcast %cst_53 : f32 to vector<8x128xf32>
      %130 = arith.addf %129, %128 : vector<8x128xf32>
      %131 = arith.divf %129, %130 : vector<8x128xf32>
      %132 = vector.extract_strided_slice %118 {offsets = [0, 128], sizes = [8, 128], strides = [1, 1]} : vector<8x384xbf16> to vector<8x128xbf16>
      %133 = vector.extract_strided_slice %115 {offsets = [0, 128], sizes = [8, 128], strides = [1, 1]} : vector<8x768xf32> to vector<8x128xf32>
      %134 = arith.extf %132 : vector<8x128xbf16> to vector<8x128xf32>
      %135 = arith.addf %134, %133 : vector<8x128xf32>
      %136 = arith.negf %135 : vector<8x128xf32>
      %137 = math.exp %136 : vector<8x128xf32>
      %cst_54 = arith.constant 1.000000e+00 : f32
      %138 = vector.broadcast %cst_54 : f32 to vector<8x128xf32>
      %139 = arith.addf %138, %137 : vector<8x128xf32>
      %140 = arith.divf %138, %139 : vector<8x128xf32>
      %141 = vector.extract_strided_slice %118 {offsets = [0, 256], sizes = [8, 128], strides = [1, 1]} : vector<8x384xbf16> to vector<8x128xbf16>
      %142 = vector.extract_strided_slice %115 {offsets = [0, 256], sizes = [8, 128], strides = [1, 1]} : vector<8x768xf32> to vector<8x128xf32>
      %143 = arith.addf %142, %26 : vector<8x128xf32>
      %144 = arith.mulf %131, %143 : vector<8x128xf32>
      %145 = arith.extf %141 : vector<8x128xbf16> to vector<8x128xf32>
      %146 = arith.addf %145, %144 : vector<8x128xf32>
      %147 = math.tanh %146 : vector<8x128xf32>
      %cst_55 = arith.constant 1.000000e+00 : f32
      %148 = vector.broadcast %cst_55 : f32 to vector<8x128xf32>
      %149 = arith.subf %148, %140 : vector<8x128xf32>
      %150 = arith.mulf %149, %147 : vector<8x128xf32>
      %151 = arith.mulf %140, %82 : vector<8x128xf32>
      %152 = arith.addf %150, %151 : vector<8x128xf32>
      %153 = vector.extract_strided_slice %122 {offsets = [0, 0], sizes = [8, 128], strides = [1, 1]} : vector<8x384xbf16> to vector<8x128xbf16>
      %154 = vector.extract_strided_slice %115 {offsets = [0, 384], sizes = [8, 128], strides = [1, 1]} : vector<8x768xf32> to vector<8x128xf32>
      %155 = arith.extf %153 : vector<8x128xbf16> to vector<8x128xf32>
      %156 = arith.addf %155, %154 : vector<8x128xf32>
      %157 = arith.negf %156 : vector<8x128xf32>
      %158 = math.exp %157 : vector<8x128xf32>
      %cst_56 = arith.constant 1.000000e+00 : f32
      %159 = vector.broadcast %cst_56 : f32 to vector<8x128xf32>
      %160 = arith.addf %159, %158 : vector<8x128xf32>
      %161 = arith.divf %159, %160 : vector<8x128xf32>
      %162 = vector.extract_strided_slice %122 {offsets = [0, 128], sizes = [8, 128], strides = [1, 1]} : vector<8x384xbf16> to vector<8x128xbf16>
      %163 = vector.extract_strided_slice %115 {offsets = [0, 512], sizes = [8, 128], strides = [1, 1]} : vector<8x768xf32> to vector<8x128xf32>
      %164 = arith.extf %162 : vector<8x128xbf16> to vector<8x128xf32>
      %165 = arith.addf %164, %163 : vector<8x128xf32>
      %166 = arith.negf %165 : vector<8x128xf32>
      %167 = math.exp %166 : vector<8x128xf32>
      %cst_57 = arith.constant 1.000000e+00 : f32
      %168 = vector.broadcast %cst_57 : f32 to vector<8x128xf32>
      %169 = arith.addf %168, %167 : vector<8x128xf32>
      %170 = arith.divf %168, %169 : vector<8x128xf32>
      %171 = vector.extract_strided_slice %122 {offsets = [0, 256], sizes = [8, 128], strides = [1, 1]} : vector<8x384xbf16> to vector<8x128xbf16>
      %172 = vector.extract_strided_slice %115 {offsets = [0, 640], sizes = [8, 128], strides = [1, 1]} : vector<8x768xf32> to vector<8x128xf32>
      %173 = arith.addf %172, %29 : vector<8x128xf32>
      %174 = arith.mulf %161, %173 : vector<8x128xf32>
      %175 = arith.extf %171 : vector<8x128xbf16> to vector<8x128xf32>
      %176 = arith.addf %175, %174 : vector<8x128xf32>
      %177 = math.tanh %176 : vector<8x128xf32>
      %cst_58 = arith.constant 1.000000e+00 : f32
      %178 = vector.broadcast %cst_58 : f32 to vector<8x128xf32>
      %179 = arith.subf %178, %170 : vector<8x128xf32>
      %180 = arith.mulf %179, %177 : vector<8x128xf32>
      %181 = arith.mulf %170, %112 : vector<8x128xf32>
      %182 = arith.addf %180, %181 : vector<8x128xf32>
      %c2_i32_59 = arith.constant 2 : i32
      %183 = tpu.concatenate %152, %182 in 1 : vector<8x128xf32>, vector<8x128xf32> -> vector<8x256xf32>
      %184 = arith.truncf %183 : vector<8x256xf32> to vector<8x256xbf16>
      %cst_60 = arith.constant dense<0.000000e+00> : vector<8x768xf32>
      %185 = tpu.matmul %184, %23, %cst_60 {dimension_numbers = #tpu.dot_dimension_numbers<[1], [0], [0], [1], [0, 0, 1, 1], [], []>} : vector<8x256xbf16>, vector<256x768xbf16>, vector<8x768xf32> -> vector<8x768xf32>
      %186 = arith.index_cast %c2_i32_59 : i32 to index
      %c0_61 = arith.constant 0 : index
      %c0_62 = arith.constant 0 : index
      %187 = vector.load %arg13[%186, %c0_61, %c0_62] : memref<4x8x384xbf16, #tpu.memory_space<vmem>>, vector<1x8x384xbf16>
      %188 = vector.shape_cast %187 : vector<1x8x384xbf16> to vector<8x384xbf16>
      %c3_i32_63 = arith.constant 3 : i32
      %189 = arith.subi %c3_i32_63, %c2_i32_59 : i32
      %190 = arith.index_cast %189 : i32 to index
      %c0_64 = arith.constant 0 : index
      %c0_65 = arith.constant 0 : index
      %191 = vector.load %arg14[%190, %c0_64, %c0_65] : memref<4x8x384xbf16, #tpu.memory_space<vmem>>, vector<1x8x384xbf16>
      %192 = vector.shape_cast %191 : vector<1x8x384xbf16> to vector<8x384xbf16>
      %193 = vector.extract_strided_slice %188 {offsets = [0, 0], sizes = [8, 128], strides = [1, 1]} : vector<8x384xbf16> to vector<8x128xbf16>
      %194 = vector.extract_strided_slice %185 {offsets = [0, 0], sizes = [8, 128], strides = [1, 1]} : vector<8x768xf32> to vector<8x128xf32>
      %195 = arith.extf %193 : vector<8x128xbf16> to vector<8x128xf32>
      %196 = arith.addf %195, %194 : vector<8x128xf32>
      %197 = arith.negf %196 : vector<8x128xf32>
      %198 = math.exp %197 : vector<8x128xf32>
      %cst_66 = arith.constant 1.000000e+00 : f32
      %199 = vector.broadcast %cst_66 : f32 to vector<8x128xf32>
      %200 = arith.addf %199, %198 : vector<8x128xf32>
      %201 = arith.divf %199, %200 : vector<8x128xf32>
      %202 = vector.extract_strided_slice %188 {offsets = [0, 128], sizes = [8, 128], strides = [1, 1]} : vector<8x384xbf16> to vector<8x128xbf16>
      %203 = vector.extract_strided_slice %185 {offsets = [0, 128], sizes = [8, 128], strides = [1, 1]} : vector<8x768xf32> to vector<8x128xf32>
      %204 = arith.extf %202 : vector<8x128xbf16> to vector<8x128xf32>
      %205 = arith.addf %204, %203 : vector<8x128xf32>
      %206 = arith.negf %205 : vector<8x128xf32>
      %207 = math.exp %206 : vector<8x128xf32>
      %cst_67 = arith.constant 1.000000e+00 : f32
      %208 = vector.broadcast %cst_67 : f32 to vector<8x128xf32>
      %209 = arith.addf %208, %207 : vector<8x128xf32>
      %210 = arith.divf %208, %209 : vector<8x128xf32>
      %211 = vector.extract_strided_slice %188 {offsets = [0, 256], sizes = [8, 128], strides = [1, 1]} : vector<8x384xbf16> to vector<8x128xbf16>
      %212 = vector.extract_strided_slice %185 {offsets = [0, 256], sizes = [8, 128], strides = [1, 1]} : vector<8x768xf32> to vector<8x128xf32>
      %213 = arith.addf %212, %26 : vector<8x128xf32>
      %214 = arith.mulf %201, %213 : vector<8x128xf32>
      %215 = arith.extf %211 : vector<8x128xbf16> to vector<8x128xf32>
      %216 = arith.addf %215, %214 : vector<8x128xf32>
      %217 = math.tanh %216 : vector<8x128xf32>
      %cst_68 = arith.constant 1.000000e+00 : f32
      %218 = vector.broadcast %cst_68 : f32 to vector<8x128xf32>
      %219 = arith.subf %218, %210 : vector<8x128xf32>
      %220 = arith.mulf %219, %217 : vector<8x128xf32>
      %221 = arith.mulf %210, %152 : vector<8x128xf32>
      %222 = arith.addf %220, %221 : vector<8x128xf32>
      %223 = vector.extract_strided_slice %192 {offsets = [0, 0], sizes = [8, 128], strides = [1, 1]} : vector<8x384xbf16> to vector<8x128xbf16>
      %224 = vector.extract_strided_slice %185 {offsets = [0, 384], sizes = [8, 128], strides = [1, 1]} : vector<8x768xf32> to vector<8x128xf32>
      %225 = arith.extf %223 : vector<8x128xbf16> to vector<8x128xf32>
      %226 = arith.addf %225, %224 : vector<8x128xf32>
      %227 = arith.negf %226 : vector<8x128xf32>
      %228 = math.exp %227 : vector<8x128xf32>
      %cst_69 = arith.constant 1.000000e+00 : f32
      %229 = vector.broadcast %cst_69 : f32 to vector<8x128xf32>
      %230 = arith.addf %229, %228 : vector<8x128xf32>
      %231 = arith.divf %229, %230 : vector<8x128xf32>
      %232 = vector.extract_strided_slice %192 {offsets = [0, 128], sizes = [8, 128], strides = [1, 1]} : vector<8x384xbf16> to vector<8x128xbf16>
      %233 = vector.extract_strided_slice %185 {offsets = [0, 512], sizes = [8, 128], strides = [1, 1]} : vector<8x768xf32> to vector<8x128xf32>
      %234 = arith.extf %232 : vector<8x128xbf16> to vector<8x128xf32>
      %235 = arith.addf %234, %233 : vector<8x128xf32>
      %236 = arith.negf %235 : vector<8x128xf32>
      %237 = math.exp %236 : vector<8x128xf32>
      %cst_70 = arith.constant 1.000000e+00 : f32
      %238 = vector.broadcast %cst_70 : f32 to vector<8x128xf32>
      %239 = arith.addf %238, %237 : vector<8x128xf32>
      %240 = arith.divf %238, %239 : vector<8x128xf32>
      %241 = vector.extract_strided_slice %192 {offsets = [0, 256], sizes = [8, 128], strides = [1, 1]} : vector<8x384xbf16> to vector<8x128xbf16>
      %242 = vector.extract_strided_slice %185 {offsets = [0, 640], sizes = [8, 128], strides = [1, 1]} : vector<8x768xf32> to vector<8x128xf32>
      %243 = arith.addf %242, %29 : vector<8x128xf32>
      %244 = arith.mulf %231, %243 : vector<8x128xf32>
      %245 = arith.extf %241 : vector<8x128xbf16> to vector<8x128xf32>
      %246 = arith.addf %245, %244 : vector<8x128xf32>
      %247 = math.tanh %246 : vector<8x128xf32>
      %cst_71 = arith.constant 1.000000e+00 : f32
      %248 = vector.broadcast %cst_71 : f32 to vector<8x128xf32>
      %249 = arith.subf %248, %240 : vector<8x128xf32>
      %250 = arith.mulf %249, %247 : vector<8x128xf32>
      %251 = arith.mulf %240, %182 : vector<8x128xf32>
      %252 = arith.addf %250, %251 : vector<8x128xf32>
      %c3_i32_72 = arith.constant 3 : i32
      %253 = tpu.concatenate %222, %252 in 1 : vector<8x128xf32>, vector<8x128xf32> -> vector<8x256xf32>
      %254 = arith.truncf %253 : vector<8x256xf32> to vector<8x256xbf16>
      %cst_73 = arith.constant dense<0.000000e+00> : vector<8x768xf32>
      %255 = tpu.matmul %254, %23, %cst_73 {dimension_numbers = #tpu.dot_dimension_numbers<[1], [0], [0], [1], [0, 0, 1, 1], [], []>} : vector<8x256xbf16>, vector<256x768xbf16>, vector<8x768xf32> -> vector<8x768xf32>
      %256 = arith.index_cast %c3_i32_72 : i32 to index
      %c0_74 = arith.constant 0 : index
      %c0_75 = arith.constant 0 : index
      %257 = vector.load %arg13[%256, %c0_74, %c0_75] : memref<4x8x384xbf16, #tpu.memory_space<vmem>>, vector<1x8x384xbf16>
      %258 = vector.shape_cast %257 : vector<1x8x384xbf16> to vector<8x384xbf16>
      %c3_i32_76 = arith.constant 3 : i32
      %259 = arith.subi %c3_i32_76, %c3_i32_72 : i32
      %260 = arith.index_cast %259 : i32 to index
      %c0_77 = arith.constant 0 : index
      %c0_78 = arith.constant 0 : index
      %261 = vector.load %arg14[%260, %c0_77, %c0_78] : memref<4x8x384xbf16, #tpu.memory_space<vmem>>, vector<1x8x384xbf16>
      %262 = vector.shape_cast %261 : vector<1x8x384xbf16> to vector<8x384xbf16>
      %263 = vector.extract_strided_slice %258 {offsets = [0, 0], sizes = [8, 128], strides = [1, 1]} : vector<8x384xbf16> to vector<8x128xbf16>
      %264 = vector.extract_strided_slice %255 {offsets = [0, 0], sizes = [8, 128], strides = [1, 1]} : vector<8x768xf32> to vector<8x128xf32>
      %265 = arith.extf %263 : vector<8x128xbf16> to vector<8x128xf32>
      %266 = arith.addf %265, %264 : vector<8x128xf32>
      %267 = arith.negf %266 : vector<8x128xf32>
      %268 = math.exp %267 : vector<8x128xf32>
      %cst_79 = arith.constant 1.000000e+00 : f32
      %269 = vector.broadcast %cst_79 : f32 to vector<8x128xf32>
      %270 = arith.addf %269, %268 : vector<8x128xf32>
      %271 = arith.divf %269, %270 : vector<8x128xf32>
      %272 = vector.extract_strided_slice %258 {offsets = [0, 128], sizes = [8, 128], strides = [1, 1]} : vector<8x384xbf16> to vector<8x128xbf16>
      %273 = vector.extract_strided_slice %255 {offsets = [0, 128], sizes = [8, 128], strides = [1, 1]} : vector<8x768xf32> to vector<8x128xf32>
      %274 = arith.extf %272 : vector<8x128xbf16> to vector<8x128xf32>
      %275 = arith.addf %274, %273 : vector<8x128xf32>
      %276 = arith.negf %275 : vector<8x128xf32>
      %277 = math.exp %276 : vector<8x128xf32>
      %cst_80 = arith.constant 1.000000e+00 : f32
      %278 = vector.broadcast %cst_80 : f32 to vector<8x128xf32>
      %279 = arith.addf %278, %277 : vector<8x128xf32>
      %280 = arith.divf %278, %279 : vector<8x128xf32>
      %281 = vector.extract_strided_slice %258 {offsets = [0, 256], sizes = [8, 128], strides = [1, 1]} : vector<8x384xbf16> to vector<8x128xbf16>
      %282 = vector.extract_strided_slice %255 {offsets = [0, 256], sizes = [8, 128], strides = [1, 1]} : vector<8x768xf32> to vector<8x128xf32>
      %283 = arith.addf %282, %26 : vector<8x128xf32>
      %284 = arith.mulf %271, %283 : vector<8x128xf32>
      %285 = arith.extf %281 : vector<8x128xbf16> to vector<8x128xf32>
      %286 = arith.addf %285, %284 : vector<8x128xf32>
      %287 = math.tanh %286 : vector<8x128xf32>
      %cst_81 = arith.constant 1.000000e+00 : f32
      %288 = vector.broadcast %cst_81 : f32 to vector<8x128xf32>
      %289 = arith.subf %288, %280 : vector<8x128xf32>
      %290 = arith.mulf %289, %287 : vector<8x128xf32>
      %291 = arith.mulf %280, %222 : vector<8x128xf32>
      %292 = arith.addf %290, %291 : vector<8x128xf32>
      %293 = vector.extract_strided_slice %262 {offsets = [0, 0], sizes = [8, 128], strides = [1, 1]} : vector<8x384xbf16> to vector<8x128xbf16>
      %294 = vector.extract_strided_slice %255 {offsets = [0, 384], sizes = [8, 128], strides = [1, 1]} : vector<8x768xf32> to vector<8x128xf32>
      %295 = arith.extf %293 : vector<8x128xbf16> to vector<8x128xf32>
      %296 = arith.addf %295, %294 : vector<8x128xf32>
      %297 = arith.negf %296 : vector<8x128xf32>
      %298 = math.exp %297 : vector<8x128xf32>
      %cst_82 = arith.constant 1.000000e+00 : f32
      %299 = vector.broadcast %cst_82 : f32 to vector<8x128xf32>
      %300 = arith.addf %299, %298 : vector<8x128xf32>
      %301 = arith.divf %299, %300 : vector<8x128xf32>
      %302 = vector.extract_strided_slice %262 {offsets = [0, 128], sizes = [8, 128], strides = [1, 1]} : vector<8x384xbf16> to vector<8x128xbf16>
      %303 = vector.extract_strided_slice %255 {offsets = [0, 512], sizes = [8, 128], strides = [1, 1]} : vector<8x768xf32> to vector<8x128xf32>
      %304 = arith.extf %302 : vector<8x128xbf16> to vector<8x128xf32>
      %305 = arith.addf %304, %303 : vector<8x128xf32>
      %306 = arith.negf %305 : vector<8x128xf32>
      %307 = math.exp %306 : vector<8x128xf32>
      %cst_83 = arith.constant 1.000000e+00 : f32
      %308 = vector.broadcast %cst_83 : f32 to vector<8x128xf32>
      %309 = arith.addf %308, %307 : vector<8x128xf32>
      %310 = arith.divf %308, %309 : vector<8x128xf32>
      %311 = vector.extract_strided_slice %262 {offsets = [0, 256], sizes = [8, 128], strides = [1, 1]} : vector<8x384xbf16> to vector<8x128xbf16>
      %312 = vector.extract_strided_slice %255 {offsets = [0, 640], sizes = [8, 128], strides = [1, 1]} : vector<8x768xf32> to vector<8x128xf32>
      %313 = arith.addf %312, %29 : vector<8x128xf32>
      %314 = arith.mulf %301, %313 : vector<8x128xf32>
      %315 = arith.extf %311 : vector<8x128xbf16> to vector<8x128xf32>
      %316 = arith.addf %315, %314 : vector<8x128xf32>
      %317 = math.tanh %316 : vector<8x128xf32>
      %cst_84 = arith.constant 1.000000e+00 : f32
      %318 = vector.broadcast %cst_84 : f32 to vector<8x128xf32>
      %319 = arith.subf %318, %310 : vector<8x128xf32>
      %320 = arith.mulf %319, %317 : vector<8x128xf32>
      %321 = arith.mulf %310, %252 : vector<8x128xf32>
      %322 = arith.addf %320, %321 : vector<8x128xf32>
      %c4_i32 = arith.constant 4 : i32
      %c0_85 = arith.constant 0 : index
      %c0_86 = arith.constant 0 : index
      %323 = vector.load %arg15[%c0_85, %c0_86] : memref<8x128xf32, #tpu.memory_space<vmem>>, vector<8x128xf32>
      tpu.vector_store %arg15[%c0_85, %c0_86], %292 {strides = array<i32>} : memref<8x128xf32, #tpu.memory_space<vmem>>, vector<8x128xf32>,
      %c0_87 = arith.constant 0 : index
      %c0_88 = arith.constant 0 : index
      %324 = vector.load %arg16[%c0_87, %c0_88] : memref<8x128xf32, #tpu.memory_space<vmem>>, vector<8x128xf32>
      tpu.vector_store %arg16[%c0_87, %c0_88], %322 {strides = array<i32>} : memref<8x128xf32, #tpu.memory_space<vmem>>, vector<8x128xf32>,
    } else {
    }
    %c2_i32_29 = arith.constant 2 : i32
    %38 = arith.cmpi eq, %arg0, %c2_i32_29 : i32
    %39 = arith.extui %38 : i1 to i32
    %c0_i32_30 = arith.constant 0 : i32
    %40 = arith.cmpi ne, %39, %c0_i32_30 : i32
    scf.if %40 {
      %c0_31 = arith.constant 0 : index
      %c0_32 = arith.constant 0 : index
      %41 = vector.load %arg15[%c0_31, %c0_32] : memref<8x128xf32, #tpu.memory_space<vmem>>, vector<8x128xf32>
      %c0_33 = arith.constant 0 : index
      %c0_34 = arith.constant 0 : index
      %42 = vector.load %arg16[%c0_33, %c0_34] : memref<8x128xf32, #tpu.memory_space<vmem>>, vector<8x128xf32>
      %c0_35 = arith.constant 0 : index
      %c0_36 = arith.constant 0 : index
      %43 = vector.load %arg10[%c0_35, %c0_36] : memref<256x1xf32, #tpu.memory_space<vmem>>, vector<256x1xf32>
      %44 = vector.extract_strided_slice %43 {offsets = [0, 0], sizes = [128, 1], strides = [1, 1]} : vector<256x1xf32> to vector<128x1xf32>
      %cst_37 = arith.constant dense<0.000000e+00> : vector<8x1xf32>
      %45 = tpu.matmul %41, %44, %cst_37 {dimension_numbers = #tpu.dot_dimension_numbers<[1], [0], [0], [1], [0, 0, 1, 1], [], []>} : vector<8x128xf32>, vector<128x1xf32>, vector<8x1xf32> -> vector<8x1xf32>
      %46 = vector.extract_strided_slice %43 {offsets = [128, 0], sizes = [128, 1], strides = [1, 1]} : vector<256x1xf32> to vector<128x1xf32>
      %cst_38 = arith.constant dense<0.000000e+00> : vector<8x1xf32>
      %47 = tpu.matmul %42, %46, %cst_38 {dimension_numbers = #tpu.dot_dimension_numbers<[1], [0], [0], [1], [0, 0, 1, 1], [], []>} : vector<8x128xf32>, vector<128x1xf32>, vector<8x1xf32> -> vector<8x1xf32>
      %48 = arith.addf %45, %47 : vector<8x1xf32>
      %c0_39 = arith.constant 0 : index
      %c0_40 = arith.constant 0 : index
      %49 = vector.load %arg11[%c0_39, %c0_40] : memref<1x1xf32, #tpu.memory_space<vmem>>, vector<1x1xf32>
      %50 = vector.broadcast %49 : vector<1x1xf32> to vector<8x1xf32>
      %51 = arith.addf %48, %50 : vector<8x1xf32>
      %52 = arith.negf %51 : vector<8x1xf32>
      %53 = math.exp %52 : vector<8x1xf32>
      %cst_41 = arith.constant 1.000000e+00 : f32
      %54 = vector.broadcast %cst_41 : f32 to vector<8x1xf32>
      %55 = arith.addf %54, %53 : vector<8x1xf32>
      %56 = arith.divf %54, %55 : vector<8x1xf32>
      %c0_42 = arith.constant 0 : index
      %c0_43 = arith.constant 0 : index
      %57 = vector.load %arg12[%c0_42, %c0_43] : memref<8x1xf32, #tpu.memory_space<vmem>>, vector<8x1xf32>
      tpu.vector_store %arg12[%c0_42, %c0_43], %56 {strides = array<i32>} : memref<8x1xf32, #tpu.memory_space<vmem>>, vector<8x1xf32>,
    } else {
    }
    return
  }
  func.func @transform_0(%arg0: i32) -> (i32, i32, i32) {
    %c0_i32 = arith.constant 0 : i32
    %c0_i32_0 = arith.constant 0 : i32
    %c0_i32_1 = arith.constant 0 : i32
    return %arg0, %c0_i32, %c0_i32_0 : i32, i32, i32
  }
  func.func @transform_1(%arg0: i32) -> (i32, i32, i32) {
    %c2_i32 = arith.constant 2 : i32
    %0 = arith.subi %c2_i32, %arg0 : i32
    %c0_i32 = arith.constant 0 : i32
    %c0_i32_0 = arith.constant 0 : i32
    %c0_i32_1 = arith.constant 0 : i32
    return %0, %c0_i32, %c0_i32_0 : i32, i32, i32
  }
  func.func @transform_2(%arg0: i32) -> (i32, i32) {
    %c0_i32 = arith.constant 0 : i32
    %c0_i32_0 = arith.constant 0 : i32
    %c0_i32_1 = arith.constant 0 : i32
    return %c0_i32, %c0_i32_0 : i32, i32
  }
  func.func @transform_3(%arg0: i32) -> (i32, i32) {
    %c0_i32 = arith.constant 0 : i32
    %c0_i32_0 = arith.constant 0 : i32
    %c0_i32_1 = arith.constant 0 : i32
    return %c0_i32, %c0_i32_0 : i32, i32
  }
  func.func @transform_4(%arg0: i32) -> (i32, i32) {
    %c0_i32 = arith.constant 0 : i32
    %c0_i32_0 = arith.constant 0 : i32
    %c0_i32_1 = arith.constant 0 : i32
    return %c0_i32, %c0_i32_0 : i32, i32
  }
  func.func @transform_5(%arg0: i32) -> (i32, i32) {
    %c0_i32 = arith.constant 0 : i32
    %c0_i32_0 = arith.constant 0 : i32
    %c0_i32_1 = arith.constant 0 : i32
    return %c0_i32, %c0_i32_0 : i32, i32
  }
  func.func @transform_6(%arg0: i32) -> (i32, i32) {
    %c0_i32 = arith.constant 0 : i32
    %c0_i32_0 = arith.constant 0 : i32
    %c0_i32_1 = arith.constant 0 : i32
    return %c0_i32, %c0_i32_0 : i32, i32
  }
  func.func @transform_7(%arg0: i32) -> (i32, i32) {
    %c0_i32 = arith.constant 0 : i32
    %c0_i32_0 = arith.constant 0 : i32
    %c0_i32_1 = arith.constant 0 : i32
    return %c0_i32, %c0_i32_0 : i32, i32
  }
  func.func @transform_8(%arg0: i32) -> (i32, i32) {
    %c0_i32 = arith.constant 0 : i32
    %c0_i32_0 = arith.constant 0 : i32
    %c0_i32_1 = arith.constant 0 : i32
    return %c0_i32, %c0_i32_0 : i32, i32
  }
  func.func @transform_9(%arg0: i32) -> (i32, i32) {
    %c0_i32 = arith.constant 0 : i32
    %c0_i32_0 = arith.constant 0 : i32
    %c0_i32_1 = arith.constant 0 : i32
    return %c0_i32, %c0_i32_0 : i32, i32
  }
  func.func @transform_10(%arg0: i32) -> (i32, i32) {
    %c0_i32 = arith.constant 0 : i32
    %c0_i32_0 = arith.constant 0 : i32
    %c0_i32_1 = arith.constant 0 : i32
    return %c0_i32, %c0_i32_0 : i32, i32
  }
  func.func @transform_11(%arg0: i32) -> (i32, i32) {
    %c0_i32 = arith.constant 0 : i32
    %c0_i32_0 = arith.constant 0 : i32
    %c0_i32_1 = arith.constant 0 : i32
    return %c0_i32, %c0_i32_0 : i32, i32
  }
}

</mosaic_0001>

<bundles_post_ra>
// kernel: tpu_custom_call.1
= control target key start
LH: loop header
LB: loop body
LE: loop exit
PB: predicated region body
PF: predicated region fallthrough
CT: control target
= control target key end

     0   :  { %s7746_s0 = inlined_call_operand.hbm [shape: bf16[12,8,32], index: 0, kind: input, shape index: {}]   ;;  %s7747_s1 = inlined_call_operand.hbm [shape: bf16[12,8,32], index: 1, kind: input, shape index: {}]   ;;  %s7748_s2 = inlined_call_operand.hbm [shape: f32[2,128], index: 2, kind: input, shape index: {}]   ;;  %s7749_s3 = inlined_call_operand.hbm [shape: bf16[32,384], index: 3, kind: input, shape index: {}]   ;;  %s7750_s4 = inlined_call_operand.hbm [shape: f32[1,384], index: 4, kind: input, shape index: {}]   ;;  %s7751_s5 = inlined_call_operand.hbm [shape: bf16[32,384], index: 5, kind: input, shape index: {}]   ;;  %s7752_s6 = inlined_call_operand.hbm [shape: f32[1,384], index: 6, kind: input, shape index: {}]   ;;  %s7753_s7 = inlined_call_operand.hbm [shape: bf16[256,768], index: 7, kind: input, shape index: {}]   ;;  %s7754_s8 = inlined_call_operand.hbm [shape: f32[1,256], index: 8, kind: input, shape index: {}]   ;;  %s7755_s9 = inlined_call_operand.hbm [shape: f32[256,1], index: 9, kind: input, shape index: {}]   ;;  %s7756_s10 = inlined_call_operand.<no memory space> [shape: f32[1,1], index: 10, kind: input, shape index: {}]   ;;  %s7757_s11 = inlined_call_operand.hbm [shape: f32[8,1], index: 11, kind: output, shape index: {}]  }
   0x1   :  { %8261 = sst [smem:[#allocation302_spill]] %s7747_s1  ;;  %v16_v0 = vstv %s7756_s10 }
   0x2   :  { %8262 = sst [smem:[#allocation303_spill]] %s7748_s2  ;;  %17 = vst [vmem:[#allocation6] sm:$0x1] %v16_v0 }
   0x3   :  { %8263 = sst [smem:[#allocation304_spill]] %s7749_s3 }
   0x4   :  { %8264 = sst [smem:[#allocation305_spill]] %s7757_s11 }
   0x5   :  { %18 = vsyncpa [#allocation8], 0 }
   0x6   :  { %20 = vsyncpa [#allocation8 + $0x1], 0 }
   0x7   :  { %21 = vsyncpa [#allocation11], 0 }
   0x8   :  { %23 = vsyncpa [#allocation11 + $0x1], 0 }
   0x9   :  { %24 = vsyncpa [#allocation14], 0 }
   0xa   :  { %25 = vsyncpa [#allocation17], 0 }
   0xb   :  { %26 = vsyncpa [#allocation20], 0 }
   0xc   :  { %27 = vsyncpa [#allocation23], 0 }
   0xd   :  { %28 = vsyncpa [#allocation9], 0  ;;  %s5327_s19 = smov 0   ;;  %s5329_s20 = smov 0  }
   0xe   :  { %s5331_s21 = smov 0   ;;  %s5333_s22 = smov 0  }
   0xf   :  { %s5335_s23 = smov 0   ;;  %s5337_s10 = smov 0  }
  0x10   :  { %s5339_s24 = smov 0  }
  0x11 LB: > { %s5241_s25 = smov [#allocation12]   ;;  %s5363_s27 = sadd.s32 4294967295, %s5239_s24   ;;  %s5239_s24 = sphi %s5339_s24, %s8986_s24   ;;  %s5235_s10 = sphi %s5337_s10, %s8985_s10   ;;  %s5231_s23 = sphi %s5335_s23, %s8984_s23   ;;  %s5227_s22 = sphi %s5333_s22, %s8983_s22   ;;  %s5223_s21 = sphi %s5331_s21, %s8982_s21   ;;  %s5219_s20 = sphi %s5329_s20, %s8981_s20   ;;  %s5215_s19 = sphi %s5327_s19, %s8980_s19  }
  0x12   : > { %s316_s26 = sshll.u32 %s5241_s25, 4  ;;  %p3993_p0 = scmp.ge.s32.totalorder %s5239_s24, 1  ;;  %s317_s26 = int_to_ptr.vmem [resolvable:$true] %s316_s26 }
  0x13   : > { %p7759_p1 = scmp.eq.s32.totalorder %s5363_s27, 0  ;;  %p303_p2 = scmp.lt.s32.totalorder %s5239_s24, 4 }
  0x14   : > { %s5242_s29 = smov [#allocation13]   ;;  %s5243_s13 = smov [#allocation16]  }
  0x15   : > { %p5369_p4 = pnand %p3993_p0, %p303_p2  ;;  %s326_s30 = sshll.u32 %s5242_s29, 4  ;;  %s5375_s30 = int_to_ptr.vmem [resolvable:$true] %s326_s30 }
  0x16   : > { %s350_s14 = sshll.u32 %s5243_s13, 4  ;;  %s8268_s2 = sld [smem:[#allocation303_spill]]  ;;  %s5383_s14 = int_to_ptr.vmem [resolvable:$true] %s350_s14 }
  0x17   : > { %s8265_s28 = scalar_select %p5369_p4, 1, 0 }
  0x18   : > { %p4531_p5 = pneg %p5369_p4 }
  0x19   : > { %8266 = sst [smem:[#allocation33_spill]] %s8265_s28 }
  0x1a   : > { %p5379_p6 = pnand %p4531_p5, %p7759_p1 }
  0x1c   : > { %s4843_s17 = scalar_lea.hbm %s8268_s2, 32  ;;  %p5393_p8 = pneg %p5379_p6 }
  0x1d   : > { %p4844_p7 = scmp.ne.s32.totalorder %s8268_s2, %s4843_s17  ;;  %p4850_p11 = scmp.lt.u32.totalorder %s4843_s17, %s8268_s2 }
  0x1f   : > { %p4846_p9 = pnand %p5393_p8, %p4844_p7 }
  0x21   : > { %p4847_p10 = pneg %p4846_p9 }
  0x23   : > { %p4852_p12 = pnand %p4850_p11, %p4847_p10 }
  0x25   : > { %4855 = shalt.err (!%p4852_p12)
}
  0x26   : > { %s4856_s15 = scalar_lea.vmem %s317_s26, 32  ;;  %p4864_p5 = scmp.lt.s32.totalorder %s317_s26, %s317_s26 }
  0x27   : > { %p4857_p13 = scmp.ne.s32.totalorder %s317_s26, %s4856_s15  ;;  %p4865_p3 = scmp.lt.s32.totalorder %s4856_s15, %s4856_s15 }
  0x29   : > { %p4859_p0 = pnand %p4857_p13, %p5393_p8  ;;  %p4866_p1 = por %p4865_p3, %p4864_p5 }
  0x2b   : > { %p4860_p2 = pneg %p4859_p0 }
  0x2d   : > { %p4867_p4 = pnand %p4866_p1, %p4860_p2 }
  0x2f   : > { %4870 = shalt.err (!%p4867_p4)
}
  0x30   : > { %4534 = dma.hbm_to_vmem [thread:$0]  (!%p5379_p6), %s8268_s2, 32, %s317_s26, [#allocation11]  }
  0x31   : > { %s8270_s3 = sld [smem:[#allocation304_spill]] }
  0x37   : > { %s4871_s25 = scalar_lea.hbm %s8270_s3, 768 }
  0x38   : > { %p4872_p7 = scmp.ne.s32.totalorder %s8270_s3, %s4871_s25  ;;  %p4878_p1 = scmp.lt.u32.totalorder %s4871_s25, %s8270_s3 }
  0x3a   : > { %p4874_p9 = pnand %p4872_p7, %p5393_p8 }
  0x3c   : > { %p4875_p3 = pneg %p4874_p9 }
  0x3e   : > { %p4880_p4 = pnand %p4878_p1, %p4875_p3 }
  0x40   : > { %4883 = shalt.err (!%p4880_p4)
}
  0x41   : > { %s4884_s26 = scalar_lea.vmem %s5375_s30, 768  ;;  %p4892_p13 = scmp.lt.s32.totalorder %s5375_s30, %s5375_s30 }
  0x42   : > { %p4885_p10 = scmp.ne.s32.totalorder %s5375_s30, %s4884_s26  ;;  %p4893_p0 = scmp.lt.s32.totalorder %s4884_s26, %s4884_s26 }
  0x44   : > { %p4887_p11 = pnand %p4885_p10, %p5393_p8  ;;  %p4894_p2 = por %p4893_p0, %p4892_p13 }
  0x46   : > { %p4888_p12 = pneg %p4887_p11 }
  0x48   : > { %p4895_p5 = pnand %p4894_p2, %p4888_p12 }
  0x4a   : > { %4898 = shalt.err (!%p4895_p5)
}
  0x4b   : > { %s5244_s28 = smov 192   ;;  %s5245_s1 = smov 12  }
  0x4c   : > { %4537 = dma.hbm_to_vmem [thread:$0]  (!%p5379_p6), %s8270_s3, 768, %s5375_s30, [#allocation14], %s5244_s28, %s5244_s28, %s5245_s1  }
  0x4d   : > { %s4899_s25 = scalar_lea.hbm %s7751_s5, 768 }
  0x4e   : > { %p4900_p7 = scmp.ne.s32.totalorder %s7751_s5, %s4899_s25  ;;  %p4906_p1 = scmp.lt.u32.totalorder %s4899_s25, %s7751_s5 }
  0x50   : > { %p4902_p9 = pnand %p4900_p7, %p5393_p8 }
  0x52   : > { %p4903_p3 = pneg %p4902_p9 }
  0x54   : > { %p4908_p4 = pnand %p4906_p1, %p4903_p3 }
  0x56   : > { %4911 = shalt.err (!%p4908_p4)
}
  0x57   : > { %s4912_s30 = scalar_lea.vmem %s5383_s14, 768  ;;  %p4920_p13 = scmp.lt.s32.totalorder %s5383_s14, %s5383_s14 }
  0x58   : > { %p4913_p10 = scmp.ne.s32.totalorder %s5383_s14, %s4912_s30  ;;  %p4921_p0 = scmp.lt.s32.totalorder %s4912_s30, %s4912_s30 }
  0x5a   : > { %p4915_p11 = pnand %p4913_p10, %p5393_p8  ;;  %p4922_p2 = por %p4921_p0, %p4920_p13 }
  0x5c   : > { %p4916_p12 = pneg %p4915_p11 }
  0x5e   : > { %p4923_p5 = pnand %p4922_p2, %p4916_p12 }
  0x60   : > { %4926 = shalt.err (!%p4923_p5)
}
  0x61   : > { %4543 = dma.hbm_to_vmem [thread:$0]  (!%p5379_p6), %s7751_s5, 768, %s5383_s14, [#allocation17], %s5244_s28, %s5244_s28, %s5245_s1  }
  0x62   : > { %s5246_s18 = smov [#allocation19]   ;;  %s4927_s13 = scalar_lea.hbm %s7753_s7, 12288 }
  0x63   : > { %s374_s11 = sshll.u32 %s5246_s18, 4  ;;  %p4928_p7 = scmp.ne.s32.totalorder %s7753_s7, %s4927_s13  ;;  %s375_s11 = int_to_ptr.vmem [resolvable:$true] %s374_s11 }
  0x64   : > { %p4934_p1 = scmp.lt.u32.totalorder %s4927_s13, %s7753_s7 }
  0x65   : > { %p4930_p9 = pnand %p4928_p7, %p5393_p8 }
  0x67   : > { %p4931_p3 = pneg %p4930_p9 }
  0x69   : > { %p4936_p4 = pnand %p4934_p1, %p4931_p3 }
  0x6b   : > { %4939 = shalt.err (!%p4936_p4)
}
  0x6c   : > { %s4940_s14 = scalar_lea.vmem %s375_s11, 12288  ;;  %p4948_p13 = scmp.lt.s32.totalorder %s375_s11, %s375_s11 }
  0x6d   : > { %p4941_p10 = scmp.ne.s32.totalorder %s375_s11, %s4940_s14  ;;  %p4949_p0 = scmp.lt.s32.totalorder %s4940_s14, %s4940_s14 }
  0x6f   : > { %p4943_p11 = pnand %p4941_p10, %p5393_p8  ;;  %p4950_p2 = por %p4949_p0, %p4948_p13 }
  0x71   : > { %p4944_p12 = pneg %p4943_p11 }
  0x73   : > { %p4951_p5 = pnand %p4950_p2, %p4944_p12 }
  0x75   : > { %4954 = shalt.err (!%p4951_p5)
}
  0x76   : > { %s5247_s28 = smov 384   ;;  %s5248_s1 = smov 24  }
  0x77   : > { %4549 = dma.hbm_to_vmem [thread:$0]  (!%p5379_p6), %s7753_s7, 12288, %s375_s11, [#allocation20], %s5247_s28, %s5247_s28, %s5248_s1  }
  0x78   : > { %s5249_s16 = smov [#allocation15]   ;;  %s5250_s17 = smov [#allocation18]  }
  0x79   : > { %s340_s18 = sshll.u32 %s5249_s16, 4  ;;  %s364_s25 = sshll.u32 %s5250_s17, 4  ;;  %s341_s18 = int_to_ptr.vmem [resolvable:$true] %s340_s18  ;;  %s5473_s25 = int_to_ptr.vmem [resolvable:$true] %s364_s25 }
  0x7a   : > { %s4955_s26 = scalar_lea.hbm %s7750_s4, 48 }
  0x7b   : > { %p4956_p7 = scmp.ne.s32.totalorder %s7750_s4, %s4955_s26  ;;  %p4962_p1 = scmp.lt.u32.totalorder %s4955_s26, %s7750_s4 }
  0x7d   : > { %p4958_p9 = pnand %p4956_p7, %p5393_p8 }
  0x7f   : > { %p4959_p3 = pneg %p4958_p9 }
  0x81   : > { %p4964_p4 = pnand %p4962_p1, %p4959_p3 }
  0x83   : > { %4967 = shalt.err (!%p4964_p4)
}
  0x84   : > { %s4968_s28 = scalar_lea.vmem %s341_s18, 48  ;;  %s4975_s1 = scalar_lea.vmem %s341_s18, 64 }
  0x85   : > { %p4969_p10 = scmp.ne.s32.totalorder %s341_s18, %s4968_s28  ;;  %p4976_p13 = scmp.lt.s32.totalorder %s341_s18, %s341_s18 }
  0x86   : > { %p4977_p0 = scmp.lt.s32.totalorder %s4975_s1, %s4968_s28 }
  0x87   : > { %p4971_p11 = pnand %p4969_p10, %p5393_p8 }
  0x88   : > { %p4978_p2 = por %p4977_p0, %p4976_p13 }
  0x89   : > { %p4972_p12 = pneg %p4971_p11 }
  0x8b   : > { %p4979_p5 = pnand %p4978_p2, %p4972_p12 }
  0x8d   : > { %4982 = shalt.err (!%p4979_p5)
}
  0x8e   : > { %4540 = dma.hbm_to_vmem [thread:$0]  (!%p5379_p6), %s7750_s4, 48, %s341_s18, [#allocation14]  }
  0x8f   : > { %s4983_s15 = scalar_lea.hbm %s7752_s6, 48 }
  0x90   : > { %p4984_p7 = scmp.ne.s32.totalorder %s7752_s6, %s4983_s15  ;;  %p4990_p1 = scmp.lt.u32.totalorder %s4983_s15, %s7752_s6 }
  0x92   : > { %p4986_p9 = pnand %p4984_p7, %p5393_p8 }
  0x94   : > { %p4987_p3 = pneg %p4986_p9 }
  0x96   : > { %p4992_p4 = pnand %p4990_p1, %p4987_p3 }
  0x98   : > { %4995 = shalt.err (!%p4992_p4)
}
  0x99   : > { %s4996_s18 = scalar_lea.vmem %s5473_s25, 48  ;;  %s5003_s11 = scalar_lea.vmem %s5473_s25, 64 }
  0x9a   : > { %p4997_p10 = scmp.ne.s32.totalorder %s5473_s25, %s4996_s18  ;;  %p5004_p13 = scmp.lt.s32.totalorder %s5473_s25, %s5473_s25 }
  0x9b   : > { %p5005_p0 = scmp.lt.s32.totalorder %s5003_s11, %s4996_s18 }
  0x9c   : > { %p4999_p11 = pnand %p4997_p10, %p5393_p8 }
  0x9d   : > { %p5006_p2 = por %p5005_p0, %p5004_p13 }
  0x9e   : > { %p5000_p12 = pneg %p4999_p11 }
  0xa0   : > { %p5007_p5 = pnand %p5006_p2, %p5000_p12 }
  0xa2   : > { %5010 = shalt.err (!%p5007_p5)
}
  0xa3   : > { %4546 = dma.hbm_to_vmem [thread:$0]  (!%p5379_p6), %s7752_s6, 48, %s5473_s25, [#allocation17]  }
  0xa4   : > { %s5251_s2 = smov [#allocation21]   ;;  %s5252_s17 = smov [#allocation22]  }
  0xa5   : > { %s388_s16 = sshll.u32 %s5251_s2, 4  ;;  %s398_s13 = sshll.u32 %s5252_s17, 4  ;;  %s389_s16 = int_to_ptr.vmem [resolvable:$true] %s388_s16  ;;  %s5517_s13 = int_to_ptr.vmem [resolvable:$true] %s398_s13 }
  0xa6   : > { %s5011_s30 = scalar_lea.hbm %s7754_s8, 32 }
  0xa7   : > { %p5012_p7 = scmp.ne.s32.totalorder %s7754_s8, %s5011_s30  ;;  %p5018_p1 = scmp.lt.u32.totalorder %s5011_s30, %s7754_s8 }
  0xa9   : > { %p5014_p9 = pnand %p5012_p7, %p5393_p8 }
  0xab   : > { %p5015_p3 = pneg %p5014_p9 }
  0xad   : > { %p5020_p4 = pnand %p5018_p1, %p5015_p3 }
  0xaf   : > { %5023 = shalt.err (!%p5020_p4)
}
  0xb0   : > { %s5024_s11 = scalar_lea.vmem %s389_s16, 32  ;;  %p5032_p13 = scmp.lt.s32.totalorder %s389_s16, %s389_s16 }
  0xb1   : > { %p5025_p10 = scmp.ne.s32.totalorder %s389_s16, %s5024_s11  ;;  %p5033_p0 = scmp.lt.s32.totalorder %s5024_s11, %s5024_s11 }
  0xb3   : > { %p5027_p11 = pnand %p5025_p10, %p5393_p8  ;;  %p5034_p2 = por %p5033_p0, %p5032_p13 }
  0xb5   : > { %p5028_p12 = pneg %p5027_p11 }
  0xb7   : > { %p5035_p5 = pnand %p5034_p2, %p5028_p12 }
  0xb9   : > { %5038 = shalt.err (!%p5035_p5)
}
  0xba   : > { %4552 = dma.hbm_to_vmem [thread:$0]  (!%p5379_p6), %s7754_s8, 32, %s389_s16, [#allocation20]  }
  0xbb   : > { %s5039_s15 = scalar_lea.hbm %s7755_s9, 4096 }
  0xbc   : > { %p5040_p7 = scmp.ne.s32.totalorder %s7755_s9, %s5039_s15  ;;  %p5046_p1 = scmp.lt.u32.totalorder %s5039_s15, %s7755_s9 }
  0xbe   : > { %p5042_p9 = pnand %p5040_p7, %p5393_p8 }
  0xc0   : > { %p5043_p3 = pneg %p5042_p9 }
  0xc2   : > { %p5048_p4 = pnand %p5046_p1, %p5043_p3 }
  0xc4   : > { %5051 = shalt.err (!%p5048_p4)
}
  0xc5   : > { %s5052_s16 = scalar_lea.vmem %s5517_s13, 4096  ;;  %p5060_p13 = scmp.lt.s32.totalorder %s5517_s13, %s5517_s13 }
  0xc6   : > { %p5053_p10 = scmp.ne.s32.totalorder %s5517_s13, %s5052_s16  ;;  %p5061_p0 = scmp.lt.s32.totalorder %s5052_s16, %s5052_s16 }
  0xc8   : > { %p5055_p11 = pnand %p5053_p10, %p5393_p8  ;;  %p5062_p2 = por %p5061_p0, %p5060_p13 }
  0xca   : > { %p5056_p12 = pneg %p5055_p11 }
  0xcc   : > { %p5063_p5 = pnand %p5062_p2, %p5056_p12 }
  0xce   : > { %5066 = shalt.err (!%p5063_p5)
}
  0xcf   : > { %s5253_s18 = smov 128   ;;  %s5254_s29 = smov 8  }
  0xd0   : > { %4555 = dma.hbm_to_vmem [thread:$0]  (!%p5379_p6), %s7755_s9, 4096, %s5517_s13, [#allocation23], %s5253_s18, %s5253_s18, %s5254_s29  }
  0xd1   : > { %s41_s28 = sadd.s32 1, %s5235_s10  ;;  %p48_p8 = scmp.ne.s32.totalorder %s5235_s10, %s5231_s23 }
  0xd2   : > { %p7764_p7 = scmp.eq.s32.totalorder %s5239_s24, 0  ;;  %p54_p9 = scmp.ne.s32.totalorder %s5231_s23, %s5227_s22 }
  0xd3   : > { %p7763_p3 = scmp.lt.s32.totalorder %s5239_s24, 3  ;;  %s415_s1 = sand.u32 1, %s5235_s10  }
  0xd4   : > { %p50_p1 = por %p7764_p7, %p48_p8  ;;  %p8271_p4 = scmp.eq.s32.totalorder %s5363_s27, 0 }
  0xd5   : > { %s4003_s17 = sshll.u32 %s415_s1, 4  ;;  %s4297_s12 = sshll.u32 %s5239_s24, 8 }
  0xd6   : > { %p5572_p10 = por %p8271_p4, %p54_p9  ;;  %s5580_s30 = scalar_lea.hbm %s7746_s0, %s4297_s12 }
  0xd7   : > { %s419_s22 = scalar_lea.vmem [#allocation7], %s4003_s17  ;;  %p5586_p6 = pnand %p7763_p3, %p50_p1 }
  0xd8   : > { %s426_s13 = sshll.u32 %s419_s22, 4  ;;  %s5590_s3 = scalar_lea.sflag [#allocation8], %s415_s1  ;;  %s5582_s13 = int_to_ptr.vmem [resolvable:$true] %s426_s13 }
  0xd9   : > { %s5067_s16 = scalar_lea.hbm %s5580_s30, 256  ;;  %p5069_p12 = pneg %p5586_p6 }
  0xda   : > { %p5068_p11 = scmp.ne.s32.totalorder %s5580_s30, %s5067_s16  ;;  %s5072_s25 = scalar_lea.hbm %s7746_s0, 768 }
  0xdb   : > { %p5073_p2 = scmp.lt.u32.totalorder %s5580_s30, %s7746_s0  ;;  %p5074_p5 = scmp.lt.u32.totalorder %s5072_s25, %s5067_s16 }
  0xdc   : > { %p5070_p13 = pnand %p5069_p12, %p5068_p11  ;;  %p5076_p9 = scmp.lt.u32.totalorder %s5067_s16, %s5580_s30 }
  0xdd   : > { %p5075_p8 = por %p5074_p5, %p5073_p2 }
  0xde   : > { %p5071_p0 = pneg %p5070_p13 }
  0xdf   : > { %p5077_p1 = por %p5076_p9, %p5075_p8 }
  0xe1   : > { %p5078_p4 = pnand %p5077_p1, %p5071_p0 }
  0xe3   : > { %5081 = shalt.err (!%p5078_p4)
}
  0xe4   : > { %s5082_s1 = scalar_lea.vmem %s5582_s13, 256  ;;  %s5255_s12 = smov [#allocation7]  }
  0xe5   : > { %p5083_p11 = scmp.ne.s32.totalorder %s5582_s13, %s5082_s1  ;;  %s5087_s15 = sshll.u32 %s5255_s12, 4  ;;  %s5088_s15 = int_to_ptr.vmem [resolvable:$false] %s5087_s15 }
  0xe6   : > { %s5089_s26 = scalar_lea.vmem %s5088_s15, 512  ;;  %p5090_p7 = scmp.lt.s32.totalorder %s5582_s13, %s5088_s15 }
  0xe7   : > { %p5085_p13 = pnand %p5083_p11, %p5069_p12  ;;  %p5091_p2 = scmp.lt.s32.totalorder %s5089_s26, %s5082_s1 }
  0xe9   : > { %p5086_p3 = pneg %p5085_p13  ;;  %p5092_p5 = por %p5091_p2, %p5090_p7 }
  0xeb   : > { %p5093_p8 = pnand %p5092_p5, %p5086_p3 }
  0xed   : > { %5096 = shalt.err (!%p5093_p8)
}
  0xee   : > { %s7765_s22 = smov 64   ;;  %s5257_s16 = smov 4  }
  0xef   : > { %4559 = dma.hbm_to_vmem [thread:$0]  (!%p5586_p6), %s5580_s30, 256, %s5582_s13, %s5590_s3, %s7765_s22, %s7765_s22, %s5257_s16  }
  0xf0   : > { %s5622_s18 = sadd.s32 1, %s5239_s24   ;;  %s64_s25 = ssub.s32 2, %s5239_s24 }
  0xf1   : > { %s38_s29 = ssub.s32 %s5239_s24, %s5622_s18  ;;  %s65_s11 = ssub.s32 2, %s5622_s18 }
  0xf2   : > { %p39_p7 = scmp.eq.s32.totalorder %s38_s29, 0  ;;  %s66_s17 = ssub.s32 %s64_s25, %s65_s11 }
  0xf3   : > { %s69_s1 = sadd.s32 1, %s5223_s21  ;;  %p67_p3 = scmp.eq.s32.totalorder %s66_s17, 0 }
  0xf4   : > { %s5632_s12 = scalar_select %p39_p7, %s5235_s10, %s41_s28  }
  0xf5   : > { %p76_p12 = scmp.ne.s32.totalorder %s5223_s21, %s5219_s20  ;;  %p82_p0 = scmp.ne.s32.totalorder %s5219_s20, %s5215_s19 }
  0xf6   : > { %s436_s14 = sand.u32 1, %s5239_s24   ;;  %p8274_p6 = scmp.eq.s32.totalorder %s5239_s24, 0 }
  0xf7   : > { %s5640_s30 = scalar_select %p67_p3, %s5223_s21, %s69_s1  }
  0xf8   : > { %p78_p9 = por %p76_p12, %p8274_p6  ;;  %p8275_p1 = scmp.eq.s32.totalorder %s5363_s27, 0 }
  0xf9   : > { %s438_s3 = sand.u32 1, %s5223_s21   ;;  %s4298_s26 = sshll.u32 %s64_s25, 8 }
  0xfa   : > { %p5646_p4 = por %p82_p0, %p8275_p1  ;;  %s4006_s15 = sshll.u32 %s438_s3, 4 }
  0xfb   : > { %s8277_s28 = sld [smem:[#allocation302_spill]]  ;;  %s440_s19 = scalar_lea.vmem [#allocation10], %s4006_s15 }
  0xfc   : > { %s8276_s13 = scalar_select %p5646_p4, 1, 0 }
  0xfd   : > { %s448_s17 = sshll.u32 %s440_s19, 4  ;;  %p8278_p11 = scmp.lt.s32.totalorder %s5239_s24, 3  ;;  %s5662_s17 = int_to_ptr.vmem [resolvable:$true] %s448_s17 }
  0xfe   : > { %s5664_s25 = scalar_lea.sflag [#allocation11], %s436_s14 }
  0xff   : > { %p5658_p13 = pnand %p8278_p11, %p78_p9 }
 0x101   : > { %s5654_s22 = scalar_lea.hbm %s8277_s28, %s4298_s26  ;;  %p5099_p5 = pneg %p5658_p13 }
 0x102   : > { %s5097_s3 = scalar_lea.hbm %s5654_s22, 256  ;;  %s5102_s26 = scalar_lea.hbm %s8277_s28, 768 }
 0x103   : > { %p5098_p2 = scmp.ne.s32.totalorder %s5654_s22, %s5097_s3  ;;  %p5103_p3 = scmp.lt.u32.totalorder %s5654_s22, %s8277_s28 }
 0x104   : > { %p5104_p12 = scmp.lt.u32.totalorder %s5102_s26, %s5097_s3  ;;  %p5106_p6 = scmp.lt.u32.totalorder %s5097_s3, %s5654_s22 }
 0x105   : > { %p5100_p8 = pnand %p5099_p5, %p5098_p2 }
 0x106   : > { %p5105_p0 = por %p5104_p12, %p5103_p3 }
 0x107   : > { %p5101_p7 = pneg %p5100_p8 }
 0x108   : > { %p5107_p9 = por %p5106_p6, %p5105_p0 }
 0x10a   : > { %p5108_p1 = pnand %p5107_p9, %p5101_p7 }
 0x10c   : > { %5111 = shalt.err (!%p5108_p1)
}
 0x10d   : > { %s5112_s14 = scalar_lea.vmem %s5662_s17, 256  ;;  %s5258_s19 = smov [#allocation10]  }
 0x10e   : > { %p5113_p11 = scmp.ne.s32.totalorder %s5662_s17, %s5112_s14  ;;  %s5117_s15 = sshll.u32 %s5258_s19, 4  ;;  %s5118_s15 = int_to_ptr.vmem [resolvable:$false] %s5117_s15 }
 0x10f   : > { %s5119_s24 = scalar_lea.vmem %s5118_s15, 512  ;;  %p5120_p4 = scmp.lt.s32.totalorder %s5662_s17, %s5118_s15 }
 0x110   : > { %p5115_p2 = pnand %p5113_p11, %p5099_p5  ;;  %p5121_p3 = scmp.lt.s32.totalorder %s5119_s24, %s5112_s14 }
 0x112   : > { %p5116_p8 = pneg %p5115_p2  ;;  %p5122_p12 = por %p5121_p3, %p5120_p4 }
 0x114   : > { %p5123_p0 = pnand %p5122_p12, %p5116_p8 }
 0x116   : > { %5126 = shalt.err (!%p5123_p0)
}
 0x117   : > { %s8280_s3 = smov 64   ;;  %s8281_s26 = sld [smem:[#allocation33_spill]] }
 0x118   : > { %4562 = dma.hbm_to_vmem [thread:$0]  (!%p5658_p13), %s5654_s22, 256, %s5662_s17, %s5664_s25, %s8280_s3, %s8280_s3, %s5257_s16  }
 0x11d   : > { %p8282_p5 = scmp.ne.s32.totalorder %s8281_s26, 0 }
 0x11f   : > { %460 = sbr.rel (%p8282_p5) target bundleno = 3529 (0xdc9), region = 64 }
 0x126   : > { %s462_s29 = sand.u32 1, %s5231_s23  }
 0x127   : > { %s5698_s11 = sshll.u32 %s462_s29, 4  ;;  %s463_s14 = scalar_lea.sflag [#allocation8], %s462_s29 }
 0x128   : > { %s466_s19 = scalar_lea.vmem [#allocation7], %s5698_s11 }
 0x129   : > { %5182 = dma.done.wait (%p5572_p10), %s463_s14, 256  }
 0x12a   : > { %5184 = vsyncadd (%p5572_p10), %s463_s14, 4294967040  ;;  %s471_s22 = sand.u32 1, %s5363_s27   ;;  %s473_s16 = sand.u32 1, %s5219_s20  }
 0x12b   : > { %s5707_s17 = sshll.u32 %s473_s16, 4  ;;  %s472_s1 = scalar_lea.sflag [#allocation11], %s471_s22 }
 0x12c   : > { %s475_s25 = scalar_lea.vmem [#allocation10], %s5707_s17  ;;  %p8283_p4 = scmp.ne.s32.totalorder %s8276_s13, 0 }
 0x12e   : > { %5186 = dma.done.wait (%p8283_p4), %s472_s1, 256  }
 0x12f   : > { %5188 = vsyncadd (%p8283_p4), %s472_s1, 4294967040  ;;  %p8284_p13 = scmp.eq.s32.totalorder %s5363_s27, 0 }
 0x131   : > { %5190 = dma.done.wait (%p8284_p13), [#allocation11], 32   ;;  %p8285_p10 = pmov %p8284_p13 }
 0x133   : > { %5192 = vsyncadd (%p8285_p10), [#allocation11], 4294967264  ;;  %p8286_p7 = pmov %p8285_p10 }
 0x135   : > { %5194 = dma.done.wait (%p8286_p7), [#allocation14], 816   ;;  %p8287_p6 = pmov %p8286_p7 }
 0x137   : > { %5196 = vsyncadd (%p8287_p6), [#allocation14], 4294966480  ;;  %p8288_p9 = pmov %p8287_p6 }
 0x138   : > { %p8289_p1 = pmov %p8287_p6 }
 0x139   : > { %5198 = dma.done.wait (%p8288_p9), [#allocation17], 816  }
 0x13a   : > { %5200 = vsyncadd (%p8289_p1), [#allocation17], 4294966480  ;;  %p8290_p11 = pmov %p8289_p1 }
 0x13b   : > { %p8291_p2 = pmov %p8289_p1 }
 0x13c   : > { %5202 = dma.done.wait (%p8290_p11), [#allocation20], 12320  }
 0x13d   : > { %5204 = vsyncadd (%p8291_p2), [#allocation20], 4294954976  ;;  %p8292_p8 = pmov %p8289_p1 }
 0x13e   : > { %p8293_p3 = pmov %p8289_p1 }
 0x13f   : > { %5206 = dma.done.wait (%p8292_p8), [#allocation23], 4096  }
 0x140   : > { %5208 = vsyncadd (%p8293_p3), [#allocation23], 4294963200  ;;  %p8294_p12 = scmp.ne.s32.totalorder %s5363_s27, 0 }
 0x141   : > { %v4021_v1 = vld [vmem:[#allocation12] ss:$0 sm:$0xff] (!%p8294_p12)  ;;  %v4022_v2 = vld [vmem:[#allocation12 + $0x1] ss:$0 sm:$0xff] (!%p8294_p12) }
 0x142   : > { %553 = sbr.rel (%p8294_p12) target bundleno = 329 (0x149), region = 108  ;;  %559 = vst [vmem:[#allocation4] sm:$0xff] (!%p8294_p12), %v4021_v1  ;;  %565 = vst [vmem:[#allocation5] sm:$0xff] (!%p8294_p12), %v4022_v2 }
 0x149 PF: > { %v4659_v3 = vld [vmem:[#allocation13 + $0x4] ss:$12 sps:$4 sm:$0xff]   ;;  %v4661_v4 = vld [vmem:[#allocation13 + $0x8] ss:$12 sps:$4 sm:$0xff]   ;;  %v5259_v5 = vmov 0   ;;  %vm641_vm0 = vcmask 261120  }
 0x14a   : > { %680 = vmatprep.mubr.bf16.mxu0 %v5259_v5  ;;  %648 = vmatprep.subr.bf16.mxu0 %v4659_v3  ;;  %v4662_v6 = vld [vmem:[#allocation13] ss:$12 sps:$4 sm:$0xff]   ;;  %v4663_v7 = vld [vmem:[#allocation13 + $0x1c] ss:$12 sps:$4 sm:$0xff]   ;;  %v4666_v9 = vld [vmem:[#allocation13 + $0x18] ss:$12 sps:$4 sm:$0xff]  }
 0x14b   : > { %4357 = vmatprep.subr.bf16.mxu1 %v4661_v4  ;;  %649 = vmatpush1.bf16.msra.mxu0 %v4662_v6  ;;  %v4665_v8 = vld [vmem:[#allocation13 + $0x20] ss:$12 sps:$4 sm:$0xff]   ;;  %v4671_v13 = vld [vmem:[#allocation16 + $0x4] ss:$12 sps:$4 sm:$0xff]   ;;  %v4672_v14 = vld [vmem:[#allocation16 + $0x8] ss:$12 sps:$4 sm:$0xff]  }
 0x14c   : > { %4358 = vmatpush3.bf16.msra.mxu1 %v4661_v4  ;;  %650 = vmatprep.subr.bf16.mxu0 %v4663_v7  ;;  %v4667_v10 = vld [vmem:[%s466_s19] sm:$0xff]   ;;  %v4668_v11 = vld [vmem:[%s466_s19 + $0x8] sm:$0xff]   ;;  %p1131_p0 = scmp.eq.s32.totalorder %s5363_s27, 2  ;;  %p8298_p5 = scmp.eq.s32.totalorder %s5363_s27, 0 }
 0x14d   : > { %4359 = vmatprep.subr.bf16.mxu1 %v4665_v8  ;;  %4361 = vmatprep.mubr.msk.bf16.mxu1 %vm641_vm0, %v4667_v10  ;;  %v4669_v12 = vld [vmem:[#allocation16] ss:$12 sps:$4 sm:$0xff]   ;;  %v4675_v15 = vld [vmem:[#allocation16 + $0x1c] ss:$12 sps:$4 sm:$0xff]   ;;  %v4673_v16 = vld [vmem:[#allocation16 + $0x18] ss:$12 sps:$4 sm:$0xff]  }
 0x14e   : > { %v4677_v17 = vld [vmem:[#allocation16 + $0x20] ss:$12 sps:$4 sm:$0xff]   ;;  %v5753_v20 = vld [vmem:[#allocation19] sm:$0xff]  ;;  %v5757_v22 = vld [vmem:[#allocation19 + $0x10] sm:$0xff]  ;;  %p5763_p4 = por %p1131_p0, %p8298_p5 }
 0x14f   : > { %651 = vmatpush1.bf16.msra.mxu0 %v4666_v9  ;;  %v4676_v18 = vld [vmem:[%s475_s25] sm:$0xff]   ;;  %v4678_v19 = vld [vmem:[%s475_s25 + $0x8] sm:$0xff]   ;;  %8295 = vst [vmem:[#allocation34_spill] sm:$0xff] %v5753_v20  ;;  %8297 = vst [vmem:[#allocation36_spill] sm:$0xff] %v5757_v22 }
 0x150   : > { %4360 = vmatpush3.bf16.msra.mxu1 %v4665_v8  ;;  %4365 = vmatprep.subr.bf16.mxu0 %v4672_v14  ;;  %v5755_v21 = vld [vmem:[#allocation19 + $0x8] sm:$0xff]  ;;  %v5767_v23 = vld [vmem:[#allocation19 + $0x18] sm:$0xff]  ;;  %v5769_v24 = vld [vmem:[#allocation19 + $0x20] sm:$0xff] }
 0x151   : > { %871 = vmatprep.subr.bf16.mxu1 %v4671_v13  ;;  %8296 = vst [vmem:[#allocation35_spill] sm:$0xff] %v5755_v21  ;;  %8300 = vst [vmem:[#allocation37_spill] sm:$0xff] %v5767_v23  ;;  %v5771_v25 = vld [vmem:[#allocation19 + $0x28] sm:$0xff]  ;;  %v5773_v26 = vld [vmem:[#allocation19 + $0x30] sm:$0xff] }
 0x152   : > { %4031 = vmatmul.mubr.msk.bf16.vlgmr.msra.gmra.mrb[0].mxu0 %vm641_vm0, %v4667_v10  ;;  %8301 = vst [vmem:[#allocation38_spill] sm:$0xff] %v5769_v24  ;;  %8302 = vst [vmem:[#allocation39_spill] sm:$0xff] %v5771_v25  ;;  %v5775_v27 = vld [vmem:[#allocation19 + $0x38] sm:$0xff]  ;;  %v5777_v28 = vld [vmem:[#allocation19 + $0x40] sm:$0xff] }
 0x153   : > { %4362 = vmatmul.mubr.msk.bf16.vlgmr.msra.gmra.mrb[0].mxu1 %vm641_vm0, %v4668_v11  ;;  %4366 = vmatpush3.bf16.msra.mxu0 %v4672_v14  ;;  %8303 = vst [vmem:[#allocation40_spill] sm:$0xff] %v5773_v26  ;;  %8304 = vst [vmem:[#allocation41_spill] sm:$0xff] %v5775_v27  ;;  %v5779_v29 = vld [vmem:[#allocation19 + $0x48] sm:$0xff]  ;;  %v5781_v30 = vld [vmem:[#allocation19 + $0x50] sm:$0xff] }
 0x154   : > { %872 = vmatpush1.bf16.msra.mxu1 %v4669_v12  ;;  %690 = vmatprep.mubr.bf16.mxu0 %v5259_v5  ;;  %8305 = vst [vmem:[#allocation42_spill] sm:$0xff] %v5777_v28  ;;  %8306 = vst [vmem:[#allocation43_spill] sm:$0xff] %v5779_v29  ;;  %v5783_v31 = vld [vmem:[#allocation19 + $0x58] sm:$0xff]  ;;  %v5785_v32 = vld [vmem:[#allocation19 + $0x60] sm:$0xff] }
 0x155   : > { %873 = vmatprep.subr.bf16.mxu1 %v4675_v15  ;;  %903 = vmatprep.mubr.bf16.mxu1 %v5259_v5  ;;  %8307 = vst [vmem:[#allocation44_spill] sm:$0xff] %v5781_v30  ;;  %8308 = vst [vmem:[#allocation45_spill] sm:$0xff] %v5783_v31  ;;  %v5787_v33 = vld [vmem:[#allocation19 + $0x68] sm:$0xff]  ;;  %v5789_v34 = vld [vmem:[#allocation19 + $0x70] sm:$0xff] }
 0x156   : > { %4367 = vmatprep.subr.bf16.mxu0 %v4677_v17  ;;  %8309 = vst [vmem:[#allocation46_spill] sm:$0xff] %v5785_v32  ;;  %8310 = vst [vmem:[#allocation47_spill] sm:$0xff] %v5787_v33  ;;  %v5791_v35 = vld [vmem:[#allocation19 + $0x78] sm:$0xff]  ;;  %v5793_v36 = vld [vmem:[#allocation19 + $0x80] sm:$0xff] }
 0x157   : > { %4368 = vmatpush3.bf16.msra.mxu0 %v4677_v17  ;;  %8311 = vst [vmem:[#allocation48_spill] sm:$0xff] %v5789_v34  ;;  %8312 = vst [vmem:[#allocation49_spill] sm:$0xff] %v5791_v35  ;;  %v5795_v37 = vld [vmem:[#allocation19 + $0x88] sm:$0xff]  ;;  %v5797_v38 = vld [vmem:[#allocation19 + $0x90] sm:$0xff] }
 0x158   : > { %874 = vmatpush1.bf16.msra.mxu1 %v4673_v16  ;;  %8313 = vst [vmem:[#allocation50_spill] sm:$0xff] %v5793_v36  ;;  %8314 = vst [vmem:[#allocation51_spill] sm:$0xff] %v5795_v37  ;;  %v5799_v39 = vld [vmem:[#allocation19 + $0x98] sm:$0xff]  ;;  %v5801_v40 = vld [vmem:[#allocation19 + $0xa0] sm:$0xff] }
 0x159   : > { %8315 = vst [vmem:[#allocation52_spill] sm:$0xff] %v5797_v38  ;;  %8316 = vst [vmem:[#allocation53_spill] sm:$0xff] %v5799_v39  ;;  %v5803_v41 = vld [vmem:[#allocation19 + $0xa8] sm:$0xff]  ;;  %v5805_v42 = vld [vmem:[#allocation19 + $0xb0] sm:$0xff] }
 0x15a   : > { %4032 = vmatmul.mubr.msk.bf16.gmra.mrb[4].mxu0 %vm641_vm0, %v4668_v11  ;;  %8317 = vst [vmem:[#allocation54_spill] sm:$0xff] %v5801_v40  ;;  %8318 = vst [vmem:[#allocation55_spill] sm:$0xff] %v5803_v41  ;;  %v5807_v43 = vld [vmem:[#allocation19 + $0xb8] sm:$0xff]  ;;  %v5809_v44 = vld [vmem:[#allocation19 + $0xc0] sm:$0xff] }
 0x15b   : > { %4051 = vmatmul.mubr.msk.bf16.vlgmr.msra.gmra.mrb[4].mxu1 %vm641_vm0, %v4676_v18  ;;  %4369 = vmatprep.mubr.msk.bf16.mxu0 %vm641_vm0, %v4676_v18  ;;  %8319 = vst [vmem:[#allocation56_spill] sm:$0xff] %v5805_v42  ;;  %8320 = vst [vmem:[#allocation57_spill] sm:$0xff] %v5807_v43  ;;  %v5811_v45 = vld [vmem:[#allocation19 + $0xc8] sm:$0xff]  ;;  %v5813_v46 = vld [vmem:[#allocation19 + $0xd0] sm:$0xff] }
 0x15c   : > { %913 = vmatprep.mubr.bf16.mxu1 %v5259_v5  ;;  %8321 = vst [vmem:[#allocation58_spill] sm:$0xff] %v5809_v44  ;;  %8322 = vst [vmem:[#allocation59_spill] sm:$0xff] %v5811_v45  ;;  %v5815_v47 = vld [vmem:[#allocation19 + $0xd8] sm:$0xff]  ;;  %v5817_v48 = vld [vmem:[#allocation19 + $0xe0] sm:$0xff] }
 0x15d   : > { %8323 = vst [vmem:[#allocation60_spill] sm:$0xff] %v5813_v46  ;;  %8324 = vst [vmem:[#allocation61_spill] sm:$0xff] %v5815_v47  ;;  %v5819_v49 = vld [vmem:[#allocation19 + $0xe8] sm:$0xff]  ;;  %v5821_v50 = vld [vmem:[#allocation19 + $0xf0] sm:$0xff] }
 0x15e   : > { %8325 = vst [vmem:[#allocation62_spill] sm:$0xff] %v5817_v48  ;;  %8326 = vst [vmem:[#allocation63_spill] sm:$0xff] %v5819_v49  ;;  %v5823_v51 = vld [vmem:[#allocation19 + $0xf8] sm:$0xff]  ;;  %v5825_v52 = vld [vmem:[#allocation19 + $0x100] sm:$0xff] }
 0x15f   : > { %8327 = vst [vmem:[#allocation64_spill] sm:$0xff] %v5821_v50  ;;  %8328 = vst [vmem:[#allocation65_spill] sm:$0xff] %v5823_v51  ;;  %v5827_v53 = vld [vmem:[#allocation19 + $0x108] sm:$0xff]  ;;  %v5829_v54 = vld [vmem:[#allocation19 + $0x110] sm:$0xff] }
 0x160   : > { %8329 = vst [vmem:[#allocation66_spill] sm:$0xff] %v5825_v52  ;;  %8330 = vst [vmem:[#allocation67_spill] sm:$0xff] %v5827_v53  ;;  %v5831_v55 = vld [vmem:[#allocation19 + $0x118] sm:$0xff]  ;;  %v5833_v56 = vld [vmem:[#allocation19 + $0x120] sm:$0xff] }
 0x161   : > { %8331 = vst [vmem:[#allocation68_spill] sm:$0xff] %v5829_v54  ;;  %8332 = vst [vmem:[#allocation69_spill] sm:$0xff] %v5831_v55  ;;  %v5835_v57 = vld [vmem:[#allocation19 + $0x128] sm:$0xff]  ;;  %v5837_v58 = vld [vmem:[#allocation19 + $0x130] sm:$0xff] }
 0x162   : > { %4370 = vmatmul.mubr.msk.bf16.vlgmr.msra.gmra.mrb[8].mxu0 %vm641_vm0, %v4678_v19  ;;  %8333 = vst [vmem:[#allocation70_spill] sm:$0xff] %v5833_v56  ;;  %8334 = vst [vmem:[#allocation71_spill] sm:$0xff] %v5835_v57  ;;  %v5839_v59 = vld [vmem:[#allocation19 + $0x138] sm:$0xff]  ;;  %v5841_v60 = vld [vmem:[#allocation19 + $0x140] sm:$0xff] }
 0x163   : > { %4052 = vmatmul.mubr.msk.bf16.gmra.mrb[8].mxu1 %vm641_vm0, %v4678_v19  ;;  %8335 = vst [vmem:[#allocation72_spill] sm:$0xff] %v5837_v58  ;;  %8336 = vst [vmem:[#allocation73_spill] sm:$0xff] %v5839_v59  ;;  %v5843_v61 = vld [vmem:[#allocation19 + $0x148] sm:$0xff]  ;;  %v5845_v62 = vld [vmem:[#allocation19 + $0x150] sm:$0xff] }
 0x164   : > { %8337 = vst [vmem:[#allocation74_spill] sm:$0xff] %v5841_v60  ;;  %8338 = vst [vmem:[#allocation75_spill] sm:$0xff] %v5843_v61  ;;  %v5847_v63 = vld [vmem:[#allocation19 + $0x158] sm:$0xff]  ;;  %v5849_v0 = vld [vmem:[#allocation19 + $0x160] sm:$0xff] }
 0x165   : > { %8339 = vst [vmem:[#allocation76_spill] sm:$0xff] %v5845_v62  ;;  %8340 = vst [vmem:[#allocation77_spill] sm:$0xff] %v5847_v63  ;;  %v5851_v1 = vld [vmem:[#allocation19 + $0x168] sm:$0xff]  ;;  %v5853_v2 = vld [vmem:[#allocation19 + $0x170] sm:$0xff] }
 0x166   : > { %8341 = vst [vmem:[#allocation78_spill] sm:$0xff] %v5849_v0  ;;  %8342 = vst [vmem:[#allocation79_spill] sm:$0xff] %v5851_v1  ;;  %v5855_v3 = vld [vmem:[#allocation19 + $0x178] sm:$0xff]  ;;  %v5857_v4 = vld [vmem:[#allocation19 + $0x180] sm:$0xff] }
 0x167   : > { %8343 = vst [vmem:[#allocation80_spill] sm:$0xff] %v5853_v2  ;;  %8344 = vst [vmem:[#allocation81_spill] sm:$0xff] %v5855_v3  ;;  %v5859_v5 = vld [vmem:[#allocation19 + $0x188] sm:$0xff]  ;;  %v5861_v6 = vld [vmem:[#allocation19 + $0x190] sm:$0xff] }
 0x168   : > { %8345 = vst [vmem:[#allocation82_spill] sm:$0xff] %v5857_v4  ;;  %8346 = vst [vmem:[#allocation83_spill] sm:$0xff] %v5859_v5  ;;  %v5863_v7 = vld [vmem:[#allocation19 + $0x198] sm:$0xff]  ;;  %v5865_v8 = vld [vmem:[#allocation19 + $0x1a0] sm:$0xff] }
 0x169   : > { %8347 = vst [vmem:[#allocation84_spill] sm:$0xff] %v5861_v6  ;;  %8348 = vst [vmem:[#allocation85_spill] sm:$0xff] %v5863_v7  ;;  %v5867_v9 = vld [vmem:[#allocation19 + $0x1a8] sm:$0xff]  ;;  %v5869_v10 = vld [vmem:[#allocation19 + $0x1b0] sm:$0xff] }
 0x16a   : > { %8349 = vst [vmem:[#allocation86_spill] sm:$0xff] %v5865_v8  ;;  %8350 = vst [vmem:[#allocation87_spill] sm:$0xff] %v5867_v9  ;;  %v5871_v11 = vld [vmem:[#allocation19 + $0x1b8] sm:$0xff]  ;;  %v5873_v12 = vld [vmem:[#allocation19 + $0x1c0] sm:$0xff] }
 0x16b   : > { %8351 = vst [vmem:[#allocation88_spill] sm:$0xff] %v5869_v10  ;;  %8352 = vst [vmem:[#allocation89_spill] sm:$0xff] %v5871_v11  ;;  %v5875_v13 = vld [vmem:[#allocation19 + $0x1c8] sm:$0xff]  ;;  %v5877_v14 = vld [vmem:[#allocation19 + $0x1d0] sm:$0xff] }
 0x16c   : > { %8353 = vst [vmem:[#allocation90_spill] sm:$0xff] %v5873_v12  ;;  %8354 = vst [vmem:[#allocation91_spill] sm:$0xff] %v5875_v13  ;;  %v5879_v15 = vld [vmem:[#allocation19 + $0x1d8] sm:$0xff]  ;;  %v5881_v16 = vld [vmem:[#allocation19 + $0x1e0] sm:$0xff] }
 0x16d   : > { %8355 = vst [vmem:[#allocation92_spill] sm:$0xff] %v5877_v14  ;;  %8356 = vst [vmem:[#allocation93_spill] sm:$0xff] %v5879_v15  ;;  %v5883_v17 = vld [vmem:[#allocation19 + $0x1e8] sm:$0xff]  ;;  %v5885_v18 = vld [vmem:[#allocation19 + $0x1f0] sm:$0xff] }
 0x16e   : > { %8357 = vst [vmem:[#allocation94_spill] sm:$0xff] %v5881_v16  ;;  %8358 = vst [vmem:[#allocation95_spill] sm:$0xff] %v5883_v17  ;;  %v5887_v19 = vld [vmem:[#allocation19 + $0x1f8] sm:$0xff]  ;;  %v5889_v6 = vld [vmem:[#allocation19 + $0x200] sm:$0xff] }
 0x16f   : > { %8359 = vst [vmem:[#allocation96_spill] sm:$0xff] %v5885_v18  ;;  %8360 = vst [vmem:[#allocation97_spill] sm:$0xff] %v5887_v19  ;;  %v5891_v9 = vld [vmem:[#allocation19 + $0x208] sm:$0xff]  ;;  %v5893_v0 = vld [vmem:[#allocation19 + $0x210] sm:$0xff] }
 0x170   : > { %8361 = vst [vmem:[#allocation98_spill] sm:$0xff] %v5889_v6  ;;  %8362 = vst [vmem:[#allocation99_spill] sm:$0xff] %v5891_v9  ;;  %v5895_v12 = vld [vmem:[#allocation19 + $0x218] sm:$0xff]  ;;  %v5897_v3 = vld [vmem:[#allocation19 + $0x220] sm:$0xff] }
 0x171   : > { %8363 = vst [vmem:[#allocation100_spill] sm:$0xff] %v5893_v0  ;;  %8364 = vst [vmem:[#allocation101_spill] sm:$0xff] %v5895_v12  ;;  %v5899_v58 = vld [vmem:[#allocation19 + $0x228] sm:$0xff]  ;;  %v5901_v15 = vld [vmem:[#allocation19 + $0x230] sm:$0xff] }
 0x172   : > { %8365 = vst [vmem:[#allocation102_spill] sm:$0xff] %v5897_v3  ;;  %8366 = vst [vmem:[#allocation103_spill] sm:$0xff] %v5899_v58  ;;  %v5903_v61 = vld [vmem:[#allocation19 + $0x238] sm:$0xff]  ;;  %v5905_v52 = vld [vmem:[#allocation19 + $0x240] sm:$0xff] }
 0x173   : > { %8367 = vst [vmem:[#allocation104_spill] sm:$0xff] %v5901_v15  ;;  %8368 = vst [vmem:[#allocation105_spill] sm:$0xff] %v5903_v61  ;;  %v5907_v18 = vld [vmem:[#allocation19 + $0x248] sm:$0xff]  ;;  %v5909_v55 = vld [vmem:[#allocation19 + $0x250] sm:$0xff] }
 0x174   : > { %8369 = vst [vmem:[#allocation106_spill] sm:$0xff] %v5905_v52  ;;  %8370 = vst [vmem:[#allocation107_spill] sm:$0xff] %v5907_v18  ;;  %v5911_v46 = vld [vmem:[#allocation19 + $0x258] sm:$0xff]  ;;  %v5913_v9 = vld [vmem:[#allocation19 + $0x260] sm:$0xff] }
 0x175   : > { %8371 = vst [vmem:[#allocation108_spill] sm:$0xff] %v5909_v55  ;;  %8372 = vst [vmem:[#allocation109_spill] sm:$0xff] %v5911_v46  ;;  %v5915_v49 = vld [vmem:[#allocation19 + $0x268] sm:$0xff]  ;;  %v5917_v40 = vld [vmem:[#allocation19 + $0x270] sm:$0xff] }
 0x176   : > { %8373 = vst [vmem:[#allocation110_spill] sm:$0xff] %v5913_v9  ;;  %8374 = vst [vmem:[#allocation111_spill] sm:$0xff] %v5915_v49  ;;  %v5919_v3 = vld [vmem:[#allocation19 + $0x278] sm:$0xff]  ;;  %v5921_v43 = vld [vmem:[#allocation19 + $0x280] sm:$0xff] }
 0x177   : > { %8375 = vst [vmem:[#allocation112_spill] sm:$0xff] %v5917_v40  ;;  %8376 = vst [vmem:[#allocation113_spill] sm:$0xff] %v5919_v3  ;;  %v5923_v34 = vld [vmem:[#allocation19 + $0x288] sm:$0xff]  ;;  %v5925_v61 = vld [vmem:[#allocation19 + $0x290] sm:$0xff] }
 0x178   : > { %8377 = vst [vmem:[#allocation114_spill] sm:$0xff] %v5921_v43  ;;  %8378 = vst [vmem:[#allocation115_spill] sm:$0xff] %v5923_v34  ;;  %v5927_v37 = vld [vmem:[#allocation19 + $0x298] sm:$0xff]  ;;  %v5929_v28 = vld [vmem:[#allocation19 + $0x2a0] sm:$0xff] }
 0x179   : > { %8379 = vst [vmem:[#allocation116_spill] sm:$0xff] %v5925_v61  ;;  %8380 = vst [vmem:[#allocation117_spill] sm:$0xff] %v5927_v37  ;;  %v5931_v55 = vld [vmem:[#allocation19 + $0x2a8] sm:$0xff]  ;;  %v5933_v31 = vld [vmem:[#allocation19 + $0x2b0] sm:$0xff] }
 0x17a   : > { %8381 = vst [vmem:[#allocation118_spill] sm:$0xff] %v5929_v28  ;;  %8382 = vst [vmem:[#allocation119_spill] sm:$0xff] %v5931_v55  ;;  %v5935_v22 = vld [vmem:[#allocation19 + $0x2b8] sm:$0xff]  ;;  %v5937_v49 = vld [vmem:[#allocation19 + $0x2c0] sm:$0xff] }
 0x17b   : > { %8383 = vst [vmem:[#allocation120_spill] sm:$0xff] %v5933_v31  ;;  %8384 = vst [vmem:[#allocation121_spill] sm:$0xff] %v5935_v22  ;;  %v5939_v25 = vld [vmem:[#allocation19 + $0x2c8] sm:$0xff]  ;;  %v5941_v3 = vld [vmem:[#allocation19 + $0x2d0] sm:$0xff]  ;;  %v584_v22 = vlaneseq }
 0x17c   : > { %8385 = vst [vmem:[#allocation122_spill] sm:$0xff] %v5937_v49  ;;  %8386 = vst [vmem:[#allocation123_spill] sm:$0xff] %v5939_v25  ;;  %v5943_v43 = vld [vmem:[#allocation19 + $0x2d8] sm:$0xff]  ;;  %v5945_v40 = vld [vmem:[#allocation19 + $0x2e0] sm:$0xff] }
 0x17d   : > { %8387 = vst [vmem:[#allocation124_spill] sm:$0xff] %v5941_v3  ;;  %8388 = vst [vmem:[#allocation125_spill] sm:$0xff] %v5943_v43  ;;  %v5947_v61 = vld [vmem:[#allocation19 + $0x2e8] sm:$0xff]  ;;  %v5949_v37 = vld [vmem:[#allocation19 + $0x2f0] sm:$0xff]  ;;  %v585_v49 = vshrl.u32 %v584_v22, 7 }
 0x17e   : > { %8389 = vst [vmem:[#allocation126_spill] sm:$0xff] %v5945_v40  ;;  %8390 = vst [vmem:[#allocation127_spill] sm:$0xff] %v5947_v61  ;;  %v5951_v28 = vld [vmem:[#allocation19 + $0x2f8] sm:$0xff]  ;;  %v5953_v55 = vld [vmem:[#allocation21] ss:$0 sm:$0xff] }
 0x17f   : > { %8391 = vst [vmem:[#allocation128_spill] sm:$0xff] %v5949_v37  ;;  %8392 = vst [vmem:[#allocation129_spill] sm:$0xff] %v5951_v28  ;;  %v5955_v31 = vld [vmem:[#allocation21 + $0x1] ss:$0 sm:$0xff]  ;;  %v586_v34 = vsub.s32 0, %v585_v49  ;;  %v594_v25 = vsub.s32 2, %v585_v49 }
 0x180   : > { %8393 = vst [vmem:[#allocation130_spill] sm:$0xff] %v5953_v55  ;;  %8394 = vst [vmem:[#allocation131_spill] sm:$0xff] %v5955_v31  ;;  %v582_v18 = vld [vmem:[#allocation15] sm:$0x7]  ;;  %v590_v3 = vsub.s32 1, %v585_v49 }
 0x181   : > { %v587_v9 = vrot.slane %v582_v18, %v586_v34  ;;  %v595_v43 = vrot.slane %v582_v18, %v594_v25  ;;  %v806_v31 = vld [vmem:[#allocation18] sm:$0x7] }
 0x182   : > { %v591_v52 = vrot.slane %v582_v18, %v590_v3 }
 0x225   : > { %v682_v40 = vpop.f32.mrb[0].mxu0 }
 0x226   : > { %v4363_v46 = vpop.f32.mrb[0].mxu1  ;;  %v683_v61 = vadd.f32 %v682_v40, %v587_v9  ;;  %v684_v37 = vpop.f32.mrb[1].mxu0  ;;  %v811_v40 = vrot.slane %v806_v31, %v586_v34 }
 0x227   : > { %v744_v12 = vadd.f32 %v4363_v46, %v595_v43  ;;  %v735_v15 = vpop.f32.mrb[1].mxu1  ;;  %v685_v28 = vadd.f32 %v684_v37, %v591_v52  ;;  %v686_v55 = vpop.f32.mrb[2].mxu0 }
 0x228   : > { %v736_v0 = vadd.f32 %v735_v15, %v595_v43  ;;  %v4364_v58 = vpop.f32.mrb[2].mxu1  ;;  %v687_v22 = vadd.f32 %v686_v55, %v587_v9  ;;  %v688_v16 = vpop.f32.mrb[3].mxu0  ;;  %v815_v15 = vrot.slane %v806_v31, %v590_v3 }
 0x229   : > { %v4304_v17 = vpack.c.bf16 %v744_v12, %v744_v12  ;;  %v747_v6 = vadd.f32 %v4364_v58, %v595_v43  ;;  %v738_v19 = vpop.f32.mrb[3].mxu1  ;;  %v4299_v49 = vpack.c.bf16 %v685_v28, %v683_v61  ;;  %v689_v14 = vadd.f32 %v688_v16, %v591_v52 }
 0x22a   : > { %v4300_v11 = vpack.c.bf16 %v736_v0, %v736_v0  ;;  %v739_v18 = vadd.f32 %v738_v19, %v595_v43 }
 0x22b   : > { %795 = vst [vmem:[#allocation2 + $0x20] sm:$0xf] %v4304_v17  ;;  %v4306_v10 = vpack.c.bf16 %v747_v6, %v747_v6  ;;  %790 = vst [vmem:[#allocation2] sm:$0xff] %v4299_v49  ;;  %v4301_v46 = vpack.c.bf16 %v689_v14, %v687_v22  ;;  %v819_v22 = vrot.slane %v806_v31, %v594_v25 }
 0x22c   : > { %791 = vst [vmem:[#allocation2 + $0x8] sm:$0xf] %v4300_v11  ;;  %v4302_v37 = vpack.c.bf16 %v739_v18, %v739_v18 }
 0x22d   : > { %797 = vst [vmem:[#allocation2 + $0x2c] sm:$0xf] %v4306_v10  ;;  %792 = vst [vmem:[#allocation2 + $0xc] sm:$0xff] %v4301_v46  ;;  %v692_v12 = vpop.f32.mrb[4].mxu0 }
 0x22e   : > { %793 = vst [vmem:[#allocation2 + $0x14] sm:$0xf] %v4302_v37  ;;  %v905_v55 = vpop.f32.mrb[4].mxu1  ;;  %v693_v58 = vadd.f32 %v692_v12, %v587_v9  ;;  %v694_v5 = vpop.f32.mrb[5].mxu0 }
 0x22f   : > { %v906_v13 = vadd.f32 %v905_v55, %v811_v40  ;;  %v907_v28 = vpop.f32.mrb[5].mxu1  ;;  %v695_v61 = vadd.f32 %v694_v5, %v591_v52  ;;  %v696_v43 = vpop.f32.mrb[6].mxu0 }
 0x230   : > { %v908_v0 = vadd.f32 %v907_v28, %v815_v15  ;;  %v909_v16 = vpop.f32.mrb[6].mxu1  ;;  %v697_v6 = vadd.f32 %v696_v43, %v587_v9  ;;  %v698_v17 = vpop.f32.mrb[7].mxu0 }
 0x231   : > { %v910_v34 = vadd.f32 %v909_v16, %v811_v40  ;;  %v911_v11 = vpop.f32.mrb[7].mxu1  ;;  %v4303_v14 = vpack.c.bf16 %v695_v61, %v693_v58  ;;  %v699_v3 = vadd.f32 %v698_v17, %v591_v52 }
 0x232   : > { %v4307_v19 = vpack.c.bf16 %v908_v0, %v906_v13  ;;  %v912_v10 = vadd.f32 %v911_v11, %v815_v15 }
 0x233   : > { %794 = vst [vmem:[#allocation2 + $0x18] sm:$0xff] %v4303_v14  ;;  %v4305_v49 = vpack.c.bf16 %v699_v3, %v697_v6 }
 0x234   : > { %1013 = vst [vmem:[#allocation3] sm:$0xff] %v4307_v19  ;;  %v4309_v18 = vpack.c.bf16 %v912_v10, %v910_v34 }
 0x235   : > { %796 = vst [vmem:[#allocation2 + $0x24] sm:$0xff] %v4305_v49  ;;  %v4371_v5 = vpop.f32.mrb[8].mxu0 }
 0x236   : > { %1015 = vst [vmem:[#allocation3 + $0xc] sm:$0xff] %v4309_v18  ;;  %v915_v46 = vpop.f32.mrb[8].mxu1  ;;  %v967_v12 = vadd.f32 %v4371_v5, %v819_v22  ;;  %v958_v9 = vpop.f32.mrb[9].mxu0 }
 0x237   : > { %v916_v37 = vadd.f32 %v915_v46, %v811_v40  ;;  %v917_v55 = vpop.f32.mrb[9].mxu1  ;;  %v959_v43 = vadd.f32 %v958_v9, %v819_v22  ;;  %v4372_v58 = vpop.f32.mrb[10].mxu0 }
 0x238   : > { %v918_v28 = vadd.f32 %v917_v55, %v815_v15  ;;  %v919_v16 = vpop.f32.mrb[10].mxu1  ;;  %v4312_v13 = vpack.c.bf16 %v967_v12, %v967_v12  ;;  %v970_v61 = vadd.f32 %v4372_v58, %v819_v22  ;;  %v961_v31 = vpop.f32.mrb[11].mxu0  ;;  %1135 = sbr.rel (!%p5763_p4) target bundleno = 1895 (0x767), region = 112 }
 0x239   : > { %v920_v52 = vadd.f32 %v919_v16, %v811_v40  ;;  %v921_v25 = vpop.f32.mrb[11].mxu1  ;;  %v4308_v6 = vpack.c.bf16 %v959_v43, %v959_v43  ;;  %v962_v17 = vadd.f32 %v961_v31, %v819_v22 }
 0x23a   : > { %v4311_v0 = vpack.c.bf16 %v918_v28, %v916_v37  ;;  %v922_v34 = vadd.f32 %v921_v25, %v815_v15  ;;  %1018 = vst [vmem:[#allocation3 + $0x20] sm:$0xf] %v4312_v13  ;;  %v4314_v11 = vpack.c.bf16 %v970_v61, %v970_v61 }
 0x23b   : > { %1014 = vst [vmem:[#allocation3 + $0x8] sm:$0xf] %v4308_v6  ;;  %v4310_v19 = vpack.c.bf16 %v962_v17, %v962_v17 }
 0x23c   : > { %1017 = vst [vmem:[#allocation3 + $0x18] sm:$0xff] %v4311_v0  ;;  %v4313_v14 = vpack.c.bf16 %v922_v34, %v920_v52  ;;  %1020 = vst [vmem:[#allocation3 + $0x2c] sm:$0xf] %v4314_v11 }
 0x23d   : > { %1016 = vst [vmem:[#allocation3 + $0x14] sm:$0xf] %v4310_v19 }
 0x23e   : > { %1019 = vst [vmem:[#allocation3 + $0x24] sm:$0xff] %v4313_v14 }
 0x23f   : > { %v5961_v40 = vcombine.high %v5753_v20, %v5767_v23  ;;  %v5965_v15 = vcombine.low %v5753_v20, %v5767_v23  ;;  %v5969_v3 = vcombine.high %v5773_v26, %v5779_v29  ;;  %v5975_v10 = vcombine.low %v5773_v26, %v5779_v29  ;;  %v6020_v28 = vld [vmem:[#allocation5] sm:$0xff]  ;;  %v8459_v26 = vld [vmem:[#allocation112_spill] sm:$0xff]  ;;  %v8466_v23 = vld [vmem:[#allocation121_spill] sm:$0xff]  ;;  %s6533_s13 = sshll.u32 %s5363_s27, 2 }
 0x240   : > { %v5979_v22 = vcombine.high %v5755_v21, %v5769_v24  ;;  %v5983_v49 = vcombine.low %v5755_v21, %v5769_v24  ;;  %v5988_v18 = vcombine.high %v5785_v32, %v5791_v35  ;;  %v5992_v46 = vcombine.high %v5775_v27, %v5781_v30  ;;  %8405 = vst [vmem:[#allocation142_spill] sm:$0xff] %v6020_v28  ;;  %v8458_v24 = vld [vmem:[#allocation115_spill] sm:$0xff]  ;;  %p1805_p13 = scmp.lt.s32.totalorder %s6533_s13, 9  ;;  %p1810_p10 = scmp.ge.s32.totalorder %s6533_s13, 3 }
 0x241   : > { %8395 = vst [vmem:[#allocation132_spill] sm:$0xff] %v5961_v40  ;;  %8396 = vst [vmem:[#allocation133_spill] sm:$0xff] %v5965_v15  ;;  %1620 = vmatprep.subr.bf16.mxu0 %v5961_v40  ;;  %v5998_v5 = vcombine.low %v5775_v27, %v5781_v30  ;;  %v6003_v37 = vcombine.low %v5785_v32, %v5791_v35  ;;  %v6008_v12 = vcombine.high %v5787_v33, %v5793_v36  ;;  %v8450_v30 = vld [vmem:[#allocation109_spill] sm:$0xff]  ;;  %v8451_v32 = vld [vmem:[#allocation106_spill] sm:$0xff]  ;;  %s2002_s3 = sadd.s32 1, %s6533_s13  ;;  %s2200_s11 = sadd.s32 2, %s6533_s13 }
 0x242   : > { %1621 = vmatpush1.bf16.msra.mxu0 %v5965_v15  ;;  %8397 = vst [vmem:[#allocation134_spill] sm:$0xff] %v5975_v10  ;;  %8398 = vst [vmem:[#allocation135_spill] sm:$0xff] %v5979_v22  ;;  %1661 = vmatprep.subr.bf16.mxu1 %v5979_v22  ;;  %v6013_v55 = vcombine.high %v5797_v38, %v5803_v41  ;;  %v6018_v9 = vcombine.low %v5787_v33, %v5793_v36  ;;  %v8444_v33 = vld [vmem:[#allocation100_spill] sm:$0xff]  ;;  %s1806_s15 = scalar_select %p1805_p13, 1, 0 }
 0x243   : > { %8399 = vst [vmem:[#allocation136_spill] sm:$0xff] %v5983_v49  ;;  %1622 = vmatprep.subr.bf16.mxu0 %v5969_v3  ;;  %8400 = vst [vmem:[#allocation137_spill] sm:$0xff] %v5992_v46  ;;  %1662 = vmatpush1.bf16.msra.mxu1 %v5983_v49  ;;  %v6025_v43 = vcombine.low %v5797_v38, %v5803_v41  ;;  %v6030_v16 = vcombine.high %v5799_v39, %v5805_v42  ;;  %v8443_v41 = vld [vmem:[#allocation103_spill] sm:$0xff]  ;;  %s1811_s24 = scalar_select %p1810_p10, 1, 0 }
 0x244   : > { %8401 = vst [vmem:[#allocation138_spill] sm:$0xff] %v5998_v5  ;;  %8402 = vst [vmem:[#allocation139_spill] sm:$0xff] %v6003_v37  ;;  %1663 = vmatprep.subr.bf16.mxu1 %v5992_v46  ;;  %v6035_v58 = vcombine.high %v5809_v44, %v5815_v47  ;;  %v6039_v13 = vpack.c.bf16 %v6020_v28, %v6020_v28  ;;  %v6044_v52 = vcombine.low %v5799_v39, %v5805_v42  ;;  %v8436_v39 = vld [vmem:[#allocation94_spill] sm:$0xff]  ;;  %p2003_p7 = scmp.lt.s32.totalorder %s2002_s3, 9  ;;  %p2008_p6 = scmp.ge.s32.totalorder %s2002_s3, 3 }
 0x245   : > { %8403 = vst [vmem:[#allocation140_spill] sm:$0xff] %v6008_v12  ;;  %8404 = vst [vmem:[#allocation141_spill] sm:$0xff] %v6018_v9  ;;  %v6049_v61 = vcombine.low %v5809_v44, %v5815_v47  ;;  %v6054_v25 = vcombine.high %v5811_v45, %v5817_v48  ;;  %v6059_v31 = vcombine.high %v5821_v50, %v5827_v53  ;;  %v8435_v47 = vld [vmem:[#allocation97_spill] sm:$0xff]  ;;  %v8467_v28 = vld [vmem:[#allocation118_spill] sm:$0xff]  ;;  %p2201_p9 = scmp.lt.s32.totalorder %s2200_s11, 9  ;;  %p2206_p1 = scmp.ge.s32.totalorder %s2200_s11, 3 }
 0x246   : > { %1623 = vmatpush1.bf16.msra.mxu0 %v5975_v10  ;;  %8406 = vst [vmem:[#allocation143_spill] sm:$0xff] %v6025_v43  ;;  %8407 = vst [vmem:[#allocation144_spill] sm:$0xff] %v6030_v16  ;;  %1652 = vmatprep.mubr.bf16.mxu0 %v6039_v13  ;;  %v6066_v0 = vcombine.low %v5811_v45, %v5817_v48  ;;  %v6071_v6 = vcombine.low %v5821_v50, %v5827_v53  ;;  %v8427_v53 = vld [vmem:[#allocation91_spill] sm:$0xff]  ;;  %v8428_v45 = vld [vmem:[#allocation88_spill] sm:$0xff]  ;;  %s2004_s26 = scalar_select %p2003_p7, 1, 0 }
 0x247   : > { %1624 = vmatprep.subr.bf16.mxu0 %v5988_v18  ;;  %1664 = vmatpush1.bf16.msra.mxu1 %v5998_v5  ;;  %8408 = vst [vmem:[#allocation145_spill] sm:$0xff] %v6044_v52  ;;  %8409 = vst [vmem:[#allocation146_spill] sm:$0xff] %v6049_v61  ;;  %v6076_v34 = vcombine.high %v5823_v51, %v5829_v54  ;;  %v6081_v17 = vcombine.high %v5833_v56, %v5839_v59  ;;  %s2009_s29 = scalar_select %p2008_p6, 1, 0 }
 0x248   : > { %1665 = vmatprep.subr.bf16.mxu1 %v6008_v12  ;;  %8410 = vst [vmem:[#allocation147_spill] sm:$0xff] %v6054_v25  ;;  %1693 = vmatprep.mubr.bf16.mxu1 %v6039_v13  ;;  %8411 = vst [vmem:[#allocation148_spill] sm:$0xff] %v6066_v0  ;;  %v6086_v11 = vcombine.low %v5823_v51, %v5829_v54  ;;  %v6091_v14 = vcombine.low %v5833_v56, %v5839_v59  ;;  %s2202_s14 = scalar_select %p2201_p9, 1, 0 }
 0x249   : > { %8412 = vst [vmem:[#allocation149_spill] sm:$0xff] %v6071_v6  ;;  %8413 = vst [vmem:[#allocation150_spill] sm:$0xff] %v6076_v34  ;;  %v6096_v19 = vcombine.high %v5835_v57, %v5841_v60  ;;  %v6101_v50 = vcombine.high %v5845_v62, %v5851_v1  ;;  %v6106_v51 = vcombine.low %v5835_v57, %v5841_v60  ;;  %s2207_s19 = scalar_select %p2206_p1, 1, 0 }
 0x24a   : > { %1625 = vmatpush1.bf16.msra.mxu0 %v6003_v37  ;;  %8414 = vst [vmem:[#allocation151_spill] sm:$0xff] %v6081_v17  ;;  %8415 = vst [vmem:[#allocation152_spill] sm:$0xff] %v6086_v11  ;;  %v6111_v56 = vcombine.low %v5845_v62, %v5851_v1  ;;  %v6116_v59 = vcombine.high %v5847_v63, %v5853_v2  ;;  %v6121_v54 = vcombine.high %v5857_v4, %v5863_v7  ;;  %v8425_v1 = vld [vmem:[#allocation83_spill] sm:$0xff]  ;;  %s2397_s22 = sadd.s32 3, %s6533_s13 }
 0x24b   : > { %1626 = vmatprep.subr.bf16.mxu0 %v6013_v55  ;;  %1666 = vmatpush1.bf16.msra.mxu1 %v6018_v9  ;;  %8416 = vst [vmem:[#allocation153_spill] sm:$0xff] %v6091_v14  ;;  %8417 = vst [vmem:[#allocation154_spill] sm:$0xff] %v6096_v19  ;;  %v6126_v57 = vcombine.low %v5847_v63, %v5853_v2  ;;  %v6131_v62 = vcombine.low %v5857_v4, %v5863_v7  ;;  %v8432_v7 = vld [vmem:[#allocation92_spill] sm:$0xff]  ;;  %v8433_v2 = vld [vmem:[#allocation89_spill] sm:$0xff]  ;;  %p2398_p11 = scmp.lt.s32.totalorder %s2397_s22, 9  ;;  %p2403_p2 = scmp.ge.s32.totalorder %s2397_s22, 3 }
 0x24c   : > { %1667 = vmatprep.subr.bf16.mxu1 %v6030_v16  ;;  %8418 = vst [vmem:[#allocation155_spill] sm:$0xff] %v6101_v50  ;;  %8419 = vst [vmem:[#allocation156_spill] sm:$0xff] %v6106_v51  ;;  %v6136_v60 = vcombine.high %v8425_v1, %v5865_v8  ;;  %v6141_v48 = vcombine.high %v8428_v45, %v8427_v53  ;;  %v6146_v63 = vcombine.low %v8425_v1, %v5865_v8  ;;  %v8441_v8 = vld [vmem:[#allocation95_spill] sm:$0xff] }
 0x24d   : > { %8420 = vst [vmem:[#allocation157_spill] sm:$0xff] %v6111_v56  ;;  %8421 = vst [vmem:[#allocation158_spill] sm:$0xff] %v6116_v59  ;;  %v6151_v4 = vcombine.low %v8428_v45, %v8427_v53  ;;  %v6156_v44 = vcombine.high %v8433_v2, %v8432_v7  ;;  %v6161_v42 = vcombine.high %v8436_v39, %v8435_v47  ;;  %v8440_v53 = vld [vmem:[#allocation98_spill] sm:$0xff]  ;;  %s2399_s16 = scalar_select %p2398_p11, 1, 0 }
 0x24e   : > { %1627 = vmatpush1.bf16.msra.mxu0 %v6025_v43  ;;  %8422 = vst [vmem:[#allocation159_spill] sm:$0xff] %v6121_v54  ;;  %8423 = vst [vmem:[#allocation160_spill] sm:$0xff] %v6126_v57  ;;  %v6166_v1 = vcombine.low %v8433_v2, %v8432_v7  ;;  %v6171_v45 = vcombine.low %v8436_v39, %v8435_v47  ;;  %v6176_v38 = vcombine.high %v8441_v8, %v8440_v53  ;;  %v8447_v47 = vld [vmem:[#allocation104_spill] sm:$0xff]  ;;  %v8448_v7 = vld [vmem:[#allocation101_spill] sm:$0xff]  ;;  %s2404_s17 = scalar_select %p2403_p2, 1, 0 }
 0x24f   : > { %1628 = vmatprep.subr.bf16.mxu0 %v6035_v58  ;;  %1668 = vmatpush1.bf16.msra.mxu1 %v6044_v52  ;;  %8424 = vst [vmem:[#allocation161_spill] sm:$0xff] %v6131_v62  ;;  %8426 = vst [vmem:[#allocation162_spill] sm:$0xff] %v6136_v60  ;;  %v6181_v36 = vcombine.high %v8444_v33, %v8443_v41  ;;  %v6186_v2 = vcombine.low %v8441_v8, %v8440_v53  ;;  %v8456_v53 = vld [vmem:[#allocation107_spill] sm:$0xff] }
 0x250   : > { %1669 = vmatprep.subr.bf16.mxu1 %v6054_v25  ;;  %8429 = vst [vmem:[#allocation163_spill] sm:$0xff] %v6141_v48  ;;  %8430 = vst [vmem:[#allocation164_spill] sm:$0xff] %v6146_v63  ;;  %v6191_v39 = vcombine.low %v8444_v33, %v8443_v41  ;;  %v6196_v27 = vcombine.high %v8448_v7, %v8447_v47  ;;  %v6201_v35 = vcombine.high %v8451_v32, %v8450_v30  ;;  %v8455_v41 = vld [vmem:[#allocation110_spill] sm:$0xff] }
 0x251   : > { %8431 = vst [vmem:[#allocation165_spill] sm:$0xff] %v6151_v4  ;;  %8434 = vst [vmem:[#allocation166_spill] sm:$0xff] %v6156_v44  ;;  %v6206_v8 = vcombine.low %v8448_v7, %v8447_v47  ;;  %v6211_v33 = vcombine.low %v8451_v32, %v8450_v30  ;;  %v6216_v21 = vcombine.high %v8456_v53, %v8455_v41  ;;  %v8463_v32 = vld [vmem:[#allocation116_spill] sm:$0xff]  ;;  %v8464_v7 = vld [vmem:[#allocation113_spill] sm:$0xff] }
 0x252   : > { %1629 = vmatpush1.bf16.msra.mxu0 %v6049_v61  ;;  %8437 = vst [vmem:[#allocation167_spill] sm:$0xff] %v6161_v42  ;;  %8438 = vst [vmem:[#allocation168_spill] sm:$0xff] %v6166_v1  ;;  %v6221_v29 = vcombine.high %v8459_v26, %v8458_v24  ;;  %v6226_v47 = vcombine.low %v8456_v53, %v8455_v41  ;;  %v6231_v30 = vcombine.low %v8459_v26, %v8458_v24  ;;  %v8471_v26 = vld [vmem:[#allocation122_spill] sm:$0xff]  ;;  %v8472_v53 = vld [vmem:[#allocation119_spill] sm:$0xff] }
 0x253   : > { %1630 = vmatprep.subr.bf16.mxu0 %v6059_v31  ;;  %1670 = vmatpush1.bf16.msra.mxu1 %v6066_v0  ;;  %8439 = vst [vmem:[#allocation169_spill] sm:$0xff] %v6171_v45  ;;  %8442 = vst [vmem:[#allocation170_spill] sm:$0xff] %v6176_v38  ;;  %v6236_v20 = vcombine.high %v8464_v7, %v8463_v32  ;;  %v6246_v41 = vcombine.low %v8464_v7, %v8463_v32  ;;  %v8480_v7 = vld [vmem:[#allocation128_spill] sm:$0xff] }
 0x254   : > { %1671 = vmatprep.subr.bf16.mxu1 %v6076_v34  ;;  %8445 = vst [vmem:[#allocation171_spill] sm:$0xff] %v6186_v2  ;;  %8446 = vst [vmem:[#allocation172_spill] sm:$0xff] %v6191_v39  ;;  %v6251_v24 = vcombine.low %v8467_v28, %v8466_v23  ;;  %v6266_v32 = vcombine.low %v8472_v53, %v8471_v26 }
 0x255   : > { %8449 = vst [vmem:[#allocation173_spill] sm:$0xff] %v6196_v27  ;;  %8452 = vst [vmem:[#allocation174_spill] sm:$0xff] %v6201_v35 }
 0x256   : > { %1631 = vmatpush1.bf16.msra.mxu0 %v6071_v6  ;;  %8453 = vst [vmem:[#allocation175_spill] sm:$0xff] %v6206_v8  ;;  %8454 = vst [vmem:[#allocation176_spill] sm:$0xff] %v6211_v33 }
 0x257   : > { %1632 = vmatprep.subr.bf16.mxu0 %v6081_v17  ;;  %1672 = vmatpush1.bf16.msra.mxu1 %v6086_v11  ;;  %8457 = vst [vmem:[#allocation177_spill] sm:$0xff] %v6216_v21  ;;  %8460 = vst [vmem:[#allocation178_spill] sm:$0xff] %v6221_v29 }
 0x258   : > { %1673 = vmatprep.subr.bf16.mxu1 %v6096_v19  ;;  %8461 = vst [vmem:[#allocation179_spill] sm:$0xff] %v6226_v47  ;;  %8462 = vst [vmem:[#allocation180_spill] sm:$0xff] %v6231_v30 }
 0x259   : > { %8465 = vst [vmem:[#allocation181_spill] sm:$0xff] %v6236_v20  ;;  %8469 = vst [vmem:[#allocation183_spill] sm:$0xff] %v6246_v41 }
 0x25a   : > { %1633 = vmatpush1.bf16.msra.mxu0 %v6091_v14  ;;  %8470 = vst [vmem:[#allocation184_spill] sm:$0xff] %v6251_v24  ;;  %8477 = vst [vmem:[#allocation187_spill] sm:$0xff] %v6266_v32 }
 0x25b   : > { %1634 = vmatprep.subr.bf16.mxu0 %v6101_v50  ;;  %1674 = vmatpush1.bf16.msra.mxu1 %v6106_v51 }
 0x25c   : > { %1675 = vmatprep.subr.bf16.mxu1 %v6116_v59 }
 0x25e   : > { %1635 = vmatpush1.bf16.msra.mxu0 %v6111_v56 }
 0x25f   : > { %1636 = vmatprep.subr.bf16.mxu0 %v6121_v54  ;;  %1676 = vmatpush1.bf16.msra.mxu1 %v6126_v57 }
 0x260   : > { %1677 = vmatprep.subr.bf16.mxu1 %v6136_v60 }
 0x262   : > { %1637 = vmatpush1.bf16.msra.mxu0 %v6131_v62 }
 0x263   : > { %1638 = vmatprep.subr.bf16.mxu0 %v6141_v48  ;;  %1678 = vmatpush1.bf16.msra.mxu1 %v6146_v63 }
 0x264   : > { %1679 = vmatprep.subr.bf16.mxu1 %v6156_v44  ;;  %v8488_v44 = vld [vmem:[#allocation42_spill] sm:$0xff] }
 0x266   : > { %1639 = vmatpush1.bf16.msra.mxu0 %v6151_v4 }
 0x267   : > { %1640 = vmatprep.subr.bf16.mxu0 %v6161_v42  ;;  %1680 = vmatpush1.bf16.msra.mxu1 %v6166_v1  ;;  %v8484_v1 = vld [vmem:[#allocation36_spill] sm:$0xff] }
 0x268   : > { %1681 = vmatprep.subr.bf16.mxu1 %v6176_v38 }
 0x26a   : > { %1641 = vmatpush1.bf16.msra.mxu0 %v6171_v45 }
 0x26b   : > { %1642 = vmatprep.subr.bf16.mxu0 %v6181_v36  ;;  %1682 = vmatpush1.bf16.msra.mxu1 %v6186_v2 }
 0x26c   : > { %1683 = vmatprep.subr.bf16.mxu1 %v6196_v27  ;;  %v8474_v27 = vld [vmem:[#allocation127_spill] sm:$0xff] }
 0x26e   : > { %1643 = vmatpush1.bf16.msra.mxu0 %v6191_v39 }
 0x26f   : > { %1644 = vmatprep.subr.bf16.mxu0 %v6201_v35  ;;  %1684 = vmatpush1.bf16.msra.mxu1 %v6206_v8  ;;  %v6241_v8 = vcombine.high %v8467_v28, %v8466_v23  ;;  %v6273_v28 = vld [vmem:[#allocation4] sm:$0xff] }
 0x270   : > { %1685 = vmatprep.subr.bf16.mxu1 %v6216_v21  ;;  %v6256_v21 = vcombine.high %v8472_v53, %v8471_v26  ;;  %8479 = vst [vmem:[#allocation189_spill] sm:$0xff] %v6273_v28  ;;  %v6287_v53 = vpack.c.bf16 %v6273_v28, %v6273_v28 }
 0x271   : > { %8468 = vst [vmem:[#allocation182_spill] sm:$0xff] %v6241_v8 }
 0x272   : > { %1645 = vmatpush1.bf16.msra.mxu0 %v6211_v33  ;;  %8473 = vst [vmem:[#allocation185_spill] sm:$0xff] %v6256_v21 }
 0x273   : > { %1646 = vmatprep.subr.bf16.mxu0 %v6221_v29  ;;  %1686 = vmatpush1.bf16.msra.mxu1 %v6226_v47  ;;  %v8475_v47 = vld [vmem:[#allocation124_spill] sm:$0xff] }
 0x274   : > { %1687 = vmatprep.subr.bf16.mxu1 %v6236_v20  ;;  %v6261_v2 = vcombine.high %v8475_v47, %v8474_v27  ;;  %v6271_v23 = vcombine.low %v8475_v47, %v8474_v27  ;;  %v8481_v20 = vld [vmem:[#allocation125_spill] sm:$0xff] }
 0x275   : > { %v6278_v38 = vcombine.high %v8481_v20, %v8480_v7  ;;  %v6292_v27 = vcombine.low %v8481_v20, %v8480_v7 }
 0x276   : > { %1647 = vmatpush1.bf16.msra.mxu0 %v6231_v30  ;;  %8476 = vst [vmem:[#allocation186_spill] sm:$0xff] %v6261_v2  ;;  %8478 = vst [vmem:[#allocation188_spill] sm:$0xff] %v6271_v23 }
 0x277   : > { %1648 = vmatprep.subr.bf16.mxu0 %v6241_v8  ;;  %1688 = vmatpush1.bf16.msra.mxu1 %v6246_v41  ;;  %8482 = vst [vmem:[#allocation190_spill] sm:$0xff] %v6278_v38  ;;  %v8483_v41 = vld [vmem:[#allocation39_spill] sm:$0xff]  ;;  %8486 = vst [vmem:[#allocation192_spill] sm:$0xff] %v6292_v27 }
 0x278   : > { %1689 = vmatprep.subr.bf16.mxu1 %v6256_v21  ;;  %v6283_v26 = vcombine.high %v8484_v1, %v8483_v41  ;;  %v6297_v47 = vcombine.low %v8484_v1, %v8483_v41  ;;  %v8487_v21 = vld [vmem:[#allocation45_spill] sm:$0xff]  ;;  %v8491_v1 = vld [vmem:[#allocation51_spill] sm:$0xff]  ;;  %v8492_v41 = vld [vmem:[#allocation48_spill] sm:$0xff] }
 0x279   : > { %v6303_v28 = vcombine.high %v8488_v44, %v8487_v21  ;;  %v6310_v20 = vcombine.low %v8488_v44, %v8487_v21  ;;  %v6316_v7 = vcombine.high %v8492_v41, %v8491_v1  ;;  %v6324_v21 = vcombine.low %v8492_v41, %v8491_v1  ;;  %v8494_v44 = vld [vmem:[#allocation57_spill] sm:$0xff]  ;;  %v8497_v1 = vld [vmem:[#allocation63_spill] sm:$0xff]  ;;  %v8498_v41 = vld [vmem:[#allocation60_spill] sm:$0xff] }
 0x27a   : > { %1649 = vmatpush1.bf16.msra.mxu0 %v6251_v24  ;;  %8485 = vst [vmem:[#allocation191_spill] sm:$0xff] %v6283_v26 }
 0x27b   : > { %1650 = vmatprep.subr.bf16.mxu0 %v6261_v2  ;;  %1690 = vmatpush1.bf16.msra.mxu1 %v6266_v32  ;;  %8489 = vst [vmem:[#allocation193_spill] sm:$0xff] %v6303_v28  ;;  %8490 = vst [vmem:[#allocation194_spill] sm:$0xff] %v6310_v20 }
 0x27c   : > { %1691 = vmatprep.subr.bf16.mxu1 %v6278_v38  ;;  %8493 = vst [vmem:[#allocation195_spill] sm:$0xff] %v6324_v21 }
 0x27e   : > { %1651 = vmatpush1.bf16.msra.mxu0 %v6271_v23 }
 0x27f   : > { %1702 = vmatprep.subr.bf16.mxu0 %v6283_v26  ;;  %1692 = vmatpush1.bf16.msra.mxu1 %v6292_v27 }
 0x280   : > { %1817 = vmatprep.subr.bf16.mxu1 %v5961_v40 }
 0x281   : > { %1653 = vmatmul.mubr.bf16.vlgmr.msra.gmra.mrb[0].mxu0 %v6287_v53 }
 0x282   : > { %1703 = vmatpush1.bf16.msra.mxu0 %v6297_v47  ;;  %1734 = vmatprep.mubr.bf16.mxu0 %v6039_v13  ;;  %v8495_v13 = vld [vmem:[#allocation54_spill] sm:$0xff] }
 0x283   : > { %1704 = vmatprep.subr.bf16.mxu0 %v6303_v28  ;;  %1694 = vmatmul.mubr.bf16.vlgmr.msra.gmra.mrb[0].mxu1 %v6287_v53  ;;  %v6330_v28 = vcombine.high %v8495_v13, %v8494_v44 }
 0x284   : > { %1818 = vmatpush1.bf16.msra.mxu1 %v5965_v15  ;;  %v6336_v15 = vcombine.low %v8495_v13, %v8494_v44  ;;  %v8500_v44 = vld [vmem:[#allocation69_spill] sm:$0xff]  ;;  %v8501_v13 = vld [vmem:[#allocation66_spill] sm:$0xff] }
 0x285   : > { %1819 = vmatprep.subr.bf16.mxu1 %v5969_v3 }
 0x286   : > { %1705 = vmatpush1.bf16.msra.mxu0 %v6310_v20  ;;  %8496 = vst [vmem:[#allocation196_spill] sm:$0xff] %v6336_v15  ;;  %v6342_v20 = vcombine.high %v8498_v41, %v8497_v1 }
 0x287   : > { %1706 = vmatprep.subr.bf16.mxu0 %v6316_v7 }
 0x288   : > { %1820 = vmatpush1.bf16.msra.mxu1 %v5975_v10  ;;  %v6348_v10 = vcombine.low %v8498_v41, %v8497_v1  ;;  %v8503_v1 = vld [vmem:[#allocation75_spill] sm:$0xff]  ;;  %v8504_v41 = vld [vmem:[#allocation72_spill] sm:$0xff] }
 0x289   : > { %1821 = vmatprep.subr.bf16.mxu1 %v5988_v18 }
 0x28a   : > { %1707 = vmatpush1.bf16.msra.mxu0 %v6324_v21  ;;  %8499 = vst [vmem:[#allocation197_spill] sm:$0xff] %v6348_v10  ;;  %v6354_v21 = vcombine.high %v8501_v13, %v8500_v44 }
 0x28b   : > { %1708 = vmatprep.subr.bf16.mxu0 %v6330_v28 }
 0x28c   : > { %1822 = vmatpush1.bf16.msra.mxu1 %v6003_v37  ;;  %v6360_v37 = vcombine.low %v8501_v13, %v8500_v44  ;;  %v8506_v44 = vld [vmem:[#allocation81_spill] sm:$0xff]  ;;  %v8507_v13 = vld [vmem:[#allocation78_spill] sm:$0xff] }
 0x28d   : > { %1823 = vmatprep.subr.bf16.mxu1 %v6013_v55 }
 0x28e   : > { %1709 = vmatpush1.bf16.msra.mxu0 %v6336_v15  ;;  %8502 = vst [vmem:[#allocation198_spill] sm:$0xff] %v6360_v37  ;;  %v6366_v15 = vcombine.high %v8504_v41, %v8503_v1 }
 0x28f   : > { %1710 = vmatprep.subr.bf16.mxu0 %v6342_v20 }
 0x290   : > { %1824 = vmatpush1.bf16.msra.mxu1 %v6025_v43  ;;  %v6372_v43 = vcombine.low %v8504_v41, %v8503_v1  ;;  %v8510_v1 = vld [vmem:[#allocation87_spill] sm:$0xff]  ;;  %v8511_v41 = vld [vmem:[#allocation84_spill] sm:$0xff] }
 0x291   : > { %1825 = vmatprep.subr.bf16.mxu1 %v6035_v58 }
 0x292   : > { %1711 = vmatpush1.bf16.msra.mxu0 %v6348_v10  ;;  %8505 = vst [vmem:[#allocation199_spill] sm:$0xff] %v6372_v43  ;;  %v6378_v10 = vcombine.high %v8507_v13, %v8506_v44 }
 0x293   : > { %1712 = vmatprep.subr.bf16.mxu0 %v6354_v21 }
 0x294   : > { %1826 = vmatpush1.bf16.msra.mxu1 %v6049_v61  ;;  %8508 = vst [vmem:[#allocation200_spill] sm:$0xff] %v6378_v10  ;;  %v6384_v61 = vcombine.low %v8507_v13, %v8506_v44  ;;  %v8514_v44 = vld [vmem:[#allocation93_spill] sm:$0xff]  ;;  %v8515_v13 = vld [vmem:[#allocation90_spill] sm:$0xff] }
 0x295   : > { %1827 = vmatprep.subr.bf16.mxu1 %v6059_v31 }
 0x296   : > { %1713 = vmatpush1.bf16.msra.mxu0 %v6360_v37  ;;  %8509 = vst [vmem:[#allocation201_spill] sm:$0xff] %v6384_v61  ;;  %v6390_v37 = vcombine.high %v8511_v41, %v8510_v1 }
 0x297   : > { %1714 = vmatprep.subr.bf16.mxu0 %v6366_v15 }
 0x298   : > { %1828 = vmatpush1.bf16.msra.mxu1 %v6071_v6  ;;  %8512 = vst [vmem:[#allocation202_spill] sm:$0xff] %v6390_v37  ;;  %v6396_v6 = vcombine.low %v8511_v41, %v8510_v1  ;;  %v8518_v1 = vld [vmem:[#allocation99_spill] sm:$0xff]  ;;  %v8519_v41 = vld [vmem:[#allocation96_spill] sm:$0xff] }
 0x299   : > { %1829 = vmatprep.subr.bf16.mxu1 %v6081_v17 }
 0x29a   : > { %1715 = vmatpush1.bf16.msra.mxu0 %v6372_v43  ;;  %8513 = vst [vmem:[#allocation203_spill] sm:$0xff] %v6396_v6  ;;  %v6402_v43 = vcombine.high %v8515_v13, %v8514_v44 }
 0x29b   : > { %1716 = vmatprep.subr.bf16.mxu0 %v6378_v10 }
 0x29c   : > { %1830 = vmatpush1.bf16.msra.mxu1 %v6091_v14  ;;  %8516 = vst [vmem:[#allocation204_spill] sm:$0xff] %v6402_v43  ;;  %v6408_v14 = vcombine.low %v8515_v13, %v8514_v44  ;;  %v8522_v44 = vld [vmem:[#allocation105_spill] sm:$0xff]  ;;  %v8523_v13 = vld [vmem:[#allocation102_spill] sm:$0xff] }
 0x29d   : > { %1831 = vmatprep.subr.bf16.mxu1 %v6101_v50 }
 0x29e   : > { %1717 = vmatpush1.bf16.msra.mxu0 %v6384_v61  ;;  %8517 = vst [vmem:[#allocation205_spill] sm:$0xff] %v6408_v14  ;;  %v6414_v61 = vcombine.high %v8519_v41, %v8518_v1 }
 0x29f   : > { %1718 = vmatprep.subr.bf16.mxu0 %v6390_v37 }
 0x2a0   : > { %1832 = vmatpush1.bf16.msra.mxu1 %v6111_v56  ;;  %8520 = vst [vmem:[#allocation206_spill] sm:$0xff] %v6414_v61  ;;  %v6420_v56 = vcombine.low %v8519_v41, %v8518_v1  ;;  %v8525_v1 = vld [vmem:[#allocation111_spill] sm:$0xff]  ;;  %v8526_v41 = vld [vmem:[#allocation108_spill] sm:$0xff] }
 0x2a1   : > { %1833 = vmatprep.subr.bf16.mxu1 %v6121_v54 }
 0x2a2   : > { %1719 = vmatpush1.bf16.msra.mxu0 %v6396_v6  ;;  %8521 = vst [vmem:[#allocation207_spill] sm:$0xff] %v6420_v56  ;;  %v6426_v6 = vcombine.high %v8523_v13, %v8522_v44 }
 0x2a3   : > { %1720 = vmatprep.subr.bf16.mxu0 %v6402_v43 }
 0x2a4   : > { %1834 = vmatpush1.bf16.msra.mxu1 %v6131_v62  ;;  %v6432_v62 = vcombine.low %v8523_v13, %v8522_v44  ;;  %v8528_v44 = vld [vmem:[#allocation117_spill] sm:$0xff]  ;;  %v8529_v13 = vld [vmem:[#allocation114_spill] sm:$0xff] }
 0x2a5   : > { %1835 = vmatprep.subr.bf16.mxu1 %v6141_v48 }
 0x2a6   : > { %1721 = vmatpush1.bf16.msra.mxu0 %v6408_v14  ;;  %8524 = vst [vmem:[#allocation208_spill] sm:$0xff] %v6432_v62  ;;  %v6438_v14 = vcombine.high %v8526_v41, %v8525_v1 }
 0x2a7   : > { %1722 = vmatprep.subr.bf16.mxu0 %v6414_v61 }
 0x2a8   : > { %1836 = vmatpush1.bf16.msra.mxu1 %v6151_v4  ;;  %v6444_v4 = vcombine.low %v8526_v41, %v8525_v1  ;;  %v8532_v1 = vld [vmem:[#allocation123_spill] sm:$0xff]  ;;  %v8533_v41 = vld [vmem:[#allocation120_spill] sm:$0xff] }
 0x2a9   : > { %1837 = vmatprep.subr.bf16.mxu1 %v6161_v42 }
 0x2aa   : > { %1723 = vmatpush1.bf16.msra.mxu0 %v6420_v56  ;;  %8527 = vst [vmem:[#allocation209_spill] sm:$0xff] %v6444_v4  ;;  %v6450_v56 = vcombine.high %v8529_v13, %v8528_v44 }
 0x2ab   : > { %1724 = vmatprep.subr.bf16.mxu0 %v6426_v6 }
 0x2ac   : > { %1838 = vmatpush1.bf16.msra.mxu1 %v6171_v45  ;;  %8530 = vst [vmem:[#allocation210_spill] sm:$0xff] %v6450_v56  ;;  %v6456_v45 = vcombine.low %v8529_v13, %v8528_v44  ;;  %v8536_v44 = vld [vmem:[#allocation129_spill] sm:$0xff]  ;;  %v8537_v13 = vld [vmem:[#allocation126_spill] sm:$0xff] }
 0x2ad   : > { %1839 = vmatprep.subr.bf16.mxu1 %v6181_v36 }
 0x2ae   : > { %1725 = vmatpush1.bf16.msra.mxu0 %v6432_v62  ;;  %8531 = vst [vmem:[#allocation211_spill] sm:$0xff] %v6456_v45  ;;  %v6462_v62 = vcombine.high %v8533_v41, %v8532_v1 }
 0x2af   : > { %1726 = vmatprep.subr.bf16.mxu0 %v6438_v14 }
 0x2b0   : > { %1840 = vmatpush1.bf16.msra.mxu1 %v6191_v39  ;;  %8534 = vst [vmem:[#allocation212_spill] sm:$0xff] %v6462_v62  ;;  %v6468_v39 = vcombine.low %v8533_v41, %v8532_v1  ;;  %v8541_v1 = vld [vmem:[#allocation168_spill] sm:$0xff]  ;;  %v8542_v41 = vld [vmem:[#allocation170_spill] sm:$0xff] }
 0x2b1   : > { %1841 = vmatprep.subr.bf16.mxu1 %v6201_v35 }
 0x2b2   : > { %1727 = vmatpush1.bf16.msra.mxu0 %v6444_v4  ;;  %8535 = vst [vmem:[#allocation213_spill] sm:$0xff] %v6468_v39  ;;  %v6474_v4 = vcombine.high %v8537_v13, %v8536_v44 }
 0x2b3   : > { %1728 = vmatprep.subr.bf16.mxu0 %v6450_v56 }
 0x2b4   : > { %1842 = vmatpush1.bf16.msra.mxu1 %v6211_v33  ;;  %8538 = vst [vmem:[#allocation214_spill] sm:$0xff] %v6474_v4  ;;  %v6480_v33 = vcombine.low %v8537_v13, %v8536_v44  ;;  %v8543_v44 = vld [vmem:[#allocation171_spill] sm:$0xff]  ;;  %v8544_v13 = vld [vmem:[#allocation173_spill] sm:$0xff] }
 0x2b5   : > { %1843 = vmatprep.subr.bf16.mxu1 %v6221_v29 }
 0x2b6   : > { %1729 = vmatpush1.bf16.msra.mxu0 %v6456_v45  ;;  %8539 = vst [vmem:[#allocation215_spill] sm:$0xff] %v6480_v33 }
 0x2b7   : > { %1730 = vmatprep.subr.bf16.mxu0 %v6462_v62 }
 0x2b8   : > { %1844 = vmatpush1.bf16.msra.mxu1 %v6231_v30 }
 0x2b9   : > { %1845 = vmatprep.subr.bf16.mxu1 %v6241_v8 }
 0x2ba   : > { %1731 = vmatpush1.bf16.msra.mxu0 %v6468_v39 }
 0x2bb   : > { %1732 = vmatprep.subr.bf16.mxu0 %v6474_v4 }
 0x2bc   : > { %1846 = vmatpush1.bf16.msra.mxu1 %v6251_v24 }
 0x2bd   : > { %1847 = vmatprep.subr.bf16.mxu1 %v6261_v2 }
 0x2be   : > { %1733 = vmatpush1.bf16.msra.mxu0 %v6480_v33 }
 0x2bf   : > { %1858 = vmatprep.subr.bf16.mxu0 %v5979_v22 }
 0x2c0   : > { %1848 = vmatpush1.bf16.msra.mxu1 %v6271_v23 }
 0x2c1   : > { %1735 = vmatmul.mubr.bf16.vlgmr.msra.gmra.mrb[4].mxu0 %v6287_v53  ;;  %1899 = vmatprep.subr.bf16.mxu1 %v6283_v26  ;;  %v8540_v53 = vld [vmem:[#allocation166_spill] sm:$0xff] }
 0x2c2   : > { %1859 = vmatpush1.bf16.msra.mxu0 %v5983_v49 }
 0x2c3   : > { %1860 = vmatprep.subr.bf16.mxu0 %v5992_v46 }
 0x2c6   : > { %1861 = vmatpush1.bf16.msra.mxu0 %v5998_v5 }
 0x2c7   : > { %1862 = vmatprep.subr.bf16.mxu0 %v6008_v12 }
 0x2ca   : > { %1863 = vmatpush1.bf16.msra.mxu0 %v6018_v9 }
 0x2cb   : > { %1864 = vmatprep.subr.bf16.mxu0 %v6030_v16 }
 0x2ce   : > { %1865 = vmatpush1.bf16.msra.mxu0 %v6044_v52  ;;  %v6523_v52 = vld [vmem:[#allocation2 + $0x8] ss:$12 sps:$4 sm:$0xff]  }
 0x2cf   : > { %1866 = vmatprep.subr.bf16.mxu0 %v6054_v25  ;;  %8551 = vst [vmem:[#allocation216_spill] sm:$0xff] %v6523_v52 }
 0x2d2   : > { %1867 = vmatpush1.bf16.msra.mxu0 %v6066_v0 }
 0x2d3   : > { %1868 = vmatprep.subr.bf16.mxu0 %v6076_v34 }
 0x2d6   : > { %1869 = vmatpush1.bf16.msra.mxu0 %v6086_v11 }
 0x2d7   : > { %1870 = vmatprep.subr.bf16.mxu0 %v6096_v19  ;;  %v8545_v19 = vld [vmem:[#allocation175_spill] sm:$0xff] }
 0x2da   : > { %1871 = vmatpush1.bf16.msra.mxu0 %v6106_v51  ;;  %v8546_v51 = vld [vmem:[#allocation177_spill] sm:$0xff] }
 0x2db   : > { %1872 = vmatprep.subr.bf16.mxu0 %v6116_v59  ;;  %v8547_v59 = vld [vmem:[#allocation179_spill] sm:$0xff] }
 0x2de   : > { %1873 = vmatpush1.bf16.msra.mxu0 %v6126_v57  ;;  %v8548_v57 = vld [vmem:[#allocation181_spill] sm:$0xff] }
 0x2df   : > { %1874 = vmatprep.subr.bf16.mxu0 %v6136_v60  ;;  %v8549_v60 = vld [vmem:[#allocation183_spill] sm:$0xff] }
 0x2e2   : > { %1875 = vmatpush1.bf16.msra.mxu0 %v6146_v63  ;;  %v8550_v63 = vld [vmem:[#allocation185_spill] sm:$0xff] }
 0x2e3   : > { %1876 = vmatprep.subr.bf16.mxu0 %v8540_v53 }
 0x2e6   : > { %1877 = vmatpush1.bf16.msra.mxu0 %v8541_v1 }
 0x2e7   : > { %1878 = vmatprep.subr.bf16.mxu0 %v8542_v41 }
 0x2ea   : > { %1879 = vmatpush1.bf16.msra.mxu0 %v8543_v44 }
 0x2eb   : > { %1880 = vmatprep.subr.bf16.mxu0 %v8544_v13  ;;  %v1743_v13 = vld [vmem:[#allocation2] sm:$0xff] }
 0x2ec   : > { %v1748_v44 = vunpack.c.l.bf16 %v1743_v13 }
 0x2ee   : > { %1881 = vmatpush1.bf16.msra.mxu0 %v8545_v19  ;;  %v1757_v19 = vrot.slane %v1743_v13, 4  ;;  %v1746_v13 = vld [vmem:[#allocation3 + $0x24] sm:$0xff] }
 0x2ef   : > { %1882 = vmatprep.subr.bf16.mxu0 %v8546_v51 }
 0x2f0   : > { %v1759_v41 = vunpack.c.l.bf16 %v1757_v19  ;;  %v8552_v19 = vld [vmem:[#allocation130_spill] sm:$0xff] }
 0x2f2   : > { %1883 = vmatpush1.bf16.msra.mxu0 %v8547_v59 }
 0x2f3   : > { %1884 = vmatprep.subr.bf16.mxu0 %v8548_v57 }
 0x2f6   : > { %1885 = vmatpush1.bf16.msra.mxu0 %v8549_v60 }
 0x2f7   : > { %1886 = vmatprep.subr.bf16.mxu0 %v8550_v63 }
 0x2fa   : > { %1887 = vmatpush1.bf16.msra.mxu0 %v6266_v32 }
 0x2fb   : > { %1888 = vmatprep.subr.bf16.mxu0 %v6278_v38 }
 0x2fe   : > { %1889 = vmatpush1.bf16.msra.mxu0 %v6292_v27 }
 0x2ff   : > { %2015 = vmatprep.subr.bf16.mxu0 %v5961_v40 }
 0x354   : > { %v1654_v51 = vpop.f32.mrb[0].mxu0 }
 0x355   : > { %v1749_v59 = vadd.f32 %v1748_v44, %v1654_v51  ;;  %v1656_v1 = vpop.f32.mrb[1].mxu0 }
 0x356   : > { %v1658_v57 = vpop.f32.mrb[2].mxu0  ;;  %v1695_v11 = vpop.f32.mrb[0].mxu1  ;;  %v1760_v63 = vadd.f32 %v1759_v41, %v1656_v1  ;;  %v8553_v41 = vld [vmem:[#allocation189_spill] sm:$0xff] }
 0x357   : > { %v4161_v53 = vmul.f32 -1.442695, %v1749_v59  ;;  %v1659_v60 = vpop.f32.mrb[3].mxu0  ;;  %v1697_v34 = vpop.f32.mrb[1].mxu1  ;;  %v1767_v57 = vadd.f32 %v8552_v19, %v1695_v11  ;;  %v1776_v59 = vunpack.c.l.bf16 %v1746_v13  ;;  %v1785_v19 = vrot.slane %v1746_v13, 4 }
 0x358   : > { %v1699_v32 = vpop.f32.mrb[2].mxu1  ;;  %v4162_v0 = vmul.f32 -1.442695, %v1760_v63  ;;  %v1769_v60 = vunpack.c.l.bf16 %v6523_v52 }
 0x359   : > { %4679 = vpow2.f32 %v4161_v53  ;;  %v1700_v38 = vpop.f32.mrb[3].mxu1  ;;  %v1777_v32 = vadd.f32 %v1776_v59, %v1697_v34  ;;  %v1787_v52 = vunpack.c.l.bf16 %v1785_v19  ;;  %v1807_v19 = vstv %s1806_s15 }
 0x35a   : > { %4681 = vpow2.f32 %v4162_v0  ;;  %vm1808_vm1 = vcmp.eq.s32.totalorder %v1807_v19, 1  ;;  %v8564_v19 = vld [vmem:[#allocation197_spill] sm:$0xff] }
 0x35b   : > { %v4163_v63 = vmul.f32 -1.442695, %v1777_v32 }
 0x363   : > { %v4680_v27 = vpop.eup %4679 }
 0x364   : > { %v1753_v40 = vadd.f32 1.0, %v4680_v27  ;;  %v4682_v25 = vpop.eup %4681 }
 0x365   : > { %v1764_v51 = vadd.f32 1.0, %v4682_v25 }
 0x366   : > { %4683 = vrcp.f32 %v1753_v40 }
 0x367   : > { %4685 = vrcp.f32 %v1764_v51 }
 0x370   : > { %v4684_v1 = vpop.eup %4683 }
 0x371   : > { %v1768_v53 = vmul.f32 %v4684_v1, %v1767_v57  ;;  %v4686_v0 = vpop.eup %4685 }
 0x372   : > { %v1772_v40 = vsub.f32 1.0, %v4686_v0  ;;  %v1774_v44 = vmul.f32 %v4686_v0, %v8553_v41  ;;  %v6529_v0 = vld [vmem:[#allocation3 + $0x20] ss:$12 sps:$4 sm:$0xff]  }
 0x373   : > { %v1770_v38 = vadd.f32 %v1769_v60, %v1768_v53  ;;  %v8554_v60 = vld [vmem:[#allocation131_spill] sm:$0xff] }
 0x375   : > { %4687 = vtanh.f32 %v1770_v38 }
 0x376   : > { %4689 = vpow2.f32 %v4163_v63 }
 0x37f   : > { %v4688_v27 = vpop.eup %4687 }
 0x380   : > { %v1773_v16 = vmul.f32 %v4688_v27, %v1772_v40  ;;  %v4690_v9 = vpop.eup %4689 }
 0x381   : > { %v1781_v11 = vadd.f32 1.0, %v4690_v9 }
 0x382   : > { %v1775_v25 = vadd.f32 %v1774_v44, %v1773_v16  ;;  %v1797_v16 = vunpack.c.h.bf16 %v6529_v0  ;;  %v1812_v44 = vstv %s1811_s24 }
 0x383   : > { %4691 = vrcp.f32 %v1781_v11  ;;  %vm1813_vm2 = vcmp.eq.s32.totalorder %v1812_v44, 1  ;;  %v8566_v44 = vld [vmem:[#allocation198_spill] sm:$0xff] }
 0x38d   : > { %v4692_v57 = vpop.eup %4691 }
 0x394   : > { %v1736_v51 = vpop.f32.mrb[4].mxu0 }
 0x395   : > { %v1788_v34 = vadd.f32 %v1787_v52, %v1736_v51  ;;  %v1738_v59 = vpop.f32.mrb[5].mxu0 }
 0x396   : > { %v1795_v1 = vadd.f32 %v8554_v60, %v1738_v59  ;;  %v1740_v53 = vpop.f32.mrb[6].mxu0 }
 0x397   : > { %v4164_v32 = vmul.f32 -1.442695, %v1788_v34  ;;  %v1741_v38 = vpop.f32.mrb[7].mxu0 }
 0x398   : > { %v1796_v63 = vmul.f32 %v4692_v57, %v1795_v1  ;;  %v8555_v57 = vld [vmem:[#allocation142_spill] sm:$0xff]  ;;  %v6539_v1 = vsel %vm1808_vm1, %v1775_v25, %v8553_v41  ;;  %v8556_v41 = vld [vmem:[#allocation193_spill] sm:$0xff] }
 0x399   : > { %4693 = vpow2.f32 %v4164_v32  ;;  %v6548_v38 = vpack.c.bf16 %v6539_v1, %v6539_v1  ;;  %v8557_v25 = vld [vmem:[#allocation133_spill] sm:$0xff] }
 0x39a   : > { %v1798_v13 = vadd.f32 %v1797_v16, %v1796_v63  ;;  %v8558_v63 = vld [vmem:[#allocation194_spill] sm:$0xff] }
 0x39b   : > { %v8559_v16 = vld [vmem:[#allocation134_spill] sm:$0xff] }
 0x3a3   : > { %v4694_v9 = vpop.eup %4693 }
 0x3a4   : > { %v1792_v40 = vadd.f32 1.0, %v4694_v9  ;;  %v8560_v9 = vld [vmem:[#allocation195_spill] sm:$0xff] }
 0x3a6   : > { %4695 = vrcp.f32 %v1792_v40  ;;  %v8561_v40 = vld [vmem:[#allocation139_spill] sm:$0xff] }
 0x3a7   : > { %4697 = vtanh.f32 %v1798_v13  ;;  %v8562_v13 = vld [vmem:[#allocation196_spill] sm:$0xff] }
 0x3b0   : > { %v4696_v52 = vpop.eup %4695 }
 0x3b1   : > { %v1800_v27 = vsub.f32 1.0, %v4696_v52  ;;  %v4698_v11 = vpop.eup %4697  ;;  %v1802_v34 = vmul.f32 %v4696_v52, %v8555_v57  ;;  %v8563_v52 = vld [vmem:[#allocation143_spill] sm:$0xff] }
 0x3b3   : > { %v1801_v51 = vmul.f32 %v4698_v11, %v1800_v27  ;;  %v8565_v27 = vld [vmem:[#allocation146_spill] sm:$0xff]  ;;  %v8567_v11 = vld [vmem:[#allocation149_spill] sm:$0xff] }
 0x3b5   : > { %v1803_v59 = vadd.f32 %v1802_v34, %v1801_v51  ;;  %v8568_v51 = vld [vmem:[#allocation199_spill] sm:$0xff]  ;;  %v8570_v34 = vld [vmem:[#allocation201_spill] sm:$0xff] }
 0x3b7   : > { %v6542_v53 = vsel %vm1813_vm2, %v1803_v59, %v8555_v57  ;;  %v8569_v57 = vld [vmem:[#allocation153_spill] sm:$0xff] }
 0x3b8   : > { %v1816_v32 = vpack.c.bf16 %v6542_v53, %v6542_v53  ;;  %v8571_v59 = vld [vmem:[#allocation157_spill] sm:$0xff] }
 0x3ba   : > { %1849 = vmatprep.mubr.bf16.mxu1 %v1816_v32  ;;  %1890 = vmatprep.mubr.bf16.mxu0 %v1816_v32 }
 0x3bb   : > { %1850 = vmatmul.mubr.bf16.vlgmr.msra.gmra.mrb[4].mxu1 %v6548_v38  ;;  %1891 = vmatmul.mubr.bf16.vlgmr.msra.gmra.mrb[8].mxu0 %v6548_v38 }
 0x3bc   : > { %1900 = vmatpush1.bf16.msra.mxu1 %v6297_v47  ;;  %1931 = vmatprep.mubr.bf16.mxu1 %v1816_v32  ;;  %v8572_v32 = vld [vmem:[#allocation203_spill] sm:$0xff] }
 0x3bd   : > { %1901 = vmatprep.subr.bf16.mxu1 %v8556_v41  ;;  %2016 = vmatpush1.bf16.msra.mxu0 %v8557_v25 }
 0x3be   : > { %2017 = vmatprep.subr.bf16.mxu0 %v5969_v3 }
 0x3c0   : > { %1902 = vmatpush1.bf16.msra.mxu1 %v8558_v63 }
 0x3c1   : > { %1903 = vmatprep.subr.bf16.mxu1 %v6316_v7  ;;  %2018 = vmatpush1.bf16.msra.mxu0 %v8559_v16 }
 0x3c2   : > { %2019 = vmatprep.subr.bf16.mxu0 %v5988_v18 }
 0x3c4   : > { %1904 = vmatpush1.bf16.msra.mxu1 %v8560_v9 }
 0x3c5   : > { %1905 = vmatprep.subr.bf16.mxu1 %v6330_v28  ;;  %2020 = vmatpush1.bf16.msra.mxu0 %v8561_v40 }
 0x3c6   : > { %2021 = vmatprep.subr.bf16.mxu0 %v6013_v55 }
 0x3c8   : > { %1906 = vmatpush1.bf16.msra.mxu1 %v8562_v13 }
 0x3c9   : > { %1907 = vmatprep.subr.bf16.mxu1 %v6342_v20  ;;  %2022 = vmatpush1.bf16.msra.mxu0 %v8563_v52 }
 0x3ca   : > { %2023 = vmatprep.subr.bf16.mxu0 %v6035_v58 }
 0x3cc   : > { %1908 = vmatpush1.bf16.msra.mxu1 %v8564_v19 }
 0x3cd   : > { %1909 = vmatprep.subr.bf16.mxu1 %v6354_v21  ;;  %2024 = vmatpush1.bf16.msra.mxu0 %v8565_v27 }
 0x3ce   : > { %2025 = vmatprep.subr.bf16.mxu0 %v6059_v31 }
 0x3d0   : > { %1910 = vmatpush1.bf16.msra.mxu1 %v8566_v44 }
 0x3d1   : > { %1911 = vmatprep.subr.bf16.mxu1 %v6366_v15  ;;  %2026 = vmatpush1.bf16.msra.mxu0 %v8567_v11 }
 0x3d2   : > { %2027 = vmatprep.subr.bf16.mxu0 %v6081_v17  ;;  %v8573_v17 = vld [vmem:[#allocation161_spill] sm:$0xff] }
 0x3d4   : > { %1912 = vmatpush1.bf16.msra.mxu1 %v8568_v51 }
 0x3d5   : > { %1913 = vmatprep.subr.bf16.mxu1 %v6378_v10  ;;  %2028 = vmatpush1.bf16.msra.mxu0 %v8569_v57  ;;  %v8574_v10 = vld [vmem:[#allocation205_spill] sm:$0xff] }
 0x3d6   : > { %2029 = vmatprep.subr.bf16.mxu0 %v6101_v50  ;;  %v8575_v50 = vld [vmem:[#allocation165_spill] sm:$0xff] }
 0x3d8   : > { %1914 = vmatpush1.bf16.msra.mxu1 %v8570_v34 }
 0x3d9   : > { %1915 = vmatprep.subr.bf16.mxu1 %v6390_v37  ;;  %2030 = vmatpush1.bf16.msra.mxu0 %v8571_v59  ;;  %v8576_v37 = vld [vmem:[#allocation207_spill] sm:$0xff] }
 0x3da   : > { %2031 = vmatprep.subr.bf16.mxu0 %v6121_v54  ;;  %v8577_v54 = vld [vmem:[#allocation169_spill] sm:$0xff] }
 0x3dc   : > { %1916 = vmatpush1.bf16.msra.mxu1 %v8572_v32 }
 0x3dd   : > { %1917 = vmatprep.subr.bf16.mxu1 %v6402_v43  ;;  %2032 = vmatpush1.bf16.msra.mxu0 %v8573_v17  ;;  %v8578_v43 = vld [vmem:[#allocation208_spill] sm:$0xff] }
 0x3de   : > { %2033 = vmatprep.subr.bf16.mxu0 %v6141_v48  ;;  %v8579_v48 = vld [vmem:[#allocation172_spill] sm:$0xff] }
 0x3e0   : > { %1918 = vmatpush1.bf16.msra.mxu1 %v8574_v10 }
 0x3e1   : > { %1919 = vmatprep.subr.bf16.mxu1 %v6414_v61  ;;  %2034 = vmatpush1.bf16.msra.mxu0 %v8575_v50  ;;  %v8580_v61 = vld [vmem:[#allocation209_spill] sm:$0xff] }
 0x3e2   : > { %2035 = vmatprep.subr.bf16.mxu0 %v6161_v42  ;;  %v8581_v42 = vld [vmem:[#allocation176_spill] sm:$0xff] }
 0x3e4   : > { %1920 = vmatpush1.bf16.msra.mxu1 %v8576_v37 }
 0x3e5   : > { %1921 = vmatprep.subr.bf16.mxu1 %v6426_v6  ;;  %2036 = vmatpush1.bf16.msra.mxu0 %v8577_v54 }
 0x3e6   : > { %2037 = vmatprep.subr.bf16.mxu0 %v6181_v36 }
 0x3e8   : > { %1922 = vmatpush1.bf16.msra.mxu1 %v8578_v43 }
 0x3e9   : > { %1923 = vmatprep.subr.bf16.mxu1 %v6438_v14  ;;  %2038 = vmatpush1.bf16.msra.mxu0 %v8579_v48 }
 0x3ea   : > { %2039 = vmatprep.subr.bf16.mxu0 %v6201_v35 }
 0x3ec   : > { %1924 = vmatpush1.bf16.msra.mxu1 %v8580_v61  ;;  %v8610_v61 = vld [vmem:[#allocation130_spill] sm:$0xff] }
 0x3ed   : > { %1925 = vmatprep.subr.bf16.mxu1 %v6450_v56  ;;  %2040 = vmatpush1.bf16.msra.mxu0 %v8581_v42  ;;  %v1944_v56 = vld [vmem:[#allocation3 + $0x18] sm:$0xff] }
 0x3ee   : > { %2041 = vmatprep.subr.bf16.mxu0 %v6221_v29 }
 0x3f0   : > { %1926 = vmatpush1.bf16.msra.mxu1 %v6456_v45 }
 0x3f1   : > { %1927 = vmatprep.subr.bf16.mxu1 %v6462_v62  ;;  %2042 = vmatpush1.bf16.msra.mxu0 %v6231_v30 }
 0x3f2   : > { %2043 = vmatprep.subr.bf16.mxu0 %v6241_v8 }
 0x3f4   : > { %1928 = vmatpush1.bf16.msra.mxu1 %v6468_v39 }
 0x3f5   : > { %1929 = vmatprep.subr.bf16.mxu1 %v6474_v4  ;;  %2044 = vmatpush1.bf16.msra.mxu0 %v6251_v24  ;;  %v8582_v24 = vld [vmem:[#allocation141_spill] sm:$0xff] }
 0x3f6   : > { %2045 = vmatprep.subr.bf16.mxu0 %v6261_v2  ;;  %v8583_v2 = vld [vmem:[#allocation144_spill] sm:$0xff] }
 0x3f8   : > { %1930 = vmatpush1.bf16.msra.mxu1 %v6480_v33  ;;  %v8584_v33 = vld [vmem:[#allocation145_spill] sm:$0xff] }
 0x3f9   : > { %2056 = vmatprep.subr.bf16.mxu1 %v5979_v22  ;;  %2046 = vmatpush1.bf16.msra.mxu0 %v6271_v23  ;;  %v8585_v22 = vld [vmem:[#allocation147_spill] sm:$0xff]  ;;  %v8586_v23 = vld [vmem:[#allocation148_spill] sm:$0xff] }
 0x3fa   : > { %2097 = vmatprep.subr.bf16.mxu0 %v6283_v26  ;;  %v8587_v26 = vld [vmem:[#allocation150_spill] sm:$0xff] }
 0x3fb   : > { %1932 = vmatmul.mubr.bf16.vlgmr.msra.gmra.mrb[8].mxu1 %v6548_v38  ;;  %v8588_v38 = vld [vmem:[#allocation152_spill] sm:$0xff] }
 0x3fc   : > { %2057 = vmatpush1.bf16.msra.mxu1 %v5983_v49  ;;  %v8589_v49 = vld [vmem:[#allocation154_spill] sm:$0xff] }
 0x3fd   : > { %2058 = vmatprep.subr.bf16.mxu1 %v5992_v46  ;;  %v8590_v46 = vld [vmem:[#allocation156_spill] sm:$0xff] }
 0x400   : > { %2059 = vmatpush1.bf16.msra.mxu1 %v5998_v5  ;;  %v8591_v5 = vld [vmem:[#allocation158_spill] sm:$0xff] }
 0x401   : > { %2060 = vmatprep.subr.bf16.mxu1 %v6008_v12  ;;  %v8592_v12 = vld [vmem:[#allocation160_spill] sm:$0xff] }
 0x404   : > { %2061 = vmatpush1.bf16.msra.mxu1 %v8582_v24  ;;  %v8593_v24 = vld [vmem:[#allocation162_spill] sm:$0xff] }
 0x405   : > { %2062 = vmatprep.subr.bf16.mxu1 %v8583_v2  ;;  %v8594_v2 = vld [vmem:[#allocation164_spill] sm:$0xff] }
 0x408   : > { %2063 = vmatpush1.bf16.msra.mxu1 %v8584_v33  ;;  %v8595_v33 = vld [vmem:[#allocation166_spill] sm:$0xff] }
 0x409   : > { %2064 = vmatprep.subr.bf16.mxu1 %v8585_v22  ;;  %v8596_v22 = vld [vmem:[#allocation168_spill] sm:$0xff] }
 0x40c   : > { %2065 = vmatpush1.bf16.msra.mxu1 %v8586_v23  ;;  %v8597_v23 = vld [vmem:[#allocation170_spill] sm:$0xff] }
 0x40d   : > { %2066 = vmatprep.subr.bf16.mxu1 %v8587_v26  ;;  %v8598_v26 = vld [vmem:[#allocation171_spill] sm:$0xff] }
 0x410   : > { %2067 = vmatpush1.bf16.msra.mxu1 %v8588_v38  ;;  %v8599_v38 = vld [vmem:[#allocation173_spill] sm:$0xff] }
 0x411   : > { %2068 = vmatprep.subr.bf16.mxu1 %v8589_v49  ;;  %v8600_v49 = vld [vmem:[#allocation175_spill] sm:$0xff] }
 0x414   : > { %2069 = vmatpush1.bf16.msra.mxu1 %v8590_v46  ;;  %v8601_v46 = vld [vmem:[#allocation177_spill] sm:$0xff] }
 0x415   : > { %2070 = vmatprep.subr.bf16.mxu1 %v8591_v5  ;;  %v8602_v5 = vld [vmem:[#allocation179_spill] sm:$0xff] }
 0x418   : > { %2071 = vmatpush1.bf16.msra.mxu1 %v8592_v12  ;;  %v8603_v12 = vld [vmem:[#allocation181_spill] sm:$0xff] }
 0x419   : > { %2072 = vmatprep.subr.bf16.mxu1 %v8593_v24  ;;  %v8604_v24 = vld [vmem:[#allocation183_spill] sm:$0xff] }
 0x41c   : > { %2073 = vmatpush1.bf16.msra.mxu1 %v8594_v2  ;;  %v8605_v2 = vld [vmem:[#allocation185_spill] sm:$0xff] }
 0x41d   : > { %2074 = vmatprep.subr.bf16.mxu1 %v8595_v33  ;;  %v8606_v33 = vld [vmem:[#allocation187_spill] sm:$0xff] }
 0x420   : > { %2075 = vmatpush1.bf16.msra.mxu1 %v8596_v22  ;;  %v8607_v22 = vld [vmem:[#allocation190_spill] sm:$0xff] }
 0x421   : > { %2076 = vmatprep.subr.bf16.mxu1 %v8597_v23  ;;  %v8608_v23 = vld [vmem:[#allocation192_spill] sm:$0xff] }
 0x424   : > { %2077 = vmatpush1.bf16.msra.mxu1 %v8598_v26  ;;  %v8609_v26 = vld [vmem:[#allocation132_spill] sm:$0xff] }
 0x425   : > { %2078 = vmatprep.subr.bf16.mxu1 %v8599_v38  ;;  %v1941_v38 = vld [vmem:[#allocation2 + $0xc] sm:$0xff] }
 0x426   : > { %v1946_v4 = vunpack.c.l.bf16 %v1941_v38 }
 0x428   : > { %2079 = vmatpush1.bf16.msra.mxu1 %v8600_v49  ;;  %v1955_v49 = vrot.slane %v1941_v38, 4 }
 0x429   : > { %2080 = vmatprep.subr.bf16.mxu1 %v8601_v46 }
 0x42c   : > { %2081 = vmatpush1.bf16.msra.mxu1 %v8602_v5  ;;  %v1957_v5 = vunpack.c.l.bf16 %v1955_v49 }
 0x42d   : > { %2082 = vmatprep.subr.bf16.mxu1 %v8603_v12 }
 0x430   : > { %2083 = vmatpush1.bf16.msra.mxu1 %v8604_v24 }
 0x431   : > { %2084 = vmatprep.subr.bf16.mxu1 %v8605_v2 }
 0x434   : > { %2085 = vmatpush1.bf16.msra.mxu1 %v8606_v33 }
 0x435   : > { %2086 = vmatprep.subr.bf16.mxu1 %v8607_v22 }
 0x438   : > { %2087 = vmatpush1.bf16.msra.mxu1 %v8608_v23 }
 0x439   : > { %2213 = vmatprep.subr.bf16.mxu1 %v8609_v26 }
 0x48e   : > { %v1851_v46 = vpop.f32.mrb[4].mxu1  ;;  %v1892_v39 = vpop.f32.mrb[8].mxu0 }
 0x48f   : > { %v1947_v8 = vadd.f32 %v1946_v4, %v1851_v46  ;;  %v1853_v12 = vpop.f32.mrb[5].mxu1  ;;  %v1894_v30 = vpop.f32.mrb[9].mxu0  ;;  %v1965_v49 = vadd.f32 %v8610_v61, %v1892_v39  ;;  %v8611_v4 = vld [vmem:[#allocation216_spill] sm:$0xff] }
 0x490   : > { %v1855_v24 = vpop.f32.mrb[6].mxu1  ;;  %v1896_v62 = vpop.f32.mrb[10].mxu0  ;;  %v1958_v29 = vadd.f32 %v1957_v5, %v1853_v12  ;;  %v1967_v46 = vunpack.c.h.bf16 %v8611_v4 }
 0x491   : > { %v4166_v2 = vmul.f32 -1.442695, %v1947_v8  ;;  %v1856_v45 = vpop.f32.mrb[7].mxu1  ;;  %v1897_v33 = vpop.f32.mrb[11].mxu0  ;;  %v1974_v24 = vunpack.c.l.bf16 %v1944_v56 }
 0x492   : > { %v4167_v22 = vmul.f32 -1.442695, %v1958_v29 }
 0x493   : > { %4699 = vpow2.f32 %v4166_v2  ;;  %v1975_v8 = vadd.f32 %v1974_v24, %v1894_v30 }
 0x494   : > { %4701 = vpow2.f32 %v4167_v22 }
 0x495   : > { %v4168_v5 = vmul.f32 -1.442695, %v1975_v8 }
 0x49d   : > { %v4700_v23 = vpop.eup %4699 }
 0x49e   : > { %v1951_v26 = vadd.f32 1.0, %v4700_v23  ;;  %v4702_v42 = vpop.eup %4701 }
 0x49f   : > { %v1962_v38 = vadd.f32 1.0, %v4702_v42 }
 0x4a0   : > { %4703 = vrcp.f32 %v1951_v26  ;;  %v1983_v26 = vrot.slane %v1944_v56, 4 }
 0x4a1   : > { %4705 = vrcp.f32 %v1962_v38 }
 0x4a2   : > { %v1985_v4 = vunpack.c.l.bf16 %v1983_v26 }
 0x4aa   : > { %v4704_v35 = vpop.eup %4703 }
 0x4ab   : > { %v1966_v62 = vmul.f32 %v4704_v35, %v1965_v49  ;;  %v4706_v29 = vpop.eup %4705 }
 0x4ac   : > { %v1970_v22 = vsub.f32 1.0, %v4706_v29  ;;  %v1972_v2 = vmul.f32 %v4706_v29, %v6539_v1 }
 0x4ad   : > { %v1968_v45 = vadd.f32 %v1967_v46, %v1966_v62 }
 0x4af   : > { %4707 = vtanh.f32 %v1968_v45 }
 0x4b0   : > { %4709 = vpow2.f32 %v4168_v5  ;;  %v1995_v5 = vunpack.c.l.bf16 %v6529_v0 }
 0x4b9   : > { %v4708_v12 = vpop.eup %4707 }
 0x4ba   : > { %v1971_v42 = vmul.f32 %v4708_v12, %v1970_v22  ;;  %v4710_v23 = vpop.eup %4709 }
 0x4bb   : > { %v1979_v39 = vadd.f32 1.0, %v4710_v23  ;;  %v2010_v23 = vstv %s2009_s29 }
 0x4bc   : > { %v1973_v33 = vadd.f32 %v1972_v2, %v1971_v42  ;;  %v2005_v2 = vstv %s2004_s26  ;;  %vm2011_vm4 = vcmp.eq.s32.totalorder %v2010_v23, 1  ;;  %v8645_v23 = vld [vmem:[#allocation147_spill] sm:$0xff] }
 0x4bd   : > { %4711 = vrcp.f32 %v1979_v39  ;;  %vm2006_vm3 = vcmp.eq.s32.totalorder %v2005_v2, 1  ;;  %v8643_v2 = vld [vmem:[#allocation144_spill] sm:$0xff] }
 0x4c7   : > { %v4712_v24 = vpop.eup %4711 }
 0x4ce   : > { %v1933_v35 = vpop.f32.mrb[8].mxu1 }
 0x4cf   : > { %v1986_v38 = vadd.f32 %v1985_v4, %v1933_v35  ;;  %v1935_v49 = vpop.f32.mrb[9].mxu1  ;;  %v6657_v35 = vsel %vm2006_vm3, %v1973_v33, %v6539_v1  ;;  %v8617_v1 = vld [vmem:[#allocation204_spill] sm:$0xff] }
 0x4d0   : > { %v1993_v30 = vadd.f32 %v8554_v60, %v1935_v49  ;;  %v1937_v46 = vpop.f32.mrb[10].mxu1  ;;  %v8632_v33 = vld [vmem:[#allocation184_spill] sm:$0xff] }
 0x4d1   : > { %v4169_v62 = vmul.f32 -1.442695, %v1986_v38  ;;  %v1938_v45 = vpop.f32.mrb[11].mxu1  ;;  %v8633_v46 = vld [vmem:[#allocation186_spill] sm:$0xff] }
 0x4d2   : > { %v1994_v8 = vmul.f32 %v4712_v24, %v1993_v30  ;;  %v6666_v30 = vpack.c.bf16 %v6657_v35, %v6657_v35  ;;  %v8634_v24 = vld [vmem:[#allocation215_spill] sm:$0xff]  ;;  %v8636_v45 = vld [vmem:[#allocation188_spill] sm:$0xff] }
 0x4d3   : > { %4713 = vpow2.f32 %v4169_v62  ;;  %v8635_v62 = vld [vmem:[#allocation135_spill] sm:$0xff] }
 0x4d4   : > { %v1996_v12 = vadd.f32 %v1995_v5, %v1994_v8  ;;  %v8637_v8 = vld [vmem:[#allocation191_spill] sm:$0xff]  ;;  %v8638_v5 = vld [vmem:[#allocation136_spill] sm:$0xff] }
 0x4dd   : > { %v4714_v29 = vpop.eup %4713 }
 0x4de   : > { %v1990_v22 = vadd.f32 1.0, %v4714_v29  ;;  %v8639_v29 = vld [vmem:[#allocation137_spill] sm:$0xff] }
 0x4e0   : > { %4715 = vrcp.f32 %v1990_v22  ;;  %v8640_v22 = vld [vmem:[#allocation138_spill] sm:$0xff] }
 0x4e1   : > { %4717 = vtanh.f32 %v1996_v12  ;;  %v8641_v12 = vld [vmem:[#allocation140_spill] sm:$0xff] }
 0x4ea   : > { %v4716_v56 = vpop.eup %4715 }
 0x4eb   : > { %v1998_v42 = vsub.f32 1.0, %v4716_v56  ;;  %v4718_v39 = vpop.eup %4717  ;;  %v2000_v4 = vmul.f32 %v4716_v56, %v6542_v53  ;;  %v8642_v56 = vld [vmem:[#allocation141_spill] sm:$0xff] }
 0x4ed   : > { %v1999_v26 = vmul.f32 %v4718_v39, %v1998_v42  ;;  %v8644_v42 = vld [vmem:[#allocation145_spill] sm:$0xff]  ;;  %v8646_v39 = vld [vmem:[#allocation148_spill] sm:$0xff] }
 0x4ef   : > { %v2001_v0 = vadd.f32 %v2000_v4, %v1999_v26  ;;  %v8647_v26 = vld [vmem:[#allocation150_spill] sm:$0xff]  ;;  %v8648_v4 = vld [vmem:[#allocation152_spill] sm:$0xff] }
 0x4f1   : > { %v6660_v38 = vsel %vm2011_vm4, %v2001_v0, %v6542_v53  ;;  %v8618_v53 = vld [vmem:[#allocation163_spill] sm:$0xff]  ;;  %v8649_v0 = vld [vmem:[#allocation154_spill] sm:$0xff] }
 0x4f2   : > { %v2014_v49 = vpack.c.bf16 %v6660_v38, %v6660_v38 }
 0x4f4   : > { %2047 = vmatprep.mubr.bf16.mxu0 %v2014_v49  ;;  %2088 = vmatprep.mubr.bf16.mxu1 %v2014_v49 }
 0x4f5   : > { %2048 = vmatmul.mubr.bf16.vlgmr.msra.gmra.mrb[12].mxu0 %v6666_v30  ;;  %2089 = vmatmul.mubr.bf16.vlgmr.msra.gmra.mrb[12].mxu1 %v6666_v30 }
 0x4f6   : > { %2098 = vmatpush1.bf16.msra.mxu0 %v6297_v47  ;;  %2129 = vmatprep.mubr.bf16.mxu0 %v2014_v49  ;;  %v8650_v49 = vld [vmem:[#allocation156_spill] sm:$0xff] }
 0x4f7   : > { %2099 = vmatprep.subr.bf16.mxu0 %v8556_v41  ;;  %2214 = vmatpush1.bf16.msra.mxu1 %v8557_v25  ;;  %v8619_v25 = vld [vmem:[#allocation206_spill] sm:$0xff] }
 0x4f8   : > { %2215 = vmatprep.subr.bf16.mxu1 %v5969_v3  ;;  %v8612_v3 = vld [vmem:[#allocation151_spill] sm:$0xff] }
 0x4fa   : > { %2100 = vmatpush1.bf16.msra.mxu0 %v8558_v63 }
 0x4fb   : > { %2101 = vmatprep.subr.bf16.mxu0 %v6316_v7  ;;  %2216 = vmatpush1.bf16.msra.mxu1 %v8559_v16  ;;  %v8620_v16 = vld [vmem:[#allocation167_spill] sm:$0xff] }
 0x4fc   : > { %2217 = vmatprep.subr.bf16.mxu1 %v5988_v18  ;;  %v8613_v18 = vld [vmem:[#allocation200_spill] sm:$0xff] }
 0x4fe   : > { %2102 = vmatpush1.bf16.msra.mxu0 %v8560_v9 }
 0x4ff   : > { %2103 = vmatprep.subr.bf16.mxu0 %v6330_v28  ;;  %2218 = vmatpush1.bf16.msra.mxu1 %v8561_v40  ;;  %v8622_v40 = vld [vmem:[#allocation209_spill] sm:$0xff] }
 0x500   : > { %2219 = vmatprep.subr.bf16.mxu1 %v6013_v55  ;;  %v8614_v55 = vld [vmem:[#allocation155_spill] sm:$0xff] }
 0x502   : > { %2104 = vmatpush1.bf16.msra.mxu0 %v8562_v13 }
 0x503   : > { %2105 = vmatprep.subr.bf16.mxu0 %v6342_v20  ;;  %2220 = vmatpush1.bf16.msra.mxu1 %v8563_v52  ;;  %v8624_v52 = vld [vmem:[#allocation176_spill] sm:$0xff] }
 0x504   : > { %2221 = vmatprep.subr.bf16.mxu1 %v6035_v58  ;;  %v8615_v58 = vld [vmem:[#allocation202_spill] sm:$0xff] }
 0x506   : > { %2106 = vmatpush1.bf16.msra.mxu0 %v8564_v19 }
 0x507   : > { %2107 = vmatprep.subr.bf16.mxu0 %v6354_v21  ;;  %2222 = vmatpush1.bf16.msra.mxu1 %v8565_v27  ;;  %v8625_v27 = vld [vmem:[#allocation178_spill] sm:$0xff] }
 0x508   : > { %2223 = vmatprep.subr.bf16.mxu1 %v6059_v31  ;;  %v8616_v31 = vld [vmem:[#allocation159_spill] sm:$0xff] }
 0x50a   : > { %2108 = vmatpush1.bf16.msra.mxu0 %v8566_v44 }
 0x50b   : > { %2109 = vmatprep.subr.bf16.mxu0 %v6366_v15  ;;  %2224 = vmatpush1.bf16.msra.mxu1 %v8567_v11  ;;  %v8626_v11 = vld [vmem:[#allocation211_spill] sm:$0xff] }
 0x50c   : > { %2225 = vmatprep.subr.bf16.mxu1 %v8612_v3  ;;  %v8652_v3 = vld [vmem:[#allocation160_spill] sm:$0xff] }
 0x50e   : > { %2110 = vmatpush1.bf16.msra.mxu0 %v8568_v51 }
 0x50f   : > { %2111 = vmatprep.subr.bf16.mxu0 %v8613_v18  ;;  %2226 = vmatpush1.bf16.msra.mxu1 %v8569_v57  ;;  %v8629_v57 = vld [vmem:[#allocation182_spill] sm:$0xff] }
 0x510   : > { %2227 = vmatprep.subr.bf16.mxu1 %v8614_v55  ;;  %v8653_v55 = vld [vmem:[#allocation162_spill] sm:$0xff] }
 0x512   : > { %2112 = vmatpush1.bf16.msra.mxu0 %v8570_v34 }
 0x513   : > { %2113 = vmatprep.subr.bf16.mxu0 %v8615_v58  ;;  %2228 = vmatpush1.bf16.msra.mxu1 %v8571_v59  ;;  %v8630_v59 = vld [vmem:[#allocation213_spill] sm:$0xff] }
 0x514   : > { %2229 = vmatprep.subr.bf16.mxu1 %v8616_v31  ;;  %v8654_v31 = vld [vmem:[#allocation164_spill] sm:$0xff] }
 0x516   : > { %2114 = vmatpush1.bf16.msra.mxu0 %v8572_v32 }
 0x517   : > { %2115 = vmatprep.subr.bf16.mxu0 %v8617_v1  ;;  %2230 = vmatpush1.bf16.msra.mxu1 %v8573_v17  ;;  %v8621_v17 = vld [vmem:[#allocation174_spill] sm:$0xff] }
 0x518   : > { %2231 = vmatprep.subr.bf16.mxu1 %v8618_v53  ;;  %v8655_v53 = vld [vmem:[#allocation166_spill] sm:$0xff] }
 0x51a   : > { %2116 = vmatpush1.bf16.msra.mxu0 %v8574_v10 }
 0x51b   : > { %2117 = vmatprep.subr.bf16.mxu0 %v8619_v25  ;;  %2232 = vmatpush1.bf16.msra.mxu1 %v8575_v50  ;;  %v8623_v50 = vld [vmem:[#allocation210_spill] sm:$0xff] }
 0x51c   : > { %2233 = vmatprep.subr.bf16.mxu1 %v8620_v16  ;;  %v8656_v16 = vld [vmem:[#allocation168_spill] sm:$0xff] }
 0x51e   : > { %2118 = vmatpush1.bf16.msra.mxu0 %v8576_v37 }
 0x51f   : > { %2119 = vmatprep.subr.bf16.mxu0 %v6426_v6  ;;  %2234 = vmatpush1.bf16.msra.mxu1 %v8577_v54  ;;  %v8627_v54 = vld [vmem:[#allocation212_spill] sm:$0xff] }
 0x520   : > { %2235 = vmatprep.subr.bf16.mxu1 %v6181_v36  ;;  %v8628_v36 = vld [vmem:[#allocation180_spill] sm:$0xff] }
 0x522   : > { %2120 = vmatpush1.bf16.msra.mxu0 %v8578_v43 }
 0x523   : > { %2121 = vmatprep.subr.bf16.mxu0 %v6438_v14  ;;  %2236 = vmatpush1.bf16.msra.mxu1 %v8579_v48  ;;  %v8631_v48 = vld [vmem:[#allocation214_spill] sm:$0xff] }
 0x524   : > { %2237 = vmatprep.subr.bf16.mxu1 %v8621_v17  ;;  %v8657_v17 = vld [vmem:[#allocation170_spill] sm:$0xff] }
 0x526   : > { %2122 = vmatpush1.bf16.msra.mxu0 %v8622_v40 }
 0x527   : > { %2123 = vmatprep.subr.bf16.mxu0 %v8623_v50  ;;  %2238 = vmatpush1.bf16.msra.mxu1 %v8624_v52  ;;  %v8658_v52 = vld [vmem:[#allocation171_spill] sm:$0xff] }
 0x528   : > { %2239 = vmatprep.subr.bf16.mxu1 %v8625_v27  ;;  %v8659_v27 = vld [vmem:[#allocation173_spill] sm:$0xff] }
 0x52a   : > { %2124 = vmatpush1.bf16.msra.mxu0 %v8626_v11 }
 0x52b   : > { %2125 = vmatprep.subr.bf16.mxu0 %v8627_v54  ;;  %2240 = vmatpush1.bf16.msra.mxu1 %v8628_v36  ;;  %v8660_v36 = vld [vmem:[#allocation175_spill] sm:$0xff] }
 0x52c   : > { %2241 = vmatprep.subr.bf16.mxu1 %v8629_v57  ;;  %v8661_v57 = vld [vmem:[#allocation177_spill] sm:$0xff] }
 0x52e   : > { %2126 = vmatpush1.bf16.msra.mxu0 %v8630_v59 }
 0x52f   : > { %2127 = vmatprep.subr.bf16.mxu0 %v8631_v48  ;;  %2242 = vmatpush1.bf16.msra.mxu1 %v8632_v33  ;;  %v8662_v33 = vld [vmem:[#allocation179_spill] sm:$0xff] }
 0x530   : > { %2243 = vmatprep.subr.bf16.mxu1 %v8633_v46  ;;  %v8663_v46 = vld [vmem:[#allocation181_spill] sm:$0xff] }
 0x532   : > { %2128 = vmatpush1.bf16.msra.mxu0 %v8634_v24 }
 0x533   : > { %2254 = vmatprep.subr.bf16.mxu0 %v8635_v62  ;;  %2244 = vmatpush1.bf16.msra.mxu1 %v8636_v45  ;;  %v8664_v62 = vld [vmem:[#allocation183_spill] sm:$0xff]  ;;  %v8665_v45 = vld [vmem:[#allocation185_spill] sm:$0xff] }
 0x534   : > { %2295 = vmatprep.subr.bf16.mxu1 %v8637_v8  ;;  %v8666_v8 = vld [vmem:[#allocation187_spill] sm:$0xff] }
 0x535   : > { %2130 = vmatmul.mubr.bf16.vlgmr.msra.gmra.mrb[16].mxu0 %v6666_v30  ;;  %v8651_v30 = vld [vmem:[#allocation158_spill] sm:$0xff] }
 0x536   : > { %2255 = vmatpush1.bf16.msra.mxu0 %v8638_v5  ;;  %v8667_v5 = vld [vmem:[#allocation190_spill] sm:$0xff] }
 0x537   : > { %2256 = vmatprep.subr.bf16.mxu0 %v8639_v29  ;;  %v8668_v29 = vld [vmem:[#allocation192_spill] sm:$0xff] }
 0x53a   : > { %2257 = vmatpush1.bf16.msra.mxu0 %v8640_v22  ;;  %v2139_v22 = vld [vmem:[#allocation2 + $0x18] sm:$0xff] }
 0x53b   : > { %2258 = vmatprep.subr.bf16.mxu0 %v8641_v12  ;;  %v2153_v12 = vrot.slane %v2139_v22, 4 }
 0x53e   : > { %2259 = vmatpush1.bf16.msra.mxu0 %v8642_v56  ;;  %v2144_v56 = vunpack.c.l.bf16 %v2139_v22 }
 0x53f   : > { %2260 = vmatprep.subr.bf16.mxu0 %v8643_v2 }
 0x542   : > { %2261 = vmatpush1.bf16.msra.mxu0 %v8644_v42 }
 0x543   : > { %2262 = vmatprep.subr.bf16.mxu0 %v8645_v23  ;;  %v2155_v23 = vunpack.c.l.bf16 %v2153_v12 }
 0x546   : > { %2263 = vmatpush1.bf16.msra.mxu0 %v8646_v39 }
 0x547   : > { %2264 = vmatprep.subr.bf16.mxu0 %v8647_v26 }
 0x54a   : > { %2265 = vmatpush1.bf16.msra.mxu0 %v8648_v4 }
 0x54b   : > { %2266 = vmatprep.subr.bf16.mxu0 %v8649_v0 }
 0x54e   : > { %2267 = vmatpush1.bf16.msra.mxu0 %v8650_v49 }
 0x54f   : > { %2268 = vmatprep.subr.bf16.mxu0 %v8651_v30 }
 0x552   : > { %2269 = vmatpush1.bf16.msra.mxu0 %v8652_v3 }
 0x553   : > { %2270 = vmatprep.subr.bf16.mxu0 %v8653_v55 }
 0x556   : > { %2271 = vmatpush1.bf16.msra.mxu0 %v8654_v31 }
 0x557   : > { %2272 = vmatprep.subr.bf16.mxu0 %v8655_v53 }
 0x55a   : > { %2273 = vmatpush1.bf16.msra.mxu0 %v8656_v16 }
 0x55b   : > { %2274 = vmatprep.subr.bf16.mxu0 %v8657_v17 }
 0x55e   : > { %2275 = vmatpush1.bf16.msra.mxu0 %v8658_v52 }
 0x55f   : > { %2276 = vmatprep.subr.bf16.mxu0 %v8659_v27  ;;  %v6766_v27 = vld [vmem:[#allocation2 + $0x20] ss:$12 sps:$4 sm:$0xff]  }
 0x562   : > { %2277 = vmatpush1.bf16.msra.mxu0 %v8660_v36 }
 0x563   : > { %2278 = vmatprep.subr.bf16.mxu0 %v8661_v57  ;;  %v2142_v57 = vld [vmem:[#allocation3 + $0xc] sm:$0xff] }
 0x566   : > { %2279 = vmatpush1.bf16.msra.mxu0 %v8662_v33 }
 0x567   : > { %2280 = vmatprep.subr.bf16.mxu0 %v8663_v46  ;;  %v2165_v46 = vunpack.c.l.bf16 %v6766_v27 }
 0x56a   : > { %2281 = vmatpush1.bf16.msra.mxu0 %v8664_v62 }
 0x56b   : > { %2282 = vmatprep.subr.bf16.mxu0 %v8665_v45  ;;  %v2172_v45 = vunpack.c.l.bf16 %v2142_v57 }
 0x56e   : > { %2283 = vmatpush1.bf16.msra.mxu0 %v8666_v8 }
 0x56f   : > { %2284 = vmatprep.subr.bf16.mxu0 %v8667_v5 }
 0x572   : > { %2285 = vmatpush1.bf16.msra.mxu0 %v8668_v29 }
 0x5c8   : > { %v2049_v2 = vpop.f32.mrb[12].mxu0  ;;  %v2090_v42 = vpop.f32.mrb[12].mxu1 }
 0x5c9   : > { %v2145_v39 = vadd.f32 %v2144_v56, %v2049_v2  ;;  %v2051_v26 = vpop.f32.mrb[13].mxu0  ;;  %v2092_v4 = vpop.f32.mrb[13].mxu1  ;;  %v2163_v33 = vadd.f32 %v8610_v61, %v2090_v42 }
 0x5ca   : > { %v2053_v0 = vpop.f32.mrb[14].mxu0  ;;  %v2094_v49 = vpop.f32.mrb[14].mxu1  ;;  %v2156_v31 = vadd.f32 %v2155_v23, %v2051_v26  ;;  %v2173_v29 = vadd.f32 %v2172_v45, %v2092_v4 }
 0x5cb   : > { %v4170_v30 = vmul.f32 -1.442695, %v2145_v39  ;;  %v2054_v3 = vpop.f32.mrb[15].mxu0  ;;  %v2095_v55 = vpop.f32.mrb[15].mxu1  ;;  %v2181_v49 = vrot.slane %v2142_v57, 4 }
 0x5cc   : > { %v4171_v53 = vmul.f32 -1.442695, %v2156_v31  ;;  %v4172_v22 = vmul.f32 -1.442695, %v2173_v29 }
 0x5cd   : > { %4719 = vpow2.f32 %v4170_v30  ;;  %v2183_v30 = vunpack.c.l.bf16 %v2181_v49 }
 0x5ce   : > { %4721 = vpow2.f32 %v4171_v53 }
 0x5d7   : > { %v4720_v16 = vpop.eup %4719 }
 0x5d8   : > { %v2149_v17 = vadd.f32 1.0, %v4720_v16  ;;  %v4722_v52 = vpop.eup %4721 }
 0x5d9   : > { %v2160_v36 = vadd.f32 1.0, %v4722_v52 }
 0x5da   : > { %4723 = vrcp.f32 %v2149_v17 }
 0x5db   : > { %4725 = vrcp.f32 %v2160_v36 }
 0x5e4   : > { %v4724_v62 = vpop.eup %4723 }
 0x5e5   : > { %v2164_v8 = vmul.f32 %v4724_v62, %v2163_v33  ;;  %v4726_v12 = vpop.eup %4725  ;;  %v6772_v33 = vld [vmem:[#allocation3 + $0x8] ss:$12 sps:$4 sm:$0xff]  }
 0x5e6   : > { %v2168_v56 = vsub.f32 1.0, %v4726_v12  ;;  %v2170_v23 = vmul.f32 %v4726_v12, %v6657_v35 }
 0x5e7   : > { %v2166_v5 = vadd.f32 %v2165_v46, %v2164_v8  ;;  %v2193_v46 = vunpack.c.h.bf16 %v6772_v33 }
 0x5e9   : > { %4727 = vtanh.f32 %v2166_v5  ;;  %v2203_v5 = vstv %s2202_s14 }
 0x5ea   : > { %4729 = vpow2.f32 %v4172_v22  ;;  %v2208_v22 = vstv %s2207_s19  ;;  %vm2204_vm5 = vcmp.eq.s32.totalorder %v2203_v5, 1 }
 0x5eb   : > { %vm2209_vm6 = vcmp.eq.s32.totalorder %v2208_v22, 1 }
 0x5f3   : > { %v4728_v2 = vpop.eup %4727 }
 0x5f4   : > { %v2169_v39 = vmul.f32 %v4728_v2, %v2168_v56  ;;  %v4730_v0 = vpop.eup %4729 }
 0x5f5   : > { %v2177_v42 = vadd.f32 1.0, %v4730_v0 }
 0x5f6   : > { %v2171_v26 = vadd.f32 %v2170_v23, %v2169_v39 }
 0x5f7   : > { %4731 = vrcp.f32 %v2177_v42 }
 0x5f8   : > { %v6778_v39 = vsel %vm2204_vm5, %v2171_v26, %v6657_v35  ;;  %v2339_v35 = vld [vmem:[#allocation3] sm:$0xff] }
 0x5f9   : > { %v2211_v49 = vpack.c.bf16 %v6778_v39, %v6778_v39 }
 0x601   : > { %v4732_v16 = vpop.eup %4731 }
 0x608   : > { %v2131_v3 = vpop.f32.mrb[16].mxu0 }
 0x609   : > { %v2184_v55 = vadd.f32 %v2183_v30, %v2131_v3  ;;  %v2133_v31 = vpop.f32.mrb[17].mxu0 }
 0x60a   : > { %v2191_v4 = vadd.f32 %v8554_v60, %v2133_v31  ;;  %v2135_v53 = vpop.f32.mrb[18].mxu0  ;;  %v2378_v31 = vrot.slane %v2339_v35, 4 }
 0x60b   : > { %v4173_v17 = vmul.f32 -1.442695, %v2184_v55  ;;  %v2136_v52 = vpop.f32.mrb[19].mxu0 }
 0x60c   : > { %v2192_v36 = vmul.f32 %v4732_v16, %v2191_v4  ;;  %v2380_v4 = vunpack.c.l.bf16 %v2378_v31 }
 0x60d   : > { %4733 = vpow2.f32 %v4173_v17 }
 0x60e   : > { %v2194_v57 = vadd.f32 %v2193_v46, %v2192_v36 }
 0x617   : > { %v4734_v62 = vpop.eup %4733 }
 0x618   : > { %v2188_v45 = vadd.f32 1.0, %v4734_v62 }
 0x61a   : > { %4735 = vrcp.f32 %v2188_v45 }
 0x61b   : > { %4737 = vtanh.f32 %v2194_v57 }
 0x624   : > { %v4736_v8 = vpop.eup %4735 }
 0x625   : > { %v2196_v29 = vsub.f32 1.0, %v4736_v8  ;;  %v4738_v12 = vpop.eup %4737  ;;  %v2198_v2 = vmul.f32 %v4736_v8, %v6660_v38  ;;  %v2390_v8 = vunpack.c.l.bf16 %v6772_v33 }
 0x627   : > { %v2197_v56 = vmul.f32 %v4738_v12, %v2196_v29 }
 0x629   : > { %v2199_v23 = vadd.f32 %v2198_v2, %v2197_v56  ;;  %v2405_v56 = vstv %s2404_s17 }
 0x62a   : > { %vm2406_vm8 = vcmp.eq.s32.totalorder %v2405_v56, 1 }
 0x62b   : > { %v6781_v0 = vsel %vm2209_vm6, %v2199_v23, %v6660_v38 }
 0x62c   : > { %v2212_v42 = vpack.c.bf16 %v6781_v0, %v6781_v0 }
 0x62e   : > { %2245 = vmatprep.mubr.bf16.mxu1 %v2212_v42  ;;  %2286 = vmatprep.mubr.bf16.mxu0 %v2212_v42 }
 0x62f   : > { %2246 = vmatmul.mubr.bf16.vlgmr.msra.gmra.mrb[16].mxu1 %v2211_v49  ;;  %2287 = vmatmul.mubr.bf16.vlgmr.msra.gmra.mrb[20].mxu0 %v2211_v49 }
 0x630   : > { %2296 = vmatpush1.bf16.msra.mxu1 %v6297_v47  ;;  %2327 = vmatprep.mubr.bf16.mxu1 %v2212_v42 }
 0x631   : > { %2297 = vmatprep.subr.bf16.mxu1 %v8556_v41 }
 0x634   : > { %2298 = vmatpush1.bf16.msra.mxu1 %v8558_v63 }
 0x635   : > { %2299 = vmatprep.subr.bf16.mxu1 %v6316_v7 }
 0x638   : > { %2300 = vmatpush1.bf16.msra.mxu1 %v8560_v9 }
 0x639   : > { %2301 = vmatprep.subr.bf16.mxu1 %v6330_v28 }
 0x63c   : > { %2302 = vmatpush1.bf16.msra.mxu1 %v8562_v13 }
 0x63d   : > { %2303 = vmatprep.subr.bf16.mxu1 %v6342_v20 }
 0x640   : > { %2304 = vmatpush1.bf16.msra.mxu1 %v8564_v19 }
 0x641   : > { %2305 = vmatprep.subr.bf16.mxu1 %v6354_v21 }
 0x644   : > { %2306 = vmatpush1.bf16.msra.mxu1 %v8566_v44 }
 0x645   : > { %2307 = vmatprep.subr.bf16.mxu1 %v6366_v15  ;;  %v2337_v15 = vld [vmem:[#allocation2 + $0x24] sm:$0xff] }
 0x648   : > { %2308 = vmatpush1.bf16.msra.mxu1 %v8568_v51 }
 0x649   : > { %2309 = vmatprep.subr.bf16.mxu1 %v8613_v18  ;;  %v2362_v18 = vunpack.c.h.bf16 %v6766_v27 }
 0x64c   : > { %2310 = vmatpush1.bf16.msra.mxu1 %v8570_v34 }
 0x64d   : > { %2311 = vmatprep.subr.bf16.mxu1 %v8615_v58 }
 0x650   : > { %2312 = vmatpush1.bf16.msra.mxu1 %v8572_v32 }
 0x651   : > { %2313 = vmatprep.subr.bf16.mxu1 %v8617_v1  ;;  %v2369_v1 = vunpack.c.l.bf16 %v2339_v35 }
 0x654   : > { %2314 = vmatpush1.bf16.msra.mxu1 %v8574_v10  ;;  %v2350_v10 = vrot.slane %v2337_v15, 4 }
 0x655   : > { %2315 = vmatprep.subr.bf16.mxu1 %v8619_v25 }
 0x658   : > { %2316 = vmatpush1.bf16.msra.mxu1 %v8576_v37  ;;  %v2341_v37 = vunpack.c.l.bf16 %v2337_v15 }
 0x659   : > { %2317 = vmatprep.subr.bf16.mxu1 %v6426_v6 }
 0x65c   : > { %2318 = vmatpush1.bf16.msra.mxu1 %v8578_v43 }
 0x65d   : > { %2319 = vmatprep.subr.bf16.mxu1 %v6438_v14  ;;  %v2352_v14 = vunpack.c.l.bf16 %v2350_v10 }
 0x660   : > { %2320 = vmatpush1.bf16.msra.mxu1 %v8622_v40 }
 0x661   : > { %2321 = vmatprep.subr.bf16.mxu1 %v8623_v50 }
 0x664   : > { %2322 = vmatpush1.bf16.msra.mxu1 %v8626_v11 }
 0x665   : > { %2323 = vmatprep.subr.bf16.mxu1 %v8627_v54 }
 0x668   : > { %2324 = vmatpush1.bf16.msra.mxu1 %v8630_v59  ;;  %v2400_v59 = vstv %s2399_s16 }
 0x669   : > { %2325 = vmatprep.subr.bf16.mxu1 %v8631_v48  ;;  %vm2401_vm7 = vcmp.eq.s32.totalorder %v2400_v59, 1 }
 0x66c   : > { %2326 = vmatpush1.bf16.msra.mxu1 %v8634_v24 }
 0x66f   : > { %2328 = vmatmul.mubr.bf16.vlgmr.msra.gmra.mrb[20].mxu1 %v2211_v49 }
 0x702   : > { %v2247_v43 = vpop.f32.mrb[16].mxu1  ;;  %v2288_v6 = vpop.f32.mrb[20].mxu0 }
 0x703   : > { %v2342_v28 = vadd.f32 %v2341_v37, %v2247_v43  ;;  %v2249_v47 = vpop.f32.mrb[17].mxu1  ;;  %v2290_v20 = vpop.f32.mrb[21].mxu0  ;;  %v2360_v38 = vadd.f32 %v8610_v61, %v2288_v6 }
 0x704   : > { %v2251_v7 = vpop.f32.mrb[18].mxu1  ;;  %v2292_v21 = vpop.f32.mrb[22].mxu0  ;;  %v2353_v13 = vadd.f32 %v2352_v14, %v2249_v47  ;;  %v2370_v50 = vadd.f32 %v2369_v1, %v2290_v20 }
 0x705   : > { %v4174_v41 = vmul.f32 -1.442695, %v2342_v28  ;;  %v2252_v63 = vpop.f32.mrb[19].mxu1  ;;  %v2293_v9 = vpop.f32.mrb[23].mxu0 }
 0x706   : > { %v4175_v19 = vmul.f32 -1.442695, %v2353_v13  ;;  %v4176_v11 = vmul.f32 -1.442695, %v2370_v50 }
 0x707   : > { %4739 = vpow2.f32 %v4174_v41 }
 0x708   : > { %4741 = vpow2.f32 %v4175_v19 }
 0x711   : > { %v4740_v44 = vpop.eup %4739 }
 0x712   : > { %v2346_v51 = vadd.f32 1.0, %v4740_v44  ;;  %v4742_v34 = vpop.eup %4741 }
 0x713   : > { %v2357_v32 = vadd.f32 1.0, %v4742_v34 }
 0x714   : > { %4743 = vrcp.f32 %v2346_v51 }
 0x715   : > { %4745 = vrcp.f32 %v2357_v32 }
 0x71e   : > { %v4744_v58 = vpop.eup %4743 }
 0x71f   : > { %v2361_v25 = vmul.f32 %v4744_v58, %v2360_v38  ;;  %v4746_v54 = vpop.eup %4745 }
 0x720   : > { %v2365_v48 = vsub.f32 1.0, %v4746_v54  ;;  %v2367_v27 = vmul.f32 %v4746_v54, %v6778_v39 }
 0x721   : > { %v2363_v40 = vadd.f32 %v2362_v18, %v2361_v25 }
 0x723   : > { %4747 = vtanh.f32 %v2363_v40 }
 0x724   : > { %4749 = vpow2.f32 %v4176_v11 }
 0x72d   : > { %v4748_v24 = vpop.eup %4747 }
 0x72e   : > { %v2366_v61 = vmul.f32 %v4748_v24, %v2365_v48  ;;  %v4750_v3 = vpop.eup %4749 }
 0x72f   : > { %v2374_v55 = vadd.f32 1.0, %v4750_v3 }
 0x730   : > { %v2368_v26 = vadd.f32 %v2367_v27, %v2366_v61 }
 0x731   : > { %4751 = vrcp.f32 %v2374_v55 }
 0x732   : > { %v2402_v30 = vsel %vm2401_vm7, %v2368_v26, %v6778_v39 }
 0x733   : > { %2408 = vst [vmem:[#allocation4] sm:$0xff] %v2402_v30 }
 0x73b   : > { %v4752_v46 = vpop.eup %4751 }
 0x742   : > { %v2329_v53 = vpop.f32.mrb[20].mxu1 }
 0x743   : > { %v2381_v16 = vadd.f32 %v2380_v4, %v2329_v53  ;;  %v2331_v17 = vpop.f32.mrb[21].mxu1 }
 0x744   : > { %v2388_v52 = vadd.f32 %v8554_v60, %v2331_v17  ;;  %v2333_v36 = vpop.f32.mrb[22].mxu1 }
 0x745   : > { %v4177_v62 = vmul.f32 -1.442695, %v2381_v16  ;;  %v2334_v45 = vpop.f32.mrb[23].mxu1 }
 0x746   : > { %v2389_v57 = vmul.f32 %v4752_v46, %v2388_v52 }
 0x747   : > { %4753 = vpow2.f32 %v4177_v62 }
 0x748   : > { %v2391_v22 = vadd.f32 %v2390_v8, %v2389_v57 }
 0x751   : > { %v4754_v5 = vpop.eup %4753 }
 0x752   : > { %v2385_v29 = vadd.f32 1.0, %v4754_v5 }
 0x754   : > { %4755 = vrcp.f32 %v2385_v29 }
 0x755   : > { %4757 = vtanh.f32 %v2391_v22 }
 0x75e   : > { %v4756_v12 = vpop.eup %4755 }
 0x75f   : > { %v2393_v2 = vsub.f32 1.0, %v4756_v12  ;;  %v4758_v60 = vpop.eup %4757  ;;  %v2395_v23 = vmul.f32 %v4756_v12, %v6781_v0 }
 0x761   : > { %v2394_v39 = vmul.f32 %v4758_v60, %v2393_v2 }
 0x763   : > { %v2396_v42 = vadd.f32 %v2395_v23, %v2394_v39 }
 0x765   : > { %v2407_v49 = vsel %vm2406_vm8, %v2396_v42, %v6781_v0 }
 0x766   : > { %2409 = vst [vmem:[#allocation5] sm:$0xff] %v2407_v49 }
 0x767 PF: > { %2412 = sbr.rel (%p5763_p4) target bundleno = 3219 (0xc93), region = 116 }
 0x76e   : > { %v8669_v33 = vld [vmem:[#allocation37_spill] sm:$0xff]  ;;  %v8670_v15 = vld [vmem:[#allocation34_spill] sm:$0xff]  ;;  %v8673_v43 = vld [vmem:[#allocation43_spill] sm:$0xff] }
 0x76f   : > { %v6835_v10 = vcombine.high %v8670_v15, %v8669_v33  ;;  %v6839_v37 = vcombine.low %v8670_v15, %v8669_v33  ;;  %v8674_v6 = vld [vmem:[#allocation40_spill] sm:$0xff]  ;;  %v8676_v28 = vld [vmem:[#allocation38_spill] sm:$0xff]  ;;  %v8677_v47 = vld [vmem:[#allocation35_spill] sm:$0xff] }
 0x770   : > { %v6843_v14 = vcombine.high %v8674_v6, %v8673_v43  ;;  %v6849_v0 = vcombine.low %v8674_v6, %v8673_v43  ;;  %v6853_v20 = vcombine.high %v8677_v47, %v8676_v28  ;;  %v6857_v7 = vcombine.low %v8677_v47, %v8676_v28  ;;  %v8680_v21 = vld [vmem:[#allocation49_spill] sm:$0xff]  ;;  %v8681_v41 = vld [vmem:[#allocation46_spill] sm:$0xff]  ;;  %v8682_v9 = vld [vmem:[#allocation44_spill] sm:$0xff] }
 0x771   : > { %8671 = vst [vmem:[#allocation217_spill] sm:$0xff] %v6835_v10  ;;  %8672 = vst [vmem:[#allocation218_spill] sm:$0xff] %v6839_v37  ;;  %2897 = vmatprep.subr.bf16.mxu0 %v6835_v10  ;;  %v6862_v63 = vcombine.high %v8681_v41, %v8680_v21  ;;  %v8683_v13 = vld [vmem:[#allocation41_spill] sm:$0xff]  ;;  %v6877_v51 = vcombine.low %v8681_v41, %v8680_v21  ;;  %v8687_v34 = vld [vmem:[#allocation50_spill] sm:$0xff] }
 0x772   : > { %2898 = vmatpush1.bf16.msra.mxu0 %v6839_v37  ;;  %8675 = vst [vmem:[#allocation219_spill] sm:$0xff] %v6849_v0  ;;  %8678 = vst [vmem:[#allocation220_spill] sm:$0xff] %v6853_v20  ;;  %v6866_v19 = vcombine.high %v8683_v13, %v8682_v9  ;;  %2938 = vmatprep.subr.bf16.mxu1 %v6853_v20  ;;  %v6872_v44 = vcombine.low %v8683_v13, %v8682_v9  ;;  %v8688_v32 = vld [vmem:[#allocation47_spill] sm:$0xff]  ;;  %v8691_v18 = vld [vmem:[#allocation52_spill] sm:$0xff] }
 0x773   : > { %8679 = vst [vmem:[#allocation221_spill] sm:$0xff] %v6857_v7  ;;  %2899 = vmatprep.subr.bf16.mxu0 %v6843_v14  ;;  %2939 = vmatpush1.bf16.msra.mxu1 %v6857_v7  ;;  %8686 = vst [vmem:[#allocation224_spill] sm:$0xff] %v6877_v51  ;;  %v6882_v35 = vcombine.high %v8688_v32, %v8687_v34  ;;  %v8690_v38 = vld [vmem:[#allocation55_spill] sm:$0xff]  ;;  %v6892_v1 = vcombine.low %v8688_v32, %v8687_v34  ;;  %v8695_v50 = vld [vmem:[#allocation56_spill] sm:$0xff] }
 0x774   : > { %8684 = vst [vmem:[#allocation222_spill] sm:$0xff] %v6866_v19  ;;  %8685 = vst [vmem:[#allocation223_spill] sm:$0xff] %v6872_v44  ;;  %2940 = vmatprep.subr.bf16.mxu1 %v6866_v19  ;;  %v6887_v58 = vcombine.high %v8691_v18, %v8690_v38  ;;  %v6894_v25 = vld [vmem:[#allocation5] sm:$0xff]  ;;  %v6899_v40 = vcombine.low %v8691_v18, %v8690_v38  ;;  %v8696_v11 = vld [vmem:[#allocation53_spill] sm:$0xff] }
 0x775   : > { %8689 = vst [vmem:[#allocation225_spill] sm:$0xff] %v6882_v35  ;;  %8692 = vst [vmem:[#allocation226_spill] sm:$0xff] %v6892_v1  ;;  %v6904_v54 = vcombine.high %v8696_v11, %v8695_v50  ;;  %v8698_v59 = vld [vmem:[#allocation61_spill] sm:$0xff]  ;;  %v8699_v48 = vld [vmem:[#allocation58_spill] sm:$0xff]  ;;  %v6913_v61 = vpack.c.bf16 %v6894_v25, %v6894_v25  ;;  %v6918_v27 = vcombine.low %v8696_v11, %v8695_v50 }
 0x776   : > { %2900 = vmatpush1.bf16.msra.mxu0 %v6849_v0  ;;  %8693 = vst [vmem:[#allocation227_spill] sm:$0xff] %v6894_v25  ;;  %8694 = vst [vmem:[#allocation228_spill] sm:$0xff] %v6899_v40  ;;  %v6909_v24 = vcombine.high %v8699_v48, %v8698_v59  ;;  %v6923_v26 = vcombine.low %v8699_v48, %v8698_v59  ;;  %v8702_v30 = vld [vmem:[#allocation62_spill] sm:$0xff]  ;;  %v8703_v3 = vld [vmem:[#allocation59_spill] sm:$0xff] }
 0x777   : > { %2901 = vmatprep.subr.bf16.mxu0 %v6862_v63  ;;  %2941 = vmatpush1.bf16.msra.mxu1 %v6872_v44  ;;  %8697 = vst [vmem:[#allocation229_spill] sm:$0xff] %v6904_v54  ;;  %8700 = vst [vmem:[#allocation230_spill] sm:$0xff] %v6918_v27  ;;  %v6928_v55 = vcombine.high %v8703_v3, %v8702_v30  ;;  %v8705_v31 = vld [vmem:[#allocation67_spill] sm:$0xff]  ;;  %v8706_v4 = vld [vmem:[#allocation64_spill] sm:$0xff]  ;;  %v6940_v16 = vcombine.low %v8703_v3, %v8702_v30 }
 0x778   : > { %2942 = vmatprep.subr.bf16.mxu1 %v6882_v35  ;;  %8701 = vst [vmem:[#allocation231_spill] sm:$0xff] %v6923_v26  ;;  %v6933_v53 = vcombine.high %v8706_v4, %v8705_v31  ;;  %2929 = vmatprep.mubr.bf16.mxu0 %v6913_v61  ;;  %v6945_v17 = vcombine.low %v8706_v4, %v8705_v31  ;;  %v8709_v52 = vld [vmem:[#allocation68_spill] sm:$0xff]  ;;  %v8710_v36 = vld [vmem:[#allocation65_spill] sm:$0xff]  ;;  %v8713_v45 = vld [vmem:[#allocation70_spill] sm:$0xff] }
 0x779   : > { %8704 = vst [vmem:[#allocation232_spill] sm:$0xff] %v6928_v55  ;;  %2970 = vmatprep.mubr.bf16.mxu1 %v6913_v61  ;;  %8707 = vst [vmem:[#allocation233_spill] sm:$0xff] %v6940_v16  ;;  %v6950_v46 = vcombine.high %v8710_v36, %v8709_v52  ;;  %v8712_v62 = vld [vmem:[#allocation73_spill] sm:$0xff]  ;;  %v6960_v8 = vcombine.low %v8710_v36, %v8709_v52  ;;  %v8717_v29 = vld [vmem:[#allocation74_spill] sm:$0xff] }
 0x77a   : > { %2902 = vmatpush1.bf16.msra.mxu0 %v6877_v51  ;;  %8708 = vst [vmem:[#allocation234_spill] sm:$0xff] %v6945_v17  ;;  %v6955_v57 = vcombine.high %v8713_v45, %v8712_v62  ;;  %v6965_v5 = vcombine.low %v8713_v45, %v8712_v62  ;;  %v8718_v22 = vld [vmem:[#allocation71_spill] sm:$0xff]  ;;  %v8721_v2 = vld [vmem:[#allocation76_spill] sm:$0xff]  ;;  %v8726_v49 = vld [vmem:[#allocation77_spill] sm:$0xff] }
 0x77b   : > { %2903 = vmatprep.subr.bf16.mxu0 %v6887_v58  ;;  %2943 = vmatpush1.bf16.msra.mxu1 %v6892_v1  ;;  %8711 = vst [vmem:[#allocation235_spill] sm:$0xff] %v6950_v46  ;;  %8715 = vst [vmem:[#allocation237_spill] sm:$0xff] %v6960_v8  ;;  %v6970_v12 = vcombine.high %v8718_v22, %v8717_v29  ;;  %v8720_v56 = vld [vmem:[#allocation79_spill] sm:$0xff]  ;;  %v6980_v23 = vcombine.low %v8718_v22, %v8717_v29  ;;  %v8725_v42 = vld [vmem:[#allocation80_spill] sm:$0xff] }
 0x77c   : > { %2944 = vmatprep.subr.bf16.mxu1 %v6904_v54  ;;  %8714 = vst [vmem:[#allocation236_spill] sm:$0xff] %v6955_v57  ;;  %8716 = vst [vmem:[#allocation238_spill] sm:$0xff] %v6965_v5  ;;  %v6975_v60 = vcombine.high %v8721_v2, %v8720_v56  ;;  %v6985_v39 = vcombine.low %v8721_v2, %v8720_v56  ;;  %v6990_v33 = vcombine.high %v8726_v49, %v8725_v42  ;;  %v8728_v15 = vld [vmem:[#allocation85_spill] sm:$0xff]  ;;  %v8729_v43 = vld [vmem:[#allocation82_spill] sm:$0xff] }
 0x77d   : > { %8719 = vst [vmem:[#allocation239_spill] sm:$0xff] %v6970_v12  ;;  %8723 = vst [vmem:[#allocation241_spill] sm:$0xff] %v6980_v23  ;;  %v6995_v6 = vcombine.high %v8729_v43, %v8728_v15  ;;  %v7000_v28 = vcombine.low %v8726_v49, %v8725_v42  ;;  %v7005_v47 = vcombine.low %v8729_v43, %v8728_v15  ;;  %v8733_v21 = vld [vmem:[#allocation86_spill] sm:$0xff]  ;;  %v8734_v41 = vld [vmem:[#allocation83_spill] sm:$0xff] }
 0x77e   : > { %2904 = vmatpush1.bf16.msra.mxu0 %v6899_v40  ;;  %8722 = vst [vmem:[#allocation240_spill] sm:$0xff] %v6975_v60  ;;  %8724 = vst [vmem:[#allocation242_spill] sm:$0xff] %v6985_v39  ;;  %v7010_v9 = vcombine.high %v8734_v41, %v8733_v21  ;;  %v8736_v13 = vld [vmem:[#allocation91_spill] sm:$0xff]  ;;  %v8737_v34 = vld [vmem:[#allocation88_spill] sm:$0xff]  ;;  %v7020_v38 = vcombine.low %v8734_v41, %v8733_v21 }
 0x77f   : > { %2905 = vmatprep.subr.bf16.mxu0 %v6909_v24  ;;  %2945 = vmatpush1.bf16.msra.mxu1 %v6918_v27  ;;  %8727 = vst [vmem:[#allocation243_spill] sm:$0xff] %v6990_v33  ;;  %8730 = vst [vmem:[#allocation244_spill] sm:$0xff] %v6995_v6  ;;  %v7015_v32 = vcombine.high %v8737_v34, %v8736_v13  ;;  %v7025_v18 = vcombine.low %v8737_v34, %v8736_v13  ;;  %v8741_v50 = vld [vmem:[#allocation92_spill] sm:$0xff]  ;;  %v8742_v11 = vld [vmem:[#allocation89_spill] sm:$0xff] }
 0x780   : > { %2946 = vmatprep.subr.bf16.mxu1 %v6928_v55  ;;  %8731 = vst [vmem:[#allocation245_spill] sm:$0xff] %v7000_v28  ;;  %8732 = vst [vmem:[#allocation246_spill] sm:$0xff] %v7005_v47  ;;  %v7030_v59 = vcombine.high %v8742_v11, %v8741_v50  ;;  %v8744_v48 = vld [vmem:[#allocation97_spill] sm:$0xff]  ;;  %v8745_v30 = vld [vmem:[#allocation94_spill] sm:$0xff]  ;;  %v7040_v31 = vcombine.low %v8742_v11, %v8741_v50 }
 0x781   : > { %8735 = vst [vmem:[#allocation247_spill] sm:$0xff] %v7010_v9  ;;  %8738 = vst [vmem:[#allocation248_spill] sm:$0xff] %v7015_v32  ;;  %v7035_v3 = vcombine.high %v8745_v30, %v8744_v48  ;;  %v7045_v4 = vcombine.low %v8745_v30, %v8744_v48  ;;  %v8749_v52 = vld [vmem:[#allocation98_spill] sm:$0xff]  ;;  %v8750_v36 = vld [vmem:[#allocation95_spill] sm:$0xff] }
 0x782   : > { %2906 = vmatpush1.bf16.msra.mxu0 %v6923_v26  ;;  %8739 = vst [vmem:[#allocation249_spill] sm:$0xff] %v7020_v38  ;;  %8740 = vst [vmem:[#allocation250_spill] sm:$0xff] %v7025_v18  ;;  %v7050_v62 = vcombine.high %v8750_v36, %v8749_v52  ;;  %v8752_v45 = vld [vmem:[#allocation103_spill] sm:$0xff]  ;;  %v8753_v29 = vld [vmem:[#allocation100_spill] sm:$0xff]  ;;  %v7060_v56 = vcombine.low %v8750_v36, %v8749_v52 }
 0x783   : > { %2907 = vmatprep.subr.bf16.mxu0 %v6933_v53  ;;  %2947 = vmatpush1.bf16.msra.mxu1 %v6940_v16  ;;  %8743 = vst [vmem:[#allocation251_spill] sm:$0xff] %v7030_v59  ;;  %8746 = vst [vmem:[#allocation252_spill] sm:$0xff] %v7035_v3  ;;  %v7055_v22 = vcombine.high %v8753_v29, %v8752_v45  ;;  %v7065_v2 = vcombine.low %v8753_v29, %v8752_v45  ;;  %v8756_v42 = vld [vmem:[#allocation104_spill] sm:$0xff]  ;;  %v8757_v49 = vld [vmem:[#allocation101_spill] sm:$0xff] }
 0x784   : > { %2948 = vmatprep.subr.bf16.mxu1 %v6950_v46  ;;  %8747 = vst [vmem:[#allocation253_spill] sm:$0xff] %v7040_v31  ;;  %8748 = vst [vmem:[#allocation254_spill] sm:$0xff] %v7045_v4  ;;  %v7070_v15 = vcombine.high %v8757_v49, %v8756_v42  ;;  %v8759_v43 = vld [vmem:[#allocation109_spill] sm:$0xff]  ;;  %v8760_v21 = vld [vmem:[#allocation106_spill] sm:$0xff]  ;;  %v7080_v13 = vcombine.low %v8757_v49, %v8756_v42 }
 0x785   : > { %8751 = vst [vmem:[#allocation255_spill] sm:$0xff] %v7050_v62  ;;  %8754 = vst [vmem:[#allocation256_spill] sm:$0xff] %v7060_v56  ;;  %v7075_v41 = vcombine.high %v8760_v21, %v8759_v43  ;;  %v7085_v34 = vcombine.low %v8760_v21, %v8759_v43  ;;  %v8764_v50 = vld [vmem:[#allocation110_spill] sm:$0xff]  ;;  %v8765_v11 = vld [vmem:[#allocation107_spill] sm:$0xff] }
 0x786   : > { %2908 = vmatpush1.bf16.msra.mxu0 %v6945_v17  ;;  %8755 = vst [vmem:[#allocation257_spill] sm:$0xff] %v7065_v2  ;;  %8758 = vst [vmem:[#allocation258_spill] sm:$0xff] %v7070_v15  ;;  %v7090_v48 = vcombine.high %v8765_v11, %v8764_v50  ;;  %v8767_v30 = vld [vmem:[#allocation115_spill] sm:$0xff]  ;;  %v8768_v52 = vld [vmem:[#allocation112_spill] sm:$0xff]  ;;  %v7100_v45 = vcombine.low %v8765_v11, %v8764_v50 }
 0x787   : > { %2909 = vmatprep.subr.bf16.mxu0 %v6955_v57  ;;  %2949 = vmatpush1.bf16.msra.mxu1 %v6960_v8  ;;  %8761 = vst [vmem:[#allocation259_spill] sm:$0xff] %v7075_v41  ;;  %8762 = vst [vmem:[#allocation260_spill] sm:$0xff] %v7080_v13  ;;  %v7095_v36 = vcombine.high %v8768_v52, %v8767_v30  ;;  %v7105_v29 = vcombine.low %v8768_v52, %v8767_v30  ;;  %v8772_v42 = vld [vmem:[#allocation116_spill] sm:$0xff]  ;;  %v8773_v49 = vld [vmem:[#allocation113_spill] sm:$0xff] }
 0x788   : > { %2950 = vmatprep.subr.bf16.mxu1 %v6970_v12  ;;  %8763 = vst [vmem:[#allocation261_spill] sm:$0xff] %v7085_v34  ;;  %8766 = vst [vmem:[#allocation262_spill] sm:$0xff] %v7090_v48  ;;  %v7110_v43 = vcombine.high %v8773_v49, %v8772_v42  ;;  %v8775_v21 = vld [vmem:[#allocation121_spill] sm:$0xff]  ;;  %v8776_v25 = vld [vmem:[#allocation118_spill] sm:$0xff]  ;;  %v7120_v50 = vcombine.low %v8773_v49, %v8772_v42 }
 0x789   : > { %8769 = vst [vmem:[#allocation263_spill] sm:$0xff] %v7095_v36  ;;  %8770 = vst [vmem:[#allocation264_spill] sm:$0xff] %v7100_v45  ;;  %v7125_v11 = vcombine.low %v8776_v25, %v8775_v21  ;;  %v8780_v30 = vld [vmem:[#allocation122_spill] sm:$0xff]  ;;  %v8781_v52 = vld [vmem:[#allocation119_spill] sm:$0xff] }
 0x78a   : > { %2910 = vmatpush1.bf16.msra.mxu0 %v6965_v5  ;;  %8771 = vst [vmem:[#allocation265_spill] sm:$0xff] %v7105_v29  ;;  %8774 = vst [vmem:[#allocation266_spill] sm:$0xff] %v7110_v43  ;;  %v7140_v42 = vcombine.low %v8781_v52, %v8780_v30  ;;  %v7147_v49 = vld [vmem:[#allocation4] sm:$0xff] }
 0x78b   : > { %2911 = vmatprep.subr.bf16.mxu0 %v6975_v60  ;;  %2951 = vmatpush1.bf16.msra.mxu1 %v6980_v23  ;;  %8778 = vst [vmem:[#allocation268_spill] sm:$0xff] %v7120_v50  ;;  %8779 = vst [vmem:[#allocation269_spill] sm:$0xff] %v7125_v11 }
 0x78c   : > { %2952 = vmatprep.subr.bf16.mxu1 %v6990_v33  ;;  %8786 = vst [vmem:[#allocation272_spill] sm:$0xff] %v7140_v42  ;;  %8788 = vst [vmem:[#allocation274_spill] sm:$0xff] %v7147_v49 }
 0x78e   : > { %2912 = vmatpush1.bf16.msra.mxu0 %v6985_v39 }
 0x78f   : > { %2913 = vmatprep.subr.bf16.mxu0 %v6995_v6  ;;  %2953 = vmatpush1.bf16.msra.mxu1 %v7000_v28 }
 0x790   : > { %2954 = vmatprep.subr.bf16.mxu1 %v7010_v9 }
 0x792   : > { %2914 = vmatpush1.bf16.msra.mxu0 %v7005_v47 }
 0x793   : > { %2915 = vmatprep.subr.bf16.mxu0 %v7015_v32  ;;  %2955 = vmatpush1.bf16.msra.mxu1 %v7020_v38 }
 0x794   : > { %2956 = vmatprep.subr.bf16.mxu1 %v7030_v59  ;;  %v8797_v59 = vld [vmem:[#allocation42_spill] sm:$0xff] }
 0x796   : > { %2916 = vmatpush1.bf16.msra.mxu0 %v7025_v18 }
 0x797   : > { %2917 = vmatprep.subr.bf16.mxu0 %v7035_v3  ;;  %2957 = vmatpush1.bf16.msra.mxu1 %v7040_v31  ;;  %v8793_v31 = vld [vmem:[#allocation36_spill] sm:$0xff] }
 0x798   : > { %2958 = vmatprep.subr.bf16.mxu1 %v7050_v62 }
 0x79a   : > { %2918 = vmatpush1.bf16.msra.mxu0 %v7045_v4 }
 0x79b   : > { %2919 = vmatprep.subr.bf16.mxu0 %v7055_v22  ;;  %2959 = vmatpush1.bf16.msra.mxu1 %v7060_v56 }
 0x79c   : > { %2960 = vmatprep.subr.bf16.mxu1 %v7070_v15  ;;  %v8783_v15 = vld [vmem:[#allocation127_spill] sm:$0xff] }
 0x79e   : > { %2920 = vmatpush1.bf16.msra.mxu0 %v7065_v2 }
 0x79f   : > { %2921 = vmatprep.subr.bf16.mxu0 %v7075_v41  ;;  %2961 = vmatpush1.bf16.msra.mxu1 %v7080_v13  ;;  %v7115_v13 = vcombine.high %v8776_v25, %v8775_v21  ;;  %v8789_v21 = vld [vmem:[#allocation128_spill] sm:$0xff] }
 0x7a0   : > { %2962 = vmatprep.subr.bf16.mxu1 %v7090_v48  ;;  %v7130_v48 = vcombine.high %v8781_v52, %v8780_v30  ;;  %v7161_v52 = vpack.c.bf16 %v7147_v49, %v7147_v49 }
 0x7a1   : > { %8777 = vst [vmem:[#allocation267_spill] sm:$0xff] %v7115_v13 }
 0x7a2   : > { %2922 = vmatpush1.bf16.msra.mxu0 %v7085_v34  ;;  %8782 = vst [vmem:[#allocation270_spill] sm:$0xff] %v7130_v48 }
 0x7a3   : > { %2923 = vmatprep.subr.bf16.mxu0 %v7095_v36  ;;  %2963 = vmatpush1.bf16.msra.mxu1 %v7100_v45  ;;  %v8784_v45 = vld [vmem:[#allocation124_spill] sm:$0xff] }
 0x7a4   : > { %2964 = vmatprep.subr.bf16.mxu1 %v7110_v43  ;;  %v7135_v56 = vcombine.high %v8784_v45, %v8783_v15  ;;  %v7145_v25 = vcombine.low %v8784_v45, %v8783_v15  ;;  %v8790_v43 = vld [vmem:[#allocation125_spill] sm:$0xff] }
 0x7a5   : > { %v7152_v62 = vcombine.high %v8790_v43, %v8789_v21  ;;  %v7166_v15 = vcombine.low %v8790_v43, %v8789_v21 }
 0x7a6   : > { %2924 = vmatpush1.bf16.msra.mxu0 %v7105_v29  ;;  %8785 = vst [vmem:[#allocation271_spill] sm:$0xff] %v7135_v56  ;;  %8787 = vst [vmem:[#allocation273_spill] sm:$0xff] %v7145_v25 }
 0x7a7   : > { %2925 = vmatprep.subr.bf16.mxu0 %v7115_v13  ;;  %2965 = vmatpush1.bf16.msra.mxu1 %v7120_v50  ;;  %8791 = vst [vmem:[#allocation275_spill] sm:$0xff] %v7152_v62  ;;  %v8792_v50 = vld [vmem:[#allocation39_spill] sm:$0xff]  ;;  %8795 = vst [vmem:[#allocation277_spill] sm:$0xff] %v7166_v15 }
 0x7a8   : > { %2966 = vmatprep.subr.bf16.mxu1 %v7130_v48  ;;  %v7157_v30 = vcombine.high %v8793_v31, %v8792_v50  ;;  %v7171_v45 = vcombine.low %v8793_v31, %v8792_v50  ;;  %v8796_v48 = vld [vmem:[#allocation45_spill] sm:$0xff]  ;;  %v8800_v31 = vld [vmem:[#allocation51_spill] sm:$0xff]  ;;  %v8801_v50 = vld [vmem:[#allocation48_spill] sm:$0xff] }
 0x7a9   : > { %v7177_v49 = vcombine.high %v8797_v59, %v8796_v48  ;;  %v7184_v43 = vcombine.low %v8797_v59, %v8796_v48  ;;  %v7190_v21 = vcombine.high %v8801_v50, %v8800_v31  ;;  %v7198_v59 = vcombine.low %v8801_v50, %v8800_v31  ;;  %v8804_v48 = vld [vmem:[#allocation54_spill] sm:$0xff]  ;;  %v8806_v31 = vld [vmem:[#allocation63_spill] sm:$0xff]  ;;  %v8807_v50 = vld [vmem:[#allocation60_spill] sm:$0xff] }
 0x7aa   : > { %2926 = vmatpush1.bf16.msra.mxu0 %v7125_v11  ;;  %8794 = vst [vmem:[#allocation276_spill] sm:$0xff] %v7157_v30 }
 0x7ab   : > { %2927 = vmatprep.subr.bf16.mxu0 %v7135_v56  ;;  %2967 = vmatpush1.bf16.msra.mxu1 %v7140_v42  ;;  %8798 = vst [vmem:[#allocation278_spill] sm:$0xff] %v7177_v49  ;;  %8799 = vst [vmem:[#allocation279_spill] sm:$0xff] %v7184_v43 }
 0x7ac   : > { %2968 = vmatprep.subr.bf16.mxu1 %v7152_v62  ;;  %8802 = vst [vmem:[#allocation280_spill] sm:$0xff] %v7198_v59 }
 0x7ae   : > { %2928 = vmatpush1.bf16.msra.mxu0 %v7145_v25 }
 0x7af   : > { %2979 = vmatprep.subr.bf16.mxu0 %v7157_v30  ;;  %2969 = vmatpush1.bf16.msra.mxu1 %v7166_v15 }
 0x7b0   : > { %3083 = vmatprep.subr.bf16.mxu1 %v6835_v10 }
 0x7b1   : > { %2930 = vmatmul.mubr.bf16.vlgmr.msra.gmra.mrb[0].mxu0 %v7161_v52 }
 0x7b2   : > { %2980 = vmatpush1.bf16.msra.mxu0 %v7171_v45  ;;  %3011 = vmatprep.mubr.bf16.mxu0 %v6913_v61  ;;  %v8803_v61 = vld [vmem:[#allocation57_spill] sm:$0xff] }
 0x7b3   : > { %2981 = vmatprep.subr.bf16.mxu0 %v7177_v49  ;;  %2971 = vmatmul.mubr.bf16.vlgmr.msra.gmra.mrb[0].mxu1 %v7161_v52  ;;  %v7204_v49 = vcombine.high %v8804_v48, %v8803_v61 }
 0x7b4   : > { %3084 = vmatpush1.bf16.msra.mxu1 %v6839_v37  ;;  %v7210_v37 = vcombine.low %v8804_v48, %v8803_v61  ;;  %v8809_v61 = vld [vmem:[#allocation69_spill] sm:$0xff]  ;;  %v8810_v48 = vld [vmem:[#allocation66_spill] sm:$0xff] }
 0x7b5   : > { %3085 = vmatprep.subr.bf16.mxu1 %v6843_v14 }
 0x7b6   : > { %2982 = vmatpush1.bf16.msra.mxu0 %v7184_v43  ;;  %8805 = vst [vmem:[#allocation281_spill] sm:$0xff] %v7210_v37  ;;  %v7216_v43 = vcombine.high %v8807_v50, %v8806_v31 }
 0x7b7   : > { %2983 = vmatprep.subr.bf16.mxu0 %v7190_v21 }
 0x7b8   : > { %3086 = vmatpush1.bf16.msra.mxu1 %v6849_v0  ;;  %v7222_v0 = vcombine.low %v8807_v50, %v8806_v31  ;;  %v8812_v31 = vld [vmem:[#allocation75_spill] sm:$0xff]  ;;  %v8813_v50 = vld [vmem:[#allocation72_spill] sm:$0xff] }
 0x7b9   : > { %3087 = vmatprep.subr.bf16.mxu1 %v6862_v63 }
 0x7ba   : > { %2984 = vmatpush1.bf16.msra.mxu0 %v7198_v59  ;;  %8808 = vst [vmem:[#allocation282_spill] sm:$0xff] %v7222_v0  ;;  %v7228_v59 = vcombine.high %v8810_v48, %v8809_v61 }
 0x7bb   : > { %2985 = vmatprep.subr.bf16.mxu0 %v7204_v49 }
 0x7bc   : > { %3088 = vmatpush1.bf16.msra.mxu1 %v6877_v51  ;;  %v7234_v51 = vcombine.low %v8810_v48, %v8809_v61  ;;  %v8815_v61 = vld [vmem:[#allocation81_spill] sm:$0xff]  ;;  %v8816_v48 = vld [vmem:[#allocation78_spill] sm:$0xff] }
 0x7bd   : > { %3089 = vmatprep.subr.bf16.mxu1 %v6887_v58 }
 0x7be   : > { %2986 = vmatpush1.bf16.msra.mxu0 %v7210_v37  ;;  %8811 = vst [vmem:[#allocation283_spill] sm:$0xff] %v7234_v51  ;;  %v7240_v37 = vcombine.high %v8813_v50, %v8812_v31 }
 0x7bf   : > { %2987 = vmatprep.subr.bf16.mxu0 %v7216_v43 }
 0x7c0   : > { %3090 = vmatpush1.bf16.msra.mxu1 %v6899_v40  ;;  %v7246_v40 = vcombine.low %v8813_v50, %v8812_v31  ;;  %v8819_v31 = vld [vmem:[#allocation87_spill] sm:$0xff]  ;;  %v8820_v50 = vld [vmem:[#allocation84_spill] sm:$0xff] }
 0x7c1   : > { %3091 = vmatprep.subr.bf16.mxu1 %v6909_v24 }
 0x7c2   : > { %2988 = vmatpush1.bf16.msra.mxu0 %v7222_v0  ;;  %8814 = vst [vmem:[#allocation284_spill] sm:$0xff] %v7246_v40  ;;  %v7252_v0 = vcombine.high %v8816_v48, %v8815_v61 }
 0x7c3   : > { %2989 = vmatprep.subr.bf16.mxu0 %v7228_v59 }
 0x7c4   : > { %3092 = vmatpush1.bf16.msra.mxu1 %v6923_v26  ;;  %8817 = vst [vmem:[#allocation285_spill] sm:$0xff] %v7252_v0  ;;  %v7258_v26 = vcombine.low %v8816_v48, %v8815_v61  ;;  %v8823_v61 = vld [vmem:[#allocation93_spill] sm:$0xff]  ;;  %v8824_v48 = vld [vmem:[#allocation90_spill] sm:$0xff] }
 0x7c5   : > { %3093 = vmatprep.subr.bf16.mxu1 %v6933_v53 }
 0x7c6   : > { %2990 = vmatpush1.bf16.msra.mxu0 %v7234_v51  ;;  %8818 = vst [vmem:[#allocation286_spill] sm:$0xff] %v7258_v26  ;;  %v7264_v51 = vcombine.high %v8820_v50, %v8819_v31 }
 0x7c7   : > { %2991 = vmatprep.subr.bf16.mxu0 %v7240_v37 }
 0x7c8   : > { %3094 = vmatpush1.bf16.msra.mxu1 %v6945_v17  ;;  %8821 = vst [vmem:[#allocation287_spill] sm:$0xff] %v7264_v51  ;;  %v7270_v17 = vcombine.low %v8820_v50, %v8819_v31  ;;  %v8827_v31 = vld [vmem:[#allocation99_spill] sm:$0xff]  ;;  %v8828_v50 = vld [vmem:[#allocation96_spill] sm:$0xff] }
 0x7c9   : > { %3095 = vmatprep.subr.bf16.mxu1 %v6955_v57 }
 0x7ca   : > { %2992 = vmatpush1.bf16.msra.mxu0 %v7246_v40  ;;  %8822 = vst [vmem:[#allocation288_spill] sm:$0xff] %v7270_v17  ;;  %v7276_v40 = vcombine.high %v8824_v48, %v8823_v61 }
 0x7cb   : > { %2993 = vmatprep.subr.bf16.mxu0 %v7252_v0 }
 0x7cc   : > { %3096 = vmatpush1.bf16.msra.mxu1 %v6965_v5  ;;  %8825 = vst [vmem:[#allocation289_spill] sm:$0xff] %v7276_v40  ;;  %v7282_v5 = vcombine.low %v8824_v48, %v8823_v61  ;;  %v8831_v61 = vld [vmem:[#allocation105_spill] sm:$0xff]  ;;  %v8832_v48 = vld [vmem:[#allocation102_spill] sm:$0xff] }
 0x7cd   : > { %3097 = vmatprep.subr.bf16.mxu1 %v6975_v60 }
 0x7ce   : > { %2994 = vmatpush1.bf16.msra.mxu0 %v7258_v26  ;;  %8826 = vst [vmem:[#allocation290_spill] sm:$0xff] %v7282_v5  ;;  %v7288_v26 = vcombine.high %v8828_v50, %v8827_v31 }
 0x7cf   : > { %2995 = vmatprep.subr.bf16.mxu0 %v7264_v51 }
 0x7d0   : > { %3098 = vmatpush1.bf16.msra.mxu1 %v6985_v39  ;;  %8829 = vst [vmem:[#allocation291_spill] sm:$0xff] %v7288_v26  ;;  %v7294_v39 = vcombine.low %v8828_v50, %v8827_v31  ;;  %v8834_v31 = vld [vmem:[#allocation111_spill] sm:$0xff]  ;;  %v8835_v50 = vld [vmem:[#allocation108_spill] sm:$0xff] }
 0x7d1   : > { %3099 = vmatprep.subr.bf16.mxu1 %v6995_v6 }
 0x7d2   : > { %2996 = vmatpush1.bf16.msra.mxu0 %v7270_v17  ;;  %8830 = vst [vmem:[#allocation292_spill] sm:$0xff] %v7294_v39  ;;  %v7300_v17 = vcombine.high %v8832_v48, %v8831_v61 }
 0x7d3   : > { %2997 = vmatprep.subr.bf16.mxu0 %v7276_v40 }
 0x7d4   : > { %3100 = vmatpush1.bf16.msra.mxu1 %v7005_v47  ;;  %v7306_v47 = vcombine.low %v8832_v48, %v8831_v61  ;;  %v8837_v61 = vld [vmem:[#allocation117_spill] sm:$0xff]  ;;  %v8838_v48 = vld [vmem:[#allocation114_spill] sm:$0xff] }
 0x7d5   : > { %3101 = vmatprep.subr.bf16.mxu1 %v7015_v32 }
 0x7d6   : > { %2998 = vmatpush1.bf16.msra.mxu0 %v7282_v5  ;;  %8833 = vst [vmem:[#allocation293_spill] sm:$0xff] %v7306_v47  ;;  %v7312_v5 = vcombine.high %v8835_v50, %v8834_v31 }
 0x7d7   : > { %2999 = vmatprep.subr.bf16.mxu0 %v7288_v26 }
 0x7d8   : > { %3102 = vmatpush1.bf16.msra.mxu1 %v7025_v18  ;;  %v7318_v18 = vcombine.low %v8835_v50, %v8834_v31  ;;  %v8841_v31 = vld [vmem:[#allocation123_spill] sm:$0xff]  ;;  %v8842_v50 = vld [vmem:[#allocation120_spill] sm:$0xff] }
 0x7d9   : > { %3103 = vmatprep.subr.bf16.mxu1 %v7035_v3 }
 0x7da   : > { %3000 = vmatpush1.bf16.msra.mxu0 %v7294_v39  ;;  %8836 = vst [vmem:[#allocation294_spill] sm:$0xff] %v7318_v18  ;;  %v7324_v39 = vcombine.high %v8838_v48, %v8837_v61 }
 0x7db   : > { %3001 = vmatprep.subr.bf16.mxu0 %v7300_v17 }
 0x7dc   : > { %3104 = vmatpush1.bf16.msra.mxu1 %v7045_v4  ;;  %8839 = vst [vmem:[#allocation295_spill] sm:$0xff] %v7324_v39  ;;  %v7330_v4 = vcombine.low %v8838_v48, %v8837_v61  ;;  %v8845_v61 = vld [vmem:[#allocation129_spill] sm:$0xff]  ;;  %v8846_v48 = vld [vmem:[#allocation126_spill] sm:$0xff] }
 0x7dd   : > { %3105 = vmatprep.subr.bf16.mxu1 %v7055_v22 }
 0x7de   : > { %3002 = vmatpush1.bf16.msra.mxu0 %v7306_v47  ;;  %8840 = vst [vmem:[#allocation296_spill] sm:$0xff] %v7330_v4  ;;  %v7336_v47 = vcombine.high %v8842_v50, %v8841_v31 }
 0x7df   : > { %3003 = vmatprep.subr.bf16.mxu0 %v7312_v5 }
 0x7e0   : > { %3106 = vmatpush1.bf16.msra.mxu1 %v7065_v2  ;;  %8843 = vst [vmem:[#allocation297_spill] sm:$0xff] %v7336_v47  ;;  %v7342_v2 = vcombine.low %v8842_v50, %v8841_v31  ;;  %v8850_v31 = vld [vmem:[#allocation253_spill] sm:$0xff]  ;;  %v8851_v50 = vld [vmem:[#allocation255_spill] sm:$0xff] }
 0x7e1   : > { %3107 = vmatprep.subr.bf16.mxu1 %v7075_v41 }
 0x7e2   : > { %3004 = vmatpush1.bf16.msra.mxu0 %v7318_v18  ;;  %8844 = vst [vmem:[#allocation298_spill] sm:$0xff] %v7342_v2  ;;  %v7348_v18 = vcombine.high %v8846_v48, %v8845_v61 }
 0x7e3   : > { %3005 = vmatprep.subr.bf16.mxu0 %v7324_v39 }
 0x7e4   : > { %3108 = vmatpush1.bf16.msra.mxu1 %v7085_v34  ;;  %8847 = vst [vmem:[#allocation299_spill] sm:$0xff] %v7348_v18  ;;  %v7354_v34 = vcombine.low %v8846_v48, %v8845_v61  ;;  %v8852_v61 = vld [vmem:[#allocation256_spill] sm:$0xff]  ;;  %v8853_v48 = vld [vmem:[#allocation258_spill] sm:$0xff] }
 0x7e5   : > { %3109 = vmatprep.subr.bf16.mxu1 %v7095_v36 }
 0x7e6   : > { %3006 = vmatpush1.bf16.msra.mxu0 %v7330_v4  ;;  %8848 = vst [vmem:[#allocation300_spill] sm:$0xff] %v7354_v34 }
 0x7e7   : > { %3007 = vmatprep.subr.bf16.mxu0 %v7336_v47 }
 0x7e8   : > { %3110 = vmatpush1.bf16.msra.mxu1 %v7105_v29 }
 0x7e9   : > { %3111 = vmatprep.subr.bf16.mxu1 %v7115_v13 }
 0x7ea   : > { %3008 = vmatpush1.bf16.msra.mxu0 %v7342_v2 }
 0x7eb   : > { %3009 = vmatprep.subr.bf16.mxu0 %v7348_v18 }
 0x7ec   : > { %3112 = vmatpush1.bf16.msra.mxu1 %v7125_v11 }
 0x7ed   : > { %3113 = vmatprep.subr.bf16.mxu1 %v7135_v56 }
 0x7ee   : > { %3010 = vmatpush1.bf16.msra.mxu0 %v7354_v34 }
 0x7ef   : > { %3124 = vmatprep.subr.bf16.mxu0 %v6853_v20 }
 0x7f0   : > { %3114 = vmatpush1.bf16.msra.mxu1 %v7145_v25 }
 0x7f1   : > { %3012 = vmatmul.mubr.bf16.vlgmr.msra.gmra.mrb[4].mxu0 %v7161_v52  ;;  %3165 = vmatprep.subr.bf16.mxu1 %v7157_v30  ;;  %v8849_v52 = vld [vmem:[#allocation251_spill] sm:$0xff] }
 0x7f2   : > { %3125 = vmatpush1.bf16.msra.mxu0 %v6857_v7 }
 0x7f3   : > { %3126 = vmatprep.subr.bf16.mxu0 %v6866_v19 }
 0x7f6   : > { %3127 = vmatpush1.bf16.msra.mxu0 %v6872_v44 }
 0x7f7   : > { %3128 = vmatprep.subr.bf16.mxu0 %v6882_v35 }
 0x7fa   : > { %3129 = vmatpush1.bf16.msra.mxu0 %v6892_v1 }
 0x7fb   : > { %3130 = vmatprep.subr.bf16.mxu0 %v6904_v54 }
 0x7fe   : > { %3131 = vmatpush1.bf16.msra.mxu0 %v6918_v27  ;;  %v7397_v27 = vld [vmem:[#allocation2 + $0x8] ss:$12 sps:$4 sm:$0xff]  }
 0x7ff   : > { %3132 = vmatprep.subr.bf16.mxu0 %v6928_v55  ;;  %8860 = vst [vmem:[#allocation301_spill] sm:$0xff] %v7397_v27 }
 0x802   : > { %3133 = vmatpush1.bf16.msra.mxu0 %v6940_v16 }
 0x803   : > { %3134 = vmatprep.subr.bf16.mxu0 %v6950_v46 }
 0x806   : > { %3135 = vmatpush1.bf16.msra.mxu0 %v6960_v8 }
 0x807   : > { %3136 = vmatprep.subr.bf16.mxu0 %v6970_v12  ;;  %v8854_v12 = vld [vmem:[#allocation260_spill] sm:$0xff] }
 0x80a   : > { %3137 = vmatpush1.bf16.msra.mxu0 %v6980_v23  ;;  %v8855_v23 = vld [vmem:[#allocation262_spill] sm:$0xff] }
 0x80b   : > { %3138 = vmatprep.subr.bf16.mxu0 %v6990_v33  ;;  %v8856_v33 = vld [vmem:[#allocation264_spill] sm:$0xff] }
 0x80e   : > { %3139 = vmatpush1.bf16.msra.mxu0 %v7000_v28  ;;  %v8857_v28 = vld [vmem:[#allocation266_spill] sm:$0xff] }
 0x80f   : > { %3140 = vmatprep.subr.bf16.mxu0 %v7010_v9  ;;  %v8858_v9 = vld [vmem:[#allocation268_spill] sm:$0xff] }
 0x812   : > { %3141 = vmatpush1.bf16.msra.mxu0 %v7020_v38  ;;  %v8859_v38 = vld [vmem:[#allocation270_spill] sm:$0xff] }
 0x813   : > { %3142 = vmatprep.subr.bf16.mxu0 %v8849_v52 }
 0x816   : > { %3143 = vmatpush1.bf16.msra.mxu0 %v8850_v31 }
 0x817   : > { %3144 = vmatprep.subr.bf16.mxu0 %v8851_v50 }
 0x81a   : > { %3145 = vmatpush1.bf16.msra.mxu0 %v8852_v61 }
 0x81b   : > { %3146 = vmatprep.subr.bf16.mxu0 %v8853_v48  ;;  %v3020_v48 = vld [vmem:[#allocation2] sm:$0xff] }
 0x81c   : > { %v3025_v61 = vunpack.c.l.bf16 %v3020_v48 }
 0x81e   : > { %3147 = vmatpush1.bf16.msra.mxu0 %v8854_v12  ;;  %v3034_v12 = vrot.slane %v3020_v48, 4  ;;  %v3023_v48 = vld [vmem:[#allocation3 + $0x24] sm:$0xff] }
 0x81f   : > { %3148 = vmatprep.subr.bf16.mxu0 %v8855_v23 }
 0x820   : > { %v3036_v50 = vunpack.c.l.bf16 %v3034_v12 }
 0x822   : > { %3149 = vmatpush1.bf16.msra.mxu0 %v8856_v33 }
 0x823   : > { %3150 = vmatprep.subr.bf16.mxu0 %v8857_v28 }
 0x826   : > { %3151 = vmatpush1.bf16.msra.mxu0 %v8858_v9 }
 0x827   : > { %3152 = vmatprep.subr.bf16.mxu0 %v8859_v38 }
 0x82a   : > { %3153 = vmatpush1.bf16.msra.mxu0 %v7140_v42 }
 0x82b   : > { %3154 = vmatprep.subr.bf16.mxu0 %v7152_v62 }
 0x82e   : > { %3155 = vmatpush1.bf16.msra.mxu0 %v7166_v15 }
 0x82f   : > { %3270 = vmatprep.subr.bf16.mxu0 %v6835_v10 }
 0x884   : > { %v2931_v23 = vpop.f32.mrb[0].mxu0 }
 0x885   : > { %v3026_v33 = vadd.f32 %v3025_v61, %v2931_v23  ;;  %v2933_v31 = vpop.f32.mrb[1].mxu0  ;;  %v8861_v23 = vld [vmem:[#allocation130_spill] sm:$0xff]  ;;  %v8862_v61 = vld [vmem:[#allocation274_spill] sm:$0xff] }
 0x886   : > { %v2935_v28 = vpop.f32.mrb[2].mxu0  ;;  %v2972_v8 = vpop.f32.mrb[0].mxu1  ;;  %v3037_v38 = vadd.f32 %v3036_v50, %v2933_v31 }
 0x887   : > { %v4274_v52 = vmul.f32 -1.442695, %v3026_v33  ;;  %v2936_v9 = vpop.f32.mrb[3].mxu0  ;;  %v2974_v46 = vpop.f32.mrb[1].mxu1  ;;  %v3044_v28 = vadd.f32 %v8861_v23, %v2972_v8  ;;  %v3053_v33 = vunpack.c.l.bf16 %v3023_v48 }
 0x888   : > { %v2976_v42 = vpop.f32.mrb[2].mxu1  ;;  %v4275_v16 = vmul.f32 -1.442695, %v3037_v38  ;;  %v3046_v9 = vunpack.c.l.bf16 %v7397_v27  ;;  %v3062_v27 = vrot.slane %v3023_v48, 4 }
 0x889   : > { %4759 = vpow2.f32 %v4274_v52  ;;  %v2977_v62 = vpop.f32.mrb[3].mxu1  ;;  %v3054_v42 = vadd.f32 %v3053_v33, %v2974_v46 }
 0x88a   : > { %4761 = vpow2.f32 %v4275_v16  ;;  %v3064_v1 = vunpack.c.l.bf16 %v3062_v27 }
 0x88b   : > { %v4276_v16 = vmul.f32 -1.442695, %v3054_v42 }
 0x893   : > { %v4760_v15 = vpop.eup %4759 }
 0x894   : > { %v3030_v10 = vadd.f32 1.0, %v4760_v15  ;;  %v4762_v55 = vpop.eup %4761 }
 0x895   : > { %v3041_v12 = vadd.f32 1.0, %v4762_v55 }
 0x896   : > { %4763 = vrcp.f32 %v3030_v10 }
 0x897   : > { %4765 = vrcp.f32 %v3041_v12 }
 0x8a0   : > { %v4764_v31 = vpop.eup %4763 }
 0x8a1   : > { %v3045_v52 = vmul.f32 %v4764_v31, %v3044_v28  ;;  %v4766_v38 = vpop.eup %4765 }
 0x8a2   : > { %v3049_v10 = vsub.f32 1.0, %v4766_v38  ;;  %v3051_v54 = vmul.f32 %v4766_v38, %v8862_v61  ;;  %v8864_v61 = vld [vmem:[#allocation227_spill] sm:$0xff] }
 0x8a3   : > { %v3047_v62 = vadd.f32 %v3046_v9, %v3045_v52  ;;  %v8863_v9 = vld [vmem:[#allocation131_spill] sm:$0xff] }
 0x8a5   : > { %4767 = vtanh.f32 %v3047_v62 }
 0x8a6   : > { %4769 = vpow2.f32 %v4276_v16 }
 0x8af   : > { %v4768_v15 = vpop.eup %4767 }
 0x8b0   : > { %v3050_v50 = vmul.f32 %v4768_v15, %v3049_v10  ;;  %v4770_v8 = vpop.eup %4769  ;;  %v7405_v10 = vld [vmem:[#allocation3 + $0x20] ss:$12 sps:$4 sm:$0xff]  }
 0x8b1   : > { %v3058_v23 = vadd.f32 1.0, %v4770_v8 }
 0x8b2   : > { %v7402_v55 = vadd.f32 %v3051_v54, %v3050_v50  ;;  %v3074_v54 = vunpack.c.h.bf16 %v7405_v10 }
 0x8b3   : > { %4771 = vrcp.f32 %v3058_v23 }
 0x8bd   : > { %v4772_v28 = vpop.eup %4771 }
 0x8c4   : > { %v3013_v12 = vpop.f32.mrb[4].mxu0 }
 0x8c5   : > { %v3065_v46 = vadd.f32 %v3064_v1, %v3013_v12  ;;  %v3015_v33 = vpop.f32.mrb[5].mxu0 }
 0x8c6   : > { %v3072_v31 = vadd.f32 %v8863_v9, %v3015_v33  ;;  %v3017_v52 = vpop.f32.mrb[6].mxu0  ;;  %v8865_v33 = vld [vmem:[#allocation278_spill] sm:$0xff] }
 0x8c7   : > { %v4277_v42 = vmul.f32 -1.442695, %v3065_v46  ;;  %v3018_v62 = vpop.f32.mrb[7].mxu0  ;;  %v7415_v46 = vpack.c.bf16 %v7402_v55, %v7402_v55  ;;  %v8867_v52 = vld [vmem:[#allocation279_spill] sm:$0xff] }
 0x8c8   : > { %v3073_v16 = vmul.f32 %v4772_v28, %v3072_v31  ;;  %v8866_v31 = vld [vmem:[#allocation218_spill] sm:$0xff]  ;;  %v8869_v62 = vld [vmem:[#allocation280_spill] sm:$0xff] }
 0x8c9   : > { %4773 = vpow2.f32 %v4277_v42  ;;  %v8868_v42 = vld [vmem:[#allocation219_spill] sm:$0xff] }
 0x8ca   : > { %v3075_v23 = vadd.f32 %v3074_v54, %v3073_v16  ;;  %v8870_v16 = vld [vmem:[#allocation224_spill] sm:$0xff]  ;;  %v8871_v54 = vld [vmem:[#allocation281_spill] sm:$0xff] }
 0x8d3   : > { %v4774_v38 = vpop.eup %4773 }
 0x8d4   : > { %v3069_v15 = vadd.f32 1.0, %v4774_v38  ;;  %v8872_v38 = vld [vmem:[#allocation228_spill] sm:$0xff] }
 0x8d6   : > { %4775 = vrcp.f32 %v3069_v15  ;;  %v8873_v15 = vld [vmem:[#allocation282_spill] sm:$0xff] }
 0x8d7   : > { %4777 = vtanh.f32 %v3075_v23  ;;  %v8874_v23 = vld [vmem:[#allocation231_spill] sm:$0xff] }
 0x8e0   : > { %v4776_v27 = vpop.eup %4775 }
 0x8e1   : > { %v3077_v48 = vsub.f32 1.0, %v4776_v27  ;;  %v4778_v1 = vpop.eup %4777  ;;  %v3079_v8 = vmul.f32 %v4776_v27, %v8864_v61  ;;  %v8875_v27 = vld [vmem:[#allocation283_spill] sm:$0xff]  ;;  %v8879_v61 = vld [vmem:[#allocation286_spill] sm:$0xff] }
 0x8e3   : > { %v3078_v50 = vmul.f32 %v4778_v1, %v3077_v48  ;;  %v8876_v48 = vld [vmem:[#allocation234_spill] sm:$0xff]  ;;  %v8877_v1 = vld [vmem:[#allocation284_spill] sm:$0xff] }
 0x8e5   : > { %v7409_v12 = vadd.f32 %v3079_v8, %v3078_v50  ;;  %v8878_v50 = vld [vmem:[#allocation238_spill] sm:$0xff] }
 0x8e6   : > { %v8880_v8 = vld [vmem:[#allocation242_spill] sm:$0xff] }
 0x8e7   : > { %v3082_v28 = vpack.c.bf16 %v7409_v12, %v7409_v12 }
 0x8e9   : > { %3115 = vmatprep.mubr.bf16.mxu1 %v3082_v28  ;;  %3156 = vmatprep.mubr.bf16.mxu0 %v3082_v28 }
 0x8ea   : > { %3116 = vmatmul.mubr.bf16.vlgmr.msra.gmra.mrb[4].mxu1 %v7415_v46  ;;  %3157 = vmatmul.mubr.bf16.vlgmr.msra.gmra.mrb[8].mxu0 %v7415_v46 }
 0x8eb   : > { %3166 = vmatpush1.bf16.msra.mxu1 %v7171_v45  ;;  %3197 = vmatprep.mubr.bf16.mxu1 %v3082_v28  ;;  %v8881_v28 = vld [vmem:[#allocation288_spill] sm:$0xff] }
 0x8ec   : > { %3167 = vmatprep.subr.bf16.mxu1 %v8865_v33  ;;  %3271 = vmatpush1.bf16.msra.mxu0 %v8866_v31 }
 0x8ed   : > { %3272 = vmatprep.subr.bf16.mxu0 %v6843_v14 }
 0x8ef   : > { %3168 = vmatpush1.bf16.msra.mxu1 %v8867_v52 }
 0x8f0   : > { %3169 = vmatprep.subr.bf16.mxu1 %v7190_v21  ;;  %3273 = vmatpush1.bf16.msra.mxu0 %v8868_v42 }
 0x8f1   : > { %3274 = vmatprep.subr.bf16.mxu0 %v6862_v63 }
 0x8f3   : > { %3170 = vmatpush1.bf16.msra.mxu1 %v8869_v62 }
 0x8f4   : > { %3171 = vmatprep.subr.bf16.mxu1 %v7204_v49  ;;  %3275 = vmatpush1.bf16.msra.mxu0 %v8870_v16 }
 0x8f5   : > { %3276 = vmatprep.subr.bf16.mxu0 %v6887_v58 }
 0x8f7   : > { %3172 = vmatpush1.bf16.msra.mxu1 %v8871_v54 }
 0x8f8   : > { %3173 = vmatprep.subr.bf16.mxu1 %v7216_v43  ;;  %3277 = vmatpush1.bf16.msra.mxu0 %v8872_v38 }
 0x8f9   : > { %3278 = vmatprep.subr.bf16.mxu0 %v6909_v24 }
 0x8fb   : > { %3174 = vmatpush1.bf16.msra.mxu1 %v8873_v15 }
 0x8fc   : > { %3175 = vmatprep.subr.bf16.mxu1 %v7228_v59  ;;  %3279 = vmatpush1.bf16.msra.mxu0 %v8874_v23 }
 0x8fd   : > { %3280 = vmatprep.subr.bf16.mxu0 %v6933_v53 }
 0x8ff   : > { %3176 = vmatpush1.bf16.msra.mxu1 %v8875_v27 }
 0x900   : > { %3177 = vmatprep.subr.bf16.mxu1 %v7240_v37  ;;  %3281 = vmatpush1.bf16.msra.mxu0 %v8876_v48 }
 0x901   : > { %3282 = vmatprep.subr.bf16.mxu0 %v6955_v57  ;;  %v8882_v57 = vld [vmem:[#allocation246_spill] sm:$0xff] }
 0x903   : > { %3178 = vmatpush1.bf16.msra.mxu1 %v8877_v1 }
 0x904   : > { %3179 = vmatprep.subr.bf16.mxu1 %v7252_v0  ;;  %3283 = vmatpush1.bf16.msra.mxu0 %v8878_v50  ;;  %v8883_v0 = vld [vmem:[#allocation290_spill] sm:$0xff] }
 0x905   : > { %3284 = vmatprep.subr.bf16.mxu0 %v6975_v60  ;;  %v8884_v60 = vld [vmem:[#allocation250_spill] sm:$0xff] }
 0x907   : > { %3180 = vmatpush1.bf16.msra.mxu1 %v8879_v61 }
 0x908   : > { %3181 = vmatprep.subr.bf16.mxu1 %v7264_v51  ;;  %3285 = vmatpush1.bf16.msra.mxu0 %v8880_v8  ;;  %v8885_v51 = vld [vmem:[#allocation292_spill] sm:$0xff] }
 0x909   : > { %3286 = vmatprep.subr.bf16.mxu0 %v6995_v6  ;;  %v8886_v6 = vld [vmem:[#allocation254_spill] sm:$0xff] }
 0x90b   : > { %3182 = vmatpush1.bf16.msra.mxu1 %v8881_v28 }
 0x90c   : > { %3183 = vmatprep.subr.bf16.mxu1 %v7276_v40  ;;  %3287 = vmatpush1.bf16.msra.mxu0 %v8882_v57  ;;  %v8887_v40 = vld [vmem:[#allocation293_spill] sm:$0xff] }
 0x90d   : > { %3288 = vmatprep.subr.bf16.mxu0 %v7015_v32  ;;  %v8888_v32 = vld [vmem:[#allocation257_spill] sm:$0xff] }
 0x90f   : > { %3184 = vmatpush1.bf16.msra.mxu1 %v8883_v0 }
 0x910   : > { %3185 = vmatprep.subr.bf16.mxu1 %v7288_v26  ;;  %3289 = vmatpush1.bf16.msra.mxu0 %v8884_v60  ;;  %v8889_v26 = vld [vmem:[#allocation294_spill] sm:$0xff] }
 0x911   : > { %3290 = vmatprep.subr.bf16.mxu0 %v7035_v3  ;;  %v8890_v3 = vld [vmem:[#allocation261_spill] sm:$0xff] }
 0x913   : > { %3186 = vmatpush1.bf16.msra.mxu1 %v8885_v51 }
 0x914   : > { %3187 = vmatprep.subr.bf16.mxu1 %v7300_v17  ;;  %3291 = vmatpush1.bf16.msra.mxu0 %v8886_v6 }
 0x915   : > { %3292 = vmatprep.subr.bf16.mxu0 %v7055_v22 }
 0x917   : > { %3188 = vmatpush1.bf16.msra.mxu1 %v8887_v40 }
 0x918   : > { %3189 = vmatprep.subr.bf16.mxu1 %v7312_v5  ;;  %3293 = vmatpush1.bf16.msra.mxu0 %v8888_v32 }
 0x919   : > { %3294 = vmatprep.subr.bf16.mxu0 %v7075_v41 }
 0x91b   : > { %3190 = vmatpush1.bf16.msra.mxu1 %v8889_v26  ;;  %v8919_v26 = vld [vmem:[#allocation130_spill] sm:$0xff] }
 0x91c   : > { %3191 = vmatprep.subr.bf16.mxu1 %v7324_v39  ;;  %3295 = vmatpush1.bf16.msra.mxu0 %v8890_v3  ;;  %v3210_v39 = vld [vmem:[#allocation3 + $0x18] sm:$0xff] }
 0x91d   : > { %3296 = vmatprep.subr.bf16.mxu0 %v7095_v36 }
 0x91f   : > { %3192 = vmatpush1.bf16.msra.mxu1 %v7330_v4 }
 0x920   : > { %3193 = vmatprep.subr.bf16.mxu1 %v7336_v47  ;;  %3297 = vmatpush1.bf16.msra.mxu0 %v7105_v29 }
 0x921   : > { %3298 = vmatprep.subr.bf16.mxu0 %v7115_v13 }
 0x923   : > { %3194 = vmatpush1.bf16.msra.mxu1 %v7342_v2 }
 0x924   : > { %3195 = vmatprep.subr.bf16.mxu1 %v7348_v18  ;;  %3299 = vmatpush1.bf16.msra.mxu0 %v7125_v11  ;;  %v8891_v11 = vld [vmem:[#allocation226_spill] sm:$0xff] }
 0x925   : > { %3300 = vmatprep.subr.bf16.mxu0 %v7135_v56  ;;  %v8892_v56 = vld [vmem:[#allocation229_spill] sm:$0xff] }
 0x927   : > { %3196 = vmatpush1.bf16.msra.mxu1 %v7354_v34  ;;  %v8893_v34 = vld [vmem:[#allocation230_spill] sm:$0xff] }
 0x928   : > { %3311 = vmatprep.subr.bf16.mxu1 %v6853_v20  ;;  %3301 = vmatpush1.bf16.msra.mxu0 %v7145_v25  ;;  %v8894_v20 = vld [vmem:[#allocation232_spill] sm:$0xff]  ;;  %v8895_v25 = vld [vmem:[#allocation233_spill] sm:$0xff] }
 0x929   : > { %3352 = vmatprep.subr.bf16.mxu0 %v7157_v30  ;;  %v8896_v30 = vld [vmem:[#allocation235_spill] sm:$0xff] }
 0x92a   : > { %3198 = vmatmul.mubr.bf16.vlgmr.msra.gmra.mrb[8].mxu1 %v7415_v46  ;;  %v8897_v46 = vld [vmem:[#allocation237_spill] sm:$0xff] }
 0x92b   : > { %3312 = vmatpush1.bf16.msra.mxu1 %v6857_v7  ;;  %v8898_v7 = vld [vmem:[#allocation239_spill] sm:$0xff] }
 0x92c   : > { %3313 = vmatprep.subr.bf16.mxu1 %v6866_v19  ;;  %v8899_v19 = vld [vmem:[#allocation241_spill] sm:$0xff] }
 0x92f   : > { %3314 = vmatpush1.bf16.msra.mxu1 %v6872_v44  ;;  %v8900_v44 = vld [vmem:[#allocation243_spill] sm:$0xff] }
 0x930   : > { %3315 = vmatprep.subr.bf16.mxu1 %v6882_v35  ;;  %v8901_v35 = vld [vmem:[#allocation245_spill] sm:$0xff] }
 0x933   : > { %3316 = vmatpush1.bf16.msra.mxu1 %v8891_v11  ;;  %v8902_v11 = vld [vmem:[#allocation247_spill] sm:$0xff] }
 0x934   : > { %3317 = vmatprep.subr.bf16.mxu1 %v8892_v56  ;;  %v8903_v56 = vld [vmem:[#allocation249_spill] sm:$0xff] }
 0x937   : > { %3318 = vmatpush1.bf16.msra.mxu1 %v8893_v34  ;;  %v8904_v34 = vld [vmem:[#allocation251_spill] sm:$0xff] }
 0x938   : > { %3319 = vmatprep.subr.bf16.mxu1 %v8894_v20  ;;  %v8905_v20 = vld [vmem:[#allocation253_spill] sm:$0xff] }
 0x93b   : > { %3320 = vmatpush1.bf16.msra.mxu1 %v8895_v25  ;;  %v8906_v25 = vld [vmem:[#allocation255_spill] sm:$0xff] }
 0x93c   : > { %3321 = vmatprep.subr.bf16.mxu1 %v8896_v30  ;;  %v8907_v30 = vld [vmem:[#allocation256_spill] sm:$0xff] }
 0x93f   : > { %3322 = vmatpush1.bf16.msra.mxu1 %v8897_v46  ;;  %v8908_v46 = vld [vmem:[#allocation258_spill] sm:$0xff] }
 0x940   : > { %3323 = vmatprep.subr.bf16.mxu1 %v8898_v7  ;;  %v8909_v7 = vld [vmem:[#allocation260_spill] sm:$0xff] }
 0x943   : > { %3324 = vmatpush1.bf16.msra.mxu1 %v8899_v19  ;;  %v8910_v19 = vld [vmem:[#allocation262_spill] sm:$0xff] }
 0x944   : > { %3325 = vmatprep.subr.bf16.mxu1 %v8900_v44  ;;  %v8911_v44 = vld [vmem:[#allocation264_spill] sm:$0xff] }
 0x947   : > { %3326 = vmatpush1.bf16.msra.mxu1 %v8901_v35  ;;  %v8912_v35 = vld [vmem:[#allocation266_spill] sm:$0xff] }
 0x948   : > { %3327 = vmatprep.subr.bf16.mxu1 %v8902_v11  ;;  %v8913_v11 = vld [vmem:[#allocation268_spill] sm:$0xff] }
 0x94b   : > { %3328 = vmatpush1.bf16.msra.mxu1 %v8903_v56  ;;  %v8914_v56 = vld [vmem:[#allocation270_spill] sm:$0xff] }
 0x94c   : > { %3329 = vmatprep.subr.bf16.mxu1 %v8904_v34  ;;  %v8915_v34 = vld [vmem:[#allocation272_spill] sm:$0xff] }
 0x94f   : > { %3330 = vmatpush1.bf16.msra.mxu1 %v8905_v20  ;;  %v8916_v20 = vld [vmem:[#allocation275_spill] sm:$0xff] }
 0x950   : > { %3331 = vmatprep.subr.bf16.mxu1 %v8906_v25  ;;  %v8917_v25 = vld [vmem:[#allocation277_spill] sm:$0xff] }
 0x953   : > { %3332 = vmatpush1.bf16.msra.mxu1 %v8907_v30  ;;  %v8918_v30 = vld [vmem:[#allocation217_spill] sm:$0xff] }
 0x954   : > { %3333 = vmatprep.subr.bf16.mxu1 %v8908_v46  ;;  %v3207_v46 = vld [vmem:[#allocation2 + $0xc] sm:$0xff] }
 0x955   : > { %v3212_v18 = vunpack.c.l.bf16 %v3207_v46 }
 0x957   : > { %3334 = vmatpush1.bf16.msra.mxu1 %v8909_v7  ;;  %v3221_v7 = vrot.slane %v3207_v46, 4 }
 0x958   : > { %3335 = vmatprep.subr.bf16.mxu1 %v8910_v19 }
 0x95b   : > { %3336 = vmatpush1.bf16.msra.mxu1 %v8911_v44  ;;  %v3223_v44 = vunpack.c.l.bf16 %v3221_v7 }
 0x95c   : > { %3337 = vmatprep.subr.bf16.mxu1 %v8912_v35 }
 0x95f   : > { %3338 = vmatpush1.bf16.msra.mxu1 %v8913_v11 }
 0x960   : > { %3339 = vmatprep.subr.bf16.mxu1 %v8914_v56 }
 0x963   : > { %3340 = vmatpush1.bf16.msra.mxu1 %v8915_v34 }
 0x964   : > { %3341 = vmatprep.subr.bf16.mxu1 %v8916_v20 }
 0x967   : > { %3342 = vmatpush1.bf16.msra.mxu1 %v8917_v25 }
 0x968   : > { %3457 = vmatprep.subr.bf16.mxu1 %v8918_v30 }
 0x9bd   : > { %v3117_v19 = vpop.f32.mrb[4].mxu1  ;;  %v3158_v2 = vpop.f32.mrb[8].mxu0 }
 0x9be   : > { %v3213_v13 = vadd.f32 %v3212_v18, %v3117_v19  ;;  %v3119_v35 = vpop.f32.mrb[5].mxu1  ;;  %v3160_v29 = vpop.f32.mrb[9].mxu0  ;;  %v3231_v7 = vadd.f32 %v8919_v26, %v3158_v2  ;;  %v8920_v19 = vld [vmem:[#allocation301_spill] sm:$0xff] }
 0x9bf   : > { %v3121_v11 = vpop.f32.mrb[6].mxu1  ;;  %v3162_v47 = vpop.f32.mrb[10].mxu0  ;;  %v3224_v36 = vadd.f32 %v3223_v44, %v3119_v35  ;;  %v3233_v18 = vunpack.c.h.bf16 %v8920_v19 }
 0x9c0   : > { %v4278_v56 = vmul.f32 -1.442695, %v3213_v13  ;;  %v3122_v4 = vpop.f32.mrb[7].mxu1  ;;  %v3163_v34 = vpop.f32.mrb[11].mxu0  ;;  %v3240_v11 = vunpack.c.l.bf16 %v3210_v39 }
 0x9c1   : > { %v4279_v20 = vmul.f32 -1.442695, %v3224_v36 }
 0x9c2   : > { %4779 = vpow2.f32 %v4278_v56  ;;  %v3241_v13 = vadd.f32 %v3240_v11, %v3160_v29 }
 0x9c3   : > { %4781 = vpow2.f32 %v4279_v20 }
 0x9c4   : > { %v4280_v44 = vmul.f32 -1.442695, %v3241_v13 }
 0x9cc   : > { %v4780_v25 = vpop.eup %4779 }
 0x9cd   : > { %v3217_v30 = vadd.f32 1.0, %v4780_v25  ;;  %v4782_v3 = vpop.eup %4781 }
 0x9ce   : > { %v3228_v46 = vadd.f32 1.0, %v4782_v3 }
 0x9cf   : > { %4783 = vrcp.f32 %v3217_v30  ;;  %v3249_v30 = vrot.slane %v3210_v39, 4 }
 0x9d0   : > { %4785 = vrcp.f32 %v3228_v46 }
 0x9d1   : > { %v3251_v19 = vunpack.c.l.bf16 %v3249_v30 }
 0x9d9   : > { %v4784_v41 = vpop.eup %4783 }
 0x9da   : > { %v3232_v47 = vmul.f32 %v4784_v41, %v3231_v7  ;;  %v4786_v35 = vpop.eup %4785 }
 0x9db   : > { %v3236_v20 = vsub.f32 1.0, %v4786_v35  ;;  %v3238_v3 = vmul.f32 %v4786_v35, %v7402_v55  ;;  %v3261_v55 = vunpack.c.l.bf16 %v7405_v10  ;;  %v8926_v10 = vld [vmem:[#allocation289_spill] sm:$0xff] }
 0x9dc   : > { %v3234_v4 = vadd.f32 %v3233_v18, %v3232_v47 }
 0x9de   : > { %4787 = vtanh.f32 %v3234_v4 }
 0x9df   : > { %4789 = vpow2.f32 %v4280_v44 }
 0x9e8   : > { %v4788_v56 = vpop.eup %4787 }
 0x9e9   : > { %v3237_v34 = vmul.f32 %v4788_v56, %v3236_v20  ;;  %v4790_v2 = vpop.eup %4789 }
 0x9ea   : > { %v3245_v25 = vadd.f32 1.0, %v4790_v2 }
 0x9eb   : > { %v7519_v36 = vadd.f32 %v3238_v3, %v3237_v34 }
 0x9ec   : > { %4791 = vrcp.f32 %v3245_v25 }
 0x9f6   : > { %v4792_v11 = vpop.eup %4791 }
 0x9fd   : > { %v3199_v41 = vpop.f32.mrb[8].mxu1 }
 0x9fe   : > { %v3252_v46 = vadd.f32 %v3251_v19, %v3199_v41  ;;  %v3201_v7 = vpop.f32.mrb[9].mxu1  ;;  %v7530_v19 = vpack.c.bf16 %v7519_v36, %v7519_v36  ;;  %v8941_v41 = vld [vmem:[#allocation269_spill] sm:$0xff] }
 0x9ff   : > { %v3259_v29 = vadd.f32 %v8863_v9, %v3201_v7  ;;  %v3203_v18 = vpop.f32.mrb[10].mxu1  ;;  %v8943_v7 = vld [vmem:[#allocation300_spill] sm:$0xff] }
 0xa00   : > { %v4281_v47 = vmul.f32 -1.442695, %v3252_v46  ;;  %v3204_v4 = vpop.f32.mrb[11].mxu1  ;;  %v8942_v46 = vld [vmem:[#allocation271_spill] sm:$0xff]  ;;  %v8945_v18 = vld [vmem:[#allocation273_spill] sm:$0xff] }
 0xa01   : > { %v3260_v13 = vmul.f32 %v4792_v11, %v3259_v29  ;;  %v8944_v29 = vld [vmem:[#allocation220_spill] sm:$0xff]  ;;  %v8948_v4 = vld [vmem:[#allocation222_spill] sm:$0xff] }
 0xa02   : > { %4793 = vpow2.f32 %v4281_v47  ;;  %v8946_v11 = vld [vmem:[#allocation276_spill] sm:$0xff]  ;;  %v8947_v47 = vld [vmem:[#allocation221_spill] sm:$0xff] }
 0xa03   : > { %v3262_v20 = vadd.f32 %v3261_v55, %v3260_v13  ;;  %v8949_v13 = vld [vmem:[#allocation223_spill] sm:$0xff]  ;;  %v8950_v55 = vld [vmem:[#allocation225_spill] sm:$0xff] }
 0xa0c   : > { %v4794_v44 = vpop.eup %4793 }
 0xa0d   : > { %v3256_v35 = vadd.f32 1.0, %v4794_v44  ;;  %v8951_v44 = vld [vmem:[#allocation226_spill] sm:$0xff] }
 0xa0f   : > { %4795 = vrcp.f32 %v3256_v35  ;;  %v8952_v35 = vld [vmem:[#allocation229_spill] sm:$0xff] }
 0xa10   : > { %4797 = vtanh.f32 %v3262_v20  ;;  %v8953_v20 = vld [vmem:[#allocation230_spill] sm:$0xff] }
 0xa19   : > { %v4796_v39 = vpop.eup %4795 }
 0xa1a   : > { %v3264_v56 = vsub.f32 1.0, %v4796_v39  ;;  %v4798_v34 = vpop.eup %4797  ;;  %v3266_v2 = vmul.f32 %v4796_v39, %v7409_v12  ;;  %v8927_v12 = vld [vmem:[#allocation248_spill] sm:$0xff] }
 0xa1b   : > { %v8954_v39 = vld [vmem:[#allocation232_spill] sm:$0xff] }
 0xa1c   : > { %v3265_v3 = vmul.f32 %v4798_v34, %v3264_v56  ;;  %v8955_v56 = vld [vmem:[#allocation233_spill] sm:$0xff]  ;;  %v8956_v34 = vld [vmem:[#allocation235_spill] sm:$0xff] }
 0xa1e   : > { %v7524_v25 = vadd.f32 %v3266_v2, %v3265_v3  ;;  %v8957_v3 = vld [vmem:[#allocation237_spill] sm:$0xff]  ;;  %v8958_v2 = vld [vmem:[#allocation239_spill] sm:$0xff] }
 0xa20   : > { %v3269_v30 = vpack.c.bf16 %v7524_v25, %v7524_v25 }
 0xa22   : > { %3302 = vmatprep.mubr.bf16.mxu0 %v3269_v30  ;;  %3343 = vmatprep.mubr.bf16.mxu1 %v3269_v30 }
 0xa23   : > { %3303 = vmatmul.mubr.bf16.vlgmr.msra.gmra.mrb[12].mxu0 %v7530_v19  ;;  %3344 = vmatmul.mubr.bf16.vlgmr.msra.gmra.mrb[12].mxu1 %v7530_v19 }
 0xa24   : > { %3353 = vmatpush1.bf16.msra.mxu0 %v7171_v45  ;;  %3384 = vmatprep.mubr.bf16.mxu0 %v3269_v30  ;;  %v8959_v30 = vld [vmem:[#allocation241_spill] sm:$0xff] }
 0xa25   : > { %3354 = vmatprep.subr.bf16.mxu0 %v8865_v33  ;;  %3458 = vmatpush1.bf16.msra.mxu1 %v8866_v31  ;;  %v8928_v31 = vld [vmem:[#allocation291_spill] sm:$0xff] }
 0xa26   : > { %3459 = vmatprep.subr.bf16.mxu1 %v6843_v14  ;;  %v8921_v14 = vld [vmem:[#allocation236_spill] sm:$0xff] }
 0xa28   : > { %3355 = vmatpush1.bf16.msra.mxu0 %v8867_v52 }
 0xa29   : > { %3356 = vmatprep.subr.bf16.mxu0 %v7190_v21  ;;  %3460 = vmatpush1.bf16.msra.mxu1 %v8868_v42  ;;  %v8929_v42 = vld [vmem:[#allocation252_spill] sm:$0xff] }
 0xa2a   : > { %3461 = vmatprep.subr.bf16.mxu1 %v6862_v63  ;;  %v8922_v63 = vld [vmem:[#allocation285_spill] sm:$0xff] }
 0xa2c   : > { %3357 = vmatpush1.bf16.msra.mxu0 %v8869_v62 }
 0xa2d   : > { %3358 = vmatprep.subr.bf16.mxu0 %v7204_v49  ;;  %3462 = vmatpush1.bf16.msra.mxu1 %v8870_v16  ;;  %v8931_v16 = vld [vmem:[#allocation294_spill] sm:$0xff] }
 0xa2e   : > { %3463 = vmatprep.subr.bf16.mxu1 %v6887_v58  ;;  %v8923_v58 = vld [vmem:[#allocation240_spill] sm:$0xff] }
 0xa30   : > { %3359 = vmatpush1.bf16.msra.mxu0 %v8871_v54 }
 0xa31   : > { %3360 = vmatprep.subr.bf16.mxu0 %v7216_v43  ;;  %3464 = vmatpush1.bf16.msra.mxu1 %v8872_v38  ;;  %v8933_v38 = vld [vmem:[#allocation261_spill] sm:$0xff] }
 0xa32   : > { %3465 = vmatprep.subr.bf16.mxu1 %v6909_v24  ;;  %v8924_v24 = vld [vmem:[#allocation287_spill] sm:$0xff] }
 0xa34   : > { %3361 = vmatpush1.bf16.msra.mxu0 %v8873_v15 }
 0xa35   : > { %3362 = vmatprep.subr.bf16.mxu0 %v7228_v59  ;;  %3466 = vmatpush1.bf16.msra.mxu1 %v8874_v23  ;;  %v8934_v23 = vld [vmem:[#allocation263_spill] sm:$0xff] }
 0xa36   : > { %3467 = vmatprep.subr.bf16.mxu1 %v6933_v53  ;;  %v8925_v53 = vld [vmem:[#allocation244_spill] sm:$0xff] }
 0xa38   : > { %3363 = vmatpush1.bf16.msra.mxu0 %v8875_v27 }
 0xa39   : > { %3364 = vmatprep.subr.bf16.mxu0 %v7240_v37  ;;  %3468 = vmatpush1.bf16.msra.mxu1 %v8876_v48  ;;  %v8935_v48 = vld [vmem:[#allocation296_spill] sm:$0xff] }
 0xa3a   : > { %3469 = vmatprep.subr.bf16.mxu1 %v8921_v14  ;;  %v8961_v14 = vld [vmem:[#allocation245_spill] sm:$0xff] }
 0xa3c   : > { %3365 = vmatpush1.bf16.msra.mxu0 %v8877_v1 }
 0xa3d   : > { %3366 = vmatprep.subr.bf16.mxu0 %v8922_v63  ;;  %3470 = vmatpush1.bf16.msra.mxu1 %v8878_v50  ;;  %v8938_v50 = vld [vmem:[#allocation267_spill] sm:$0xff] }
 0xa3e   : > { %3471 = vmatprep.subr.bf16.mxu1 %v8923_v58  ;;  %v8962_v58 = vld [vmem:[#allocation247_spill] sm:$0xff] }
 0xa40   : > { %3367 = vmatpush1.bf16.msra.mxu0 %v8879_v61 }
 0xa41   : > { %3368 = vmatprep.subr.bf16.mxu0 %v8924_v24  ;;  %3472 = vmatpush1.bf16.msra.mxu1 %v8880_v8  ;;  %v8939_v8 = vld [vmem:[#allocation298_spill] sm:$0xff] }
 0xa42   : > { %3473 = vmatprep.subr.bf16.mxu1 %v8925_v53  ;;  %v8963_v53 = vld [vmem:[#allocation249_spill] sm:$0xff] }
 0xa44   : > { %3369 = vmatpush1.bf16.msra.mxu0 %v8881_v28 }
 0xa45   : > { %3370 = vmatprep.subr.bf16.mxu0 %v8926_v10  ;;  %3474 = vmatpush1.bf16.msra.mxu1 %v8882_v57  ;;  %v8930_v57 = vld [vmem:[#allocation259_spill] sm:$0xff] }
 0xa46   : > { %3475 = vmatprep.subr.bf16.mxu1 %v8927_v12  ;;  %v8964_v12 = vld [vmem:[#allocation251_spill] sm:$0xff] }
 0xa48   : > { %3371 = vmatpush1.bf16.msra.mxu0 %v8883_v0 }
 0xa49   : > { %3372 = vmatprep.subr.bf16.mxu0 %v8928_v31  ;;  %3476 = vmatpush1.bf16.msra.mxu1 %v8884_v60  ;;  %v8932_v60 = vld [vmem:[#allocation295_spill] sm:$0xff] }
 0xa4a   : > { %3477 = vmatprep.subr.bf16.mxu1 %v8929_v42  ;;  %v8965_v42 = vld [vmem:[#allocation253_spill] sm:$0xff] }
 0xa4c   : > { %3373 = vmatpush1.bf16.msra.mxu0 %v8885_v51 }
 0xa4d   : > { %3374 = vmatprep.subr.bf16.mxu0 %v7300_v17  ;;  %3478 = vmatpush1.bf16.msra.mxu1 %v8886_v6  ;;  %v8936_v6 = vld [vmem:[#allocation297_spill] sm:$0xff] }
 0xa4e   : > { %3479 = vmatprep.subr.bf16.mxu1 %v7055_v22  ;;  %v8937_v22 = vld [vmem:[#allocation265_spill] sm:$0xff] }
 0xa50   : > { %3375 = vmatpush1.bf16.msra.mxu0 %v8887_v40 }
 0xa51   : > { %3376 = vmatprep.subr.bf16.mxu0 %v7312_v5  ;;  %3480 = vmatpush1.bf16.msra.mxu1 %v8888_v32  ;;  %v8940_v32 = vld [vmem:[#allocation299_spill] sm:$0xff] }
 0xa52   : > { %3481 = vmatprep.subr.bf16.mxu1 %v8930_v57  ;;  %v8966_v57 = vld [vmem:[#allocation255_spill] sm:$0xff] }
 0xa54   : > { %3377 = vmatpush1.bf16.msra.mxu0 %v8931_v16 }
 0xa55   : > { %3378 = vmatprep.subr.bf16.mxu0 %v8932_v60  ;;  %3482 = vmatpush1.bf16.msra.mxu1 %v8933_v38  ;;  %v8967_v38 = vld [vmem:[#allocation256_spill] sm:$0xff] }
 0xa56   : > { %3483 = vmatprep.subr.bf16.mxu1 %v8934_v23  ;;  %v8968_v23 = vld [vmem:[#allocation258_spill] sm:$0xff] }
 0xa58   : > { %3379 = vmatpush1.bf16.msra.mxu0 %v8935_v48 }
 0xa59   : > { %3380 = vmatprep.subr.bf16.mxu0 %v8936_v6  ;;  %3484 = vmatpush1.bf16.msra.mxu1 %v8937_v22  ;;  %v8969_v22 = vld [vmem:[#allocation260_spill] sm:$0xff] }
 0xa5a   : > { %3485 = vmatprep.subr.bf16.mxu1 %v8938_v50  ;;  %v8970_v50 = vld [vmem:[#allocation262_spill] sm:$0xff] }
 0xa5c   : > { %3381 = vmatpush1.bf16.msra.mxu0 %v8939_v8 }
 0xa5d   : > { %3382 = vmatprep.subr.bf16.mxu0 %v8940_v32  ;;  %3486 = vmatpush1.bf16.msra.mxu1 %v8941_v41  ;;  %v8971_v41 = vld [vmem:[#allocation264_spill] sm:$0xff] }
 0xa5e   : > { %3487 = vmatprep.subr.bf16.mxu1 %v8942_v46  ;;  %v8972_v46 = vld [vmem:[#allocation266_spill] sm:$0xff] }
 0xa60   : > { %3383 = vmatpush1.bf16.msra.mxu0 %v8943_v7 }
 0xa61   : > { %3498 = vmatprep.subr.bf16.mxu0 %v8944_v29  ;;  %3488 = vmatpush1.bf16.msra.mxu1 %v8945_v18  ;;  %v8973_v29 = vld [vmem:[#allocation268_spill] sm:$0xff]  ;;  %v8974_v18 = vld [vmem:[#allocation270_spill] sm:$0xff] }
 0xa62   : > { %3539 = vmatprep.subr.bf16.mxu1 %v8946_v11  ;;  %v8975_v11 = vld [vmem:[#allocation272_spill] sm:$0xff] }
 0xa63   : > { %3385 = vmatmul.mubr.bf16.vlgmr.msra.gmra.mrb[16].mxu0 %v7530_v19  ;;  %v8960_v19 = vld [vmem:[#allocation243_spill] sm:$0xff] }
 0xa64   : > { %3499 = vmatpush1.bf16.msra.mxu0 %v8947_v47  ;;  %v8976_v47 = vld [vmem:[#allocation275_spill] sm:$0xff] }
 0xa65   : > { %3500 = vmatprep.subr.bf16.mxu0 %v8948_v4  ;;  %v8977_v4 = vld [vmem:[#allocation277_spill] sm:$0xff] }
 0xa68   : > { %3501 = vmatpush1.bf16.msra.mxu0 %v8949_v13  ;;  %v3394_v13 = vld [vmem:[#allocation2 + $0x18] sm:$0xff] }
 0xa69   : > { %3502 = vmatprep.subr.bf16.mxu0 %v8950_v55  ;;  %v3408_v55 = vrot.slane %v3394_v13, 4 }
 0xa6c   : > { %3503 = vmatpush1.bf16.msra.mxu0 %v8951_v44  ;;  %v3399_v44 = vunpack.c.l.bf16 %v3394_v13 }
 0xa6d   : > { %3504 = vmatprep.subr.bf16.mxu0 %v8952_v35 }
 0xa70   : > { %3505 = vmatpush1.bf16.msra.mxu0 %v8953_v20 }
 0xa71   : > { %3506 = vmatprep.subr.bf16.mxu0 %v8954_v39  ;;  %v3410_v39 = vunpack.c.l.bf16 %v3408_v55 }
 0xa74   : > { %3507 = vmatpush1.bf16.msra.mxu0 %v8955_v56 }
 0xa75   : > { %3508 = vmatprep.subr.bf16.mxu0 %v8956_v34 }
 0xa78   : > { %3509 = vmatpush1.bf16.msra.mxu0 %v8957_v3 }
 0xa79   : > { %3510 = vmatprep.subr.bf16.mxu0 %v8958_v2 }
 0xa7c   : > { %3511 = vmatpush1.bf16.msra.mxu0 %v8959_v30 }
 0xa7d   : > { %3512 = vmatprep.subr.bf16.mxu0 %v8960_v19 }
 0xa80   : > { %3513 = vmatpush1.bf16.msra.mxu0 %v8961_v14 }
 0xa81   : > { %3514 = vmatprep.subr.bf16.mxu0 %v8962_v58 }
 0xa84   : > { %3515 = vmatpush1.bf16.msra.mxu0 %v8963_v53 }
 0xa85   : > { %3516 = vmatprep.subr.bf16.mxu0 %v8964_v12 }
 0xa88   : > { %3517 = vmatpush1.bf16.msra.mxu0 %v8965_v42 }
 0xa89   : > { %3518 = vmatprep.subr.bf16.mxu0 %v8966_v57 }
 0xa8c   : > { %3519 = vmatpush1.bf16.msra.mxu0 %v8967_v38 }
 0xa8d   : > { %3520 = vmatprep.subr.bf16.mxu0 %v8968_v23  ;;  %v7630_v23 = vld [vmem:[#allocation2 + $0x20] ss:$12 sps:$4 sm:$0xff]  }
 0xa90   : > { %3521 = vmatpush1.bf16.msra.mxu0 %v8969_v22 }
 0xa91   : > { %3522 = vmatprep.subr.bf16.mxu0 %v8970_v50  ;;  %v3397_v50 = vld [vmem:[#allocation3 + $0xc] sm:$0xff] }
 0xa94   : > { %3523 = vmatpush1.bf16.msra.mxu0 %v8971_v41 }
 0xa95   : > { %3524 = vmatprep.subr.bf16.mxu0 %v8972_v46  ;;  %v3420_v46 = vunpack.c.l.bf16 %v7630_v23 }
 0xa98   : > { %3525 = vmatpush1.bf16.msra.mxu0 %v8973_v29 }
 0xa99   : > { %3526 = vmatprep.subr.bf16.mxu0 %v8974_v18  ;;  %v3427_v18 = vunpack.c.l.bf16 %v3397_v50 }
 0xa9c   : > { %3527 = vmatpush1.bf16.msra.mxu0 %v8975_v11 }
 0xa9d   : > { %3528 = vmatprep.subr.bf16.mxu0 %v8976_v47 }
 0xaa0   : > { %3529 = vmatpush1.bf16.msra.mxu0 %v8977_v4 }
 0xaf6   : > { %v3304_v35 = vpop.f32.mrb[12].mxu0  ;;  %v3345_v20 = vpop.f32.mrb[12].mxu1 }
 0xaf7   : > { %v3400_v56 = vadd.f32 %v3399_v44, %v3304_v35  ;;  %v3306_v34 = vpop.f32.mrb[13].mxu0  ;;  %v3347_v3 = vpop.f32.mrb[13].mxu1  ;;  %v3418_v41 = vadd.f32 %v8919_v26, %v3345_v20 }
 0xaf8   : > { %v3308_v2 = vpop.f32.mrb[14].mxu0  ;;  %v3349_v30 = vpop.f32.mrb[14].mxu1  ;;  %v3411_v53 = vadd.f32 %v3410_v39, %v3306_v34  ;;  %v3428_v4 = vadd.f32 %v3427_v18, %v3347_v3 }
 0xaf9   : > { %v4282_v19 = vmul.f32 -1.442695, %v3400_v56  ;;  %v3309_v14 = vpop.f32.mrb[15].mxu0  ;;  %v3350_v58 = vpop.f32.mrb[15].mxu1  ;;  %v3436_v30 = vrot.slane %v3397_v50, 4 }
 0xafa   : > { %v4283_v12 = vmul.f32 -1.442695, %v3411_v53  ;;  %v4284_v13 = vmul.f32 -1.442695, %v3428_v4 }
 0xafb   : > { %4799 = vpow2.f32 %v4282_v19  ;;  %v3438_v19 = vunpack.c.l.bf16 %v3436_v30 }
 0xafc   : > { %4801 = vpow2.f32 %v4283_v12 }
 0xb05   : > { %v4800_v42 = vpop.eup %4799 }
 0xb06   : > { %v3404_v57 = vadd.f32 1.0, %v4800_v42  ;;  %v4802_v38 = vpop.eup %4801 }
 0xb07   : > { %v3415_v22 = vadd.f32 1.0, %v4802_v38 }
 0xb08   : > { %4803 = vrcp.f32 %v3404_v57 }
 0xb09   : > { %4805 = vrcp.f32 %v3415_v22 }
 0xb12   : > { %v4804_v29 = vpop.eup %4803 }
 0xb13   : > { %v3419_v11 = vmul.f32 %v4804_v29, %v3418_v41  ;;  %v4806_v55 = vpop.eup %4805  ;;  %v7638_v41 = vld [vmem:[#allocation3 + $0x8] ss:$12 sps:$4 sm:$0xff]  }
 0xb14   : > { %v3423_v44 = vsub.f32 1.0, %v4806_v55  ;;  %v3425_v56 = vmul.f32 %v4806_v55, %v7519_v36  ;;  %v3448_v36 = vunpack.c.h.bf16 %v7638_v41 }
 0xb15   : > { %v3421_v47 = vadd.f32 %v3420_v46, %v3419_v11 }
 0xb17   : > { %4807 = vtanh.f32 %v3421_v47 }
 0xb18   : > { %4809 = vpow2.f32 %v4284_v13 }
 0xb21   : > { %v4808_v35 = vpop.eup %4807 }
 0xb22   : > { %v3424_v39 = vmul.f32 %v4808_v35, %v3423_v44  ;;  %v4810_v20 = vpop.eup %4809 }
 0xb23   : > { %v3432_v2 = vadd.f32 1.0, %v4810_v20 }
 0xb24   : > { %v7635_v34 = vadd.f32 %v3425_v56, %v3424_v39 }
 0xb25   : > { %4811 = vrcp.f32 %v3432_v2 }
 0xb26   : > { %v3455_v35 = vpack.c.bf16 %v7635_v34, %v7635_v34 }
 0xb2f   : > { %v4812_v42 = vpop.eup %4811 }
 0xb36   : > { %v3386_v14 = vpop.f32.mrb[16].mxu0 }
 0xb37   : > { %v3439_v58 = vadd.f32 %v3438_v19, %v3386_v14  ;;  %v3388_v53 = vpop.f32.mrb[17].mxu0 }
 0xb38   : > { %v3446_v3 = vadd.f32 %v8863_v9, %v3388_v53  ;;  %v3390_v12 = vpop.f32.mrb[18].mxu0 }
 0xb39   : > { %v4285_v57 = vmul.f32 -1.442695, %v3439_v58  ;;  %v3391_v38 = vpop.f32.mrb[19].mxu0 }
 0xb3a   : > { %v3447_v22 = vmul.f32 %v4812_v42, %v3446_v3 }
 0xb3b   : > { %4813 = vpow2.f32 %v4285_v57 }
 0xb3c   : > { %v3449_v18 = vadd.f32 %v3448_v36, %v3447_v22 }
 0xb45   : > { %v4814_v46 = vpop.eup %4813 }
 0xb46   : > { %v3443_v29 = vadd.f32 1.0, %v4814_v46 }
 0xb48   : > { %4815 = vrcp.f32 %v3443_v29 }
 0xb49   : > { %4817 = vtanh.f32 %v3449_v18 }
 0xb52   : > { %v4816_v50 = vpop.eup %4815 }
 0xb53   : > { %v3451_v11 = vsub.f32 1.0, %v4816_v50  ;;  %v4818_v47 = vpop.eup %4817  ;;  %v3453_v13 = vmul.f32 %v4816_v50, %v7524_v25  ;;  %v3583_v25 = vld [vmem:[#allocation3] sm:$0xff] }
 0xb55   : > { %v3452_v4 = vmul.f32 %v4818_v47, %v3451_v11 }
 0xb57   : > { %v7642_v55 = vadd.f32 %v3453_v13, %v3452_v4 }
 0xb59   : > { %v3456_v44 = vpack.c.bf16 %v7642_v55, %v7642_v55 }
 0xb5b   : > { %3489 = vmatprep.mubr.bf16.mxu1 %v3456_v44  ;;  %3530 = vmatprep.mubr.bf16.mxu0 %v3456_v44 }
 0xb5c   : > { %3490 = vmatmul.mubr.bf16.vlgmr.msra.gmra.mrb[16].mxu1 %v3455_v35  ;;  %3531 = vmatmul.mubr.bf16.vlgmr.msra.gmra.mrb[20].mxu0 %v3455_v35 }
 0xb5d   : > { %3540 = vmatpush1.bf16.msra.mxu1 %v7171_v45  ;;  %3571 = vmatprep.mubr.bf16.mxu1 %v3456_v44 }
 0xb5e   : > { %3541 = vmatprep.subr.bf16.mxu1 %v8865_v33 }
 0xb61   : > { %3542 = vmatpush1.bf16.msra.mxu1 %v8867_v52 }
 0xb62   : > { %3543 = vmatprep.subr.bf16.mxu1 %v7190_v21 }
 0xb65   : > { %3544 = vmatpush1.bf16.msra.mxu1 %v8869_v62 }
 0xb66   : > { %3545 = vmatprep.subr.bf16.mxu1 %v7204_v49 }
 0xb69   : > { %3546 = vmatpush1.bf16.msra.mxu1 %v8871_v54 }
 0xb6a   : > { %3547 = vmatprep.subr.bf16.mxu1 %v7216_v43 }
 0xb6d   : > { %3548 = vmatpush1.bf16.msra.mxu1 %v8873_v15 }
 0xb6e   : > { %3549 = vmatprep.subr.bf16.mxu1 %v7228_v59 }
 0xb71   : > { %3550 = vmatpush1.bf16.msra.mxu1 %v8875_v27 }
 0xb72   : > { %3551 = vmatprep.subr.bf16.mxu1 %v7240_v37  ;;  %v3581_v37 = vld [vmem:[#allocation2 + $0x24] sm:$0xff] }
 0xb75   : > { %3552 = vmatpush1.bf16.msra.mxu1 %v8877_v1 }
 0xb76   : > { %3553 = vmatprep.subr.bf16.mxu1 %v8922_v63 }
 0xb79   : > { %3554 = vmatpush1.bf16.msra.mxu1 %v8879_v61 }
 0xb7a   : > { %3555 = vmatprep.subr.bf16.mxu1 %v8924_v24  ;;  %v3606_v24 = vunpack.c.h.bf16 %v7630_v23  ;;  %v3622_v23 = vrot.slane %v3583_v25, 4 }
 0xb7c   : > { %v3624_v30 = vunpack.c.l.bf16 %v3622_v23 }
 0xb7d   : > { %3556 = vmatpush1.bf16.msra.mxu1 %v8881_v28 }
 0xb7e   : > { %3557 = vmatprep.subr.bf16.mxu1 %v8926_v10 }
 0xb81   : > { %3558 = vmatpush1.bf16.msra.mxu1 %v8883_v0  ;;  %v3594_v0 = vrot.slane %v3581_v37, 4 }
 0xb82   : > { %3559 = vmatprep.subr.bf16.mxu1 %v8928_v31  ;;  %v3613_v31 = vunpack.c.l.bf16 %v3583_v25 }
 0xb85   : > { %3560 = vmatpush1.bf16.msra.mxu1 %v8885_v51  ;;  %v3585_v51 = vunpack.c.l.bf16 %v3581_v37 }
 0xb86   : > { %3561 = vmatprep.subr.bf16.mxu1 %v7300_v17 }
 0xb89   : > { %3562 = vmatpush1.bf16.msra.mxu1 %v8887_v40 }
 0xb8a   : > { %3563 = vmatprep.subr.bf16.mxu1 %v7312_v5  ;;  %v3596_v5 = vunpack.c.l.bf16 %v3594_v0 }
 0xb8d   : > { %3564 = vmatpush1.bf16.msra.mxu1 %v8931_v16 }
 0xb8e   : > { %3565 = vmatprep.subr.bf16.mxu1 %v8932_v60 }
 0xb91   : > { %3566 = vmatpush1.bf16.msra.mxu1 %v8935_v48 }
 0xb92   : > { %3567 = vmatprep.subr.bf16.mxu1 %v8936_v6 }
 0xb95   : > { %3568 = vmatpush1.bf16.msra.mxu1 %v8939_v8 }
 0xb96   : > { %3569 = vmatprep.subr.bf16.mxu1 %v8940_v32 }
 0xb99   : > { %3570 = vmatpush1.bf16.msra.mxu1 %v8943_v7 }
 0xb9c   : > { %3572 = vmatmul.mubr.bf16.vlgmr.msra.gmra.mrb[20].mxu1 %v3455_v35 }
 0xc2f   : > { %v3491_v40 = vpop.f32.mrb[16].mxu1  ;;  %v3532_v17 = vpop.f32.mrb[20].mxu0 }
 0xc30   : > { %v3586_v49 = vadd.f32 %v3585_v51, %v3491_v40  ;;  %v3493_v45 = vpop.f32.mrb[17].mxu1  ;;  %v3534_v43 = vpop.f32.mrb[21].mxu0  ;;  %v3604_v63 = vadd.f32 %v8919_v26, %v3532_v17 }
 0xc31   : > { %v3495_v21 = vpop.f32.mrb[18].mxu1  ;;  %v3536_v59 = vpop.f32.mrb[22].mxu0  ;;  %v3597_v54 = vadd.f32 %v3596_v5, %v3493_v45  ;;  %v3614_v48 = vadd.f32 %v3613_v31, %v3534_v43 }
 0xc32   : > { %v4286_v33 = vmul.f32 -1.442695, %v3586_v49  ;;  %v3496_v52 = vpop.f32.mrb[19].mxu1  ;;  %v3537_v62 = vpop.f32.mrb[23].mxu0 }
 0xc33   : > { %v4287_v15 = vmul.f32 -1.442695, %v3597_v54  ;;  %v4288_v6 = vmul.f32 -1.442695, %v3614_v48 }
 0xc34   : > { %4819 = vpow2.f32 %v4286_v33 }
 0xc35   : > { %4821 = vpow2.f32 %v4287_v15 }
 0xc3e   : > { %v4820_v27 = vpop.eup %4819 }
 0xc3f   : > { %v3590_v1 = vadd.f32 1.0, %v4820_v27  ;;  %v4822_v61 = vpop.eup %4821 }
 0xc40   : > { %v3601_v28 = vadd.f32 1.0, %v4822_v61 }
 0xc41   : > { %4823 = vrcp.f32 %v3590_v1 }
 0xc42   : > { %4825 = vrcp.f32 %v3601_v28 }
 0xc4b   : > { %v4824_v10 = vpop.eup %4823 }
 0xc4c   : > { %v3605_v16 = vmul.f32 %v4824_v10, %v3604_v63  ;;  %v4826_v8 = vpop.eup %4825 }
 0xc4d   : > { %v3609_v32 = vsub.f32 1.0, %v4826_v8  ;;  %v3611_v56 = vmul.f32 %v4826_v8, %v7635_v34  ;;  %v3634_v34 = vunpack.c.l.bf16 %v7638_v41 }
 0xc4e   : > { %v3607_v60 = vadd.f32 %v3606_v24, %v3605_v16 }
 0xc50   : > { %4827 = vtanh.f32 %v3607_v60 }
 0xc51   : > { %4829 = vpow2.f32 %v4288_v6 }
 0xc5a   : > { %v4828_v7 = vpop.eup %4827 }
 0xc5b   : > { %v3610_v39 = vmul.f32 %v4828_v7, %v3609_v32  ;;  %v4830_v26 = vpop.eup %4829 }
 0xc5c   : > { %v3618_v2 = vadd.f32 1.0, %v4830_v26 }
 0xc5d   : > { %v3612_v20 = vadd.f32 %v3611_v56, %v3610_v39 }
 0xc5e   : > { %4831 = vrcp.f32 %v3618_v2 }
 0xc5f   : > { %3641 = vst [vmem:[#allocation4] sm:$0xff] %v3612_v20 }
 0xc68   : > { %v4832_v12 = vpop.eup %4831 }
 0xc6f   : > { %v3573_v19 = vpop.f32.mrb[20].mxu1 }
 0xc70   : > { %v3625_v14 = vadd.f32 %v3624_v30, %v3573_v19  ;;  %v3575_v58 = vpop.f32.mrb[21].mxu1 }
 0xc71   : > { %v3632_v53 = vadd.f32 %v8863_v9, %v3575_v58  ;;  %v3577_v3 = vpop.f32.mrb[22].mxu1 }
 0xc72   : > { %v4289_v42 = vmul.f32 -1.442695, %v3625_v14  ;;  %v3578_v57 = vpop.f32.mrb[23].mxu1 }
 0xc73   : > { %v3633_v38 = vmul.f32 %v4832_v12, %v3632_v53 }
 0xc74   : > { %4833 = vpow2.f32 %v4289_v42 }
 0xc75   : > { %v3635_v46 = vadd.f32 %v3634_v34, %v3633_v38 }
 0xc7e   : > { %v4834_v22 = vpop.eup %4833 }
 0xc7f   : > { %v3629_v36 = vadd.f32 1.0, %v4834_v22 }
 0xc81   : > { %4835 = vrcp.f32 %v3629_v36 }
 0xc82   : > { %4837 = vtanh.f32 %v3635_v46 }
 0xc8b   : > { %v4836_v29 = vpop.eup %4835 }
 0xc8c   : > { %v3637_v18 = vsub.f32 1.0, %v4836_v29  ;;  %v4838_v50 = vpop.eup %4837  ;;  %v3639_v11 = vmul.f32 %v4836_v29, %v7642_v55 }
 0xc8e   : > { %v3638_v47 = vmul.f32 %v4838_v50, %v3637_v18 }
 0xc90   : > { %v3640_v9 = vadd.f32 %v3639_v11, %v3638_v47 }
 0xc92   : > { %3642 = vst [vmem:[#allocation5] sm:$0xff] %v3640_v9 }
 0xc93 PF: > { %p4290_p8 = scmp.ne.s32.totalorder %s5363_s27, 2 }
 0xc94   : > { %v3664_v4 = vld [vmem:[#allocation22 + $0x80] sm:$0xff] (!%p4290_p8)  ;;  %v3665_v13 = vld [vmem:[#allocation22 + $0x88] sm:$0xff] (!%p4290_p8)  ;;  %v5260_v44 = vmov (!%p4290_p8), 0.0|0.0   ;;  %v3666_v0 = vld [vmem:[#allocation22 + $0x90] sm:$0xff] (!%p4290_p8)  ;;  %vm5261_vm9 = vmmov (!%p4290_p8), 0   ;;  %v5262_v5 = vmov (!%p4290_p8), 0.0  }
 0xc95   : > { %3645 = sbr.rel (%p4290_p8) target bundleno = 3498 (0xdaa), region = 120  ;;  %v3648_v41 = vld [vmem:[#allocation22] sm:$0xff] (!%p4290_p8)  ;;  %4443 = vmatprep.subr.bf16.mxu0 (!%p4290_p8), %v5260_v44  ;;  %4467 = vmatprep.subr.bf16.mxu1 (!%p4290_p8), %v5260_v44  ;;  %v4444_v35 = vpack.c.bf16 (!%p4290_p8), %v3665_v13, %v3664_v4  ;;  %v3649_v37 = vld [vmem:[#allocation22 + $0x8] sm:$0xff] (!%p4290_p8)  ;;  %v3667_v51 = vld [vmem:[#allocation22 + $0x98] sm:$0xff] (!%p4290_p8)  ;;  %vm3834_vm10 = vcmask (!%p4290_p8), 7168  }
 0xc96   : > { %v4468_v55 = vpack.c.bf16 (!%p4290_p8), %v3649_v37, %v3648_v41  ;;  %v3650_v40 = vld [vmem:[#allocation22 + $0x10] sm:$0xff] (!%p4290_p8)  ;;  %v3651_v17 = vld [vmem:[#allocation22 + $0x18] sm:$0xff] (!%p4290_p8)  ;;  %4405 = vmatprep.mubr.msk.f32.mxu0 (!%p4290_p8), %vm5261_vm9, %v5262_v5  ;;  %4440 = vmatprep.mubr.msk.f32.mxu1 (!%p4290_p8), %vm5261_vm9, %v5262_v5  ;;  %v4447_v49 = vpack.c.bf16 (!%p4290_p8), %v3667_v51, %v3666_v0  ;;  %v3668_v43 = vld [vmem:[#allocation22 + $0xa0] sm:$0xff] (!%p4290_p8) }
 0xc97   : > { %4445 = vmatpush3.bf16.msra.mxu0 (!%p4290_p8), %v4444_v35  ;;  %v4471_v45 = vpack.c.bf16 (!%p4290_p8), %v3651_v17, %v3650_v40  ;;  %v3669_v21 = vld [vmem:[#allocation22 + $0xa8] sm:$0xff] (!%p4290_p8)  ;;  %v3652_v59 = vld [vmem:[#allocation22 + $0x20] sm:$0xff] (!%p4290_p8)  ;;  %v3670_v54 = vld [vmem:[#allocation22 + $0xb0] sm:$0xff] (!%p4290_p8) }
 0xc98   : > { %4469 = vmatpush3.bf16.msra.mxu1 (!%p4290_p8), %v4468_v55  ;;  %4446 = vmatprep.subr.bf16.mxu0 (!%p4290_p8), %v5260_v44  ;;  %v3653_v33 = vld [vmem:[#allocation22 + $0x28] sm:$0xff] (!%p4290_p8)  ;;  %v4450_v52 = vpack.c.bf16 (!%p4290_p8), %v3669_v21, %v3668_v43  ;;  %v3671_v15 = vld [vmem:[#allocation22 + $0xb8] sm:$0xff] (!%p4290_p8)  ;;  %v3654_v27 = vld [vmem:[#allocation22 + $0x30] sm:$0xff] (!%p4290_p8) }
 0xc99   : > { %4470 = vmatprep.subr.bf16.mxu1 (!%p4290_p8), %v5260_v44  ;;  %v4474_v62 = vpack.c.bf16 (!%p4290_p8), %v3653_v33, %v3652_v59  ;;  %v3655_v1 = vld [vmem:[#allocation22 + $0x38] sm:$0xff] (!%p4290_p8)  ;;  %v4453_v61 = vpack.c.bf16 (!%p4290_p8), %v3671_v15, %v3670_v54  ;;  %v3672_v25 = vld [vmem:[#allocation22 + $0xc0] sm:$0xff] (!%p4290_p8)  ;;  %v3673_v63 = vld [vmem:[#allocation22 + $0xc8] sm:$0xff] (!%p4290_p8) }
 0xc9a   : > { %v4477_v28 = vpack.c.bf16 (!%p4290_p8), %v3655_v1, %v3654_v27  ;;  %v3656_v24 = vld [vmem:[#allocation22 + $0x40] sm:$0xff] (!%p4290_p8)  ;;  %v3657_v10 = vld [vmem:[#allocation22 + $0x48] sm:$0xff] (!%p4290_p8)  ;;  %v4456_v31 = vpack.c.bf16 (!%p4290_p8), %v3673_v63, %v3672_v25  ;;  %v3674_v60 = vld [vmem:[#allocation22 + $0xd0] sm:$0xff] (!%p4290_p8) }
 0xc9b   : > { %4448 = vmatpush3.bf16.msra.mxu0 (!%p4290_p8), %v4447_v49  ;;  %v4480_v16 = vpack.c.bf16 (!%p4290_p8), %v3657_v10, %v3656_v24  ;;  %v3675_v48 = vld [vmem:[#allocation22 + $0xd8] sm:$0xff] (!%p4290_p8)  ;;  %v3658_v6 = vld [vmem:[#allocation22 + $0x50] sm:$0xff] (!%p4290_p8)  ;;  %v3676_v39 = vld [vmem:[#allocation22 + $0xe0] sm:$0xff] (!%p4290_p8) }
 0xc9c   : > { %4472 = vmatpush3.bf16.msra.mxu1 %v4471_v45  ;;  %4449 = vmatprep.subr.bf16.mxu0 %v5260_v44  ;;  %v3659_v8 = vld [vmem:[#allocation22 + $0x58] sm:$0xff]  ;;  %v4459_v32 = vpack.c.bf16 %v3675_v48, %v3674_v60  ;;  %v3677_v56 = vld [vmem:[#allocation22 + $0xe8] sm:$0xff]  ;;  %v3660_v20 = vld [vmem:[#allocation22 + $0x60] sm:$0xff] }
 0xc9d   : > { %4473 = vmatprep.subr.bf16.mxu1 %v5260_v44  ;;  %v4483_v7 = vpack.c.bf16 %v3659_v8, %v3658_v6  ;;  %v3661_v26 = vld [vmem:[#allocation22 + $0x68] sm:$0xff]  ;;  %v4462_v2 = vpack.c.bf16 %v3677_v56, %v3676_v39  ;;  %v3678_v30 = vld [vmem:[#allocation22 + $0xf0] sm:$0xff]  ;;  %v3679_v19 = vld [vmem:[#allocation22 + $0xf8] sm:$0xff] }
 0xc9e   : > { %v4486_v23 = vpack.c.bf16 %v3661_v26, %v3660_v20  ;;  %v3662_v14 = vld [vmem:[#allocation22 + $0x70] sm:$0xff]  ;;  %v3663_v58 = vld [vmem:[#allocation22 + $0x78] sm:$0xff]  ;;  %v4465_v53 = vpack.c.bf16 %v3679_v19, %v3678_v30  ;;  %v3646_v42 = vld [vmem:[#allocation4] sm:$0xff] }
 0xc9f   : > { %4451 = vmatpush3.bf16.msra.mxu0 %v4450_v52  ;;  %v4489_v3 = vpack.c.bf16 %v3663_v58, %v3662_v14  ;;  %v3647_v12 = vld [vmem:[#allocation5] sm:$0xff]  ;;  %v4291_v34 = vld [vmem:[#allocation6] ss:$0 sm:$0xff] }
 0xca0   : > { %4475 = vmatpush3.bf16.msra.mxu1 %v4474_v62  ;;  %4452 = vmatprep.subr.bf16.mxu0 %v5260_v44 }
 0xca1   : > { %4476 = vmatprep.subr.bf16.mxu1 %v5260_v44 }
 0xca3   : > { %4454 = vmatpush3.bf16.msra.mxu0 %v4453_v61 }
 0xca4   : > { %4478 = vmatpush3.bf16.msra.mxu1 %v4477_v28  ;;  %4455 = vmatprep.subr.bf16.mxu0 %v5260_v44 }
 0xca5   : > { %4479 = vmatprep.subr.bf16.mxu1 %v5260_v44 }
 0xca7   : > { %4457 = vmatpush3.bf16.msra.mxu0 %v4456_v31 }
 0xca8   : > { %4481 = vmatpush3.bf16.msra.mxu1 %v4480_v16  ;;  %4458 = vmatprep.subr.bf16.mxu0 %v5260_v44 }
 0xca9   : > { %4482 = vmatprep.subr.bf16.mxu1 %v5260_v44 }
 0xcab   : > { %4460 = vmatpush3.bf16.msra.mxu0 %v4459_v32 }
 0xcac   : > { %4484 = vmatpush3.bf16.msra.mxu1 %v4483_v7  ;;  %4461 = vmatprep.subr.bf16.mxu0 %v5260_v44 }
 0xcad   : > { %4485 = vmatprep.subr.bf16.mxu1 %v5260_v44 }
 0xcaf   : > { %4463 = vmatpush3.bf16.msra.mxu0 %v4462_v2 }
 0xcb0   : > { %4487 = vmatpush3.bf16.msra.mxu1 %v4486_v23  ;;  %4464 = vmatprep.subr.bf16.mxu0 %v5260_v44 }
 0xcb1   : > { %4488 = vmatprep.subr.bf16.mxu1 %v5260_v44 }
 0xcb3   : > { %4466 = vmatpush3.bf16.msra.mxu0 %v4465_v53 }
 0xcb4   : > { %4490 = vmatpush3.bf16.msra.mxu1 %v4489_v3 }
 0xcb6   : > { %4406 = vmatmul.mubr.f32.vlgmr.msra.gmra.mrb[0].mxu0 %v3647_v12 }
 0xcb7   : > { %4441 = vmatmul.mubr.f32.vlgmr.msra.gmra.mrb[0].mxu1 %v3646_v42 }
 0xd89   : > { %v3746_v57 = vpop.f32.mrb[0].mxu0 }
 0xd8a   : > { %v3816_v38 = vpop.f32.mrb[0].mxu1  ;;  %v4407_v22 = vpop.f32.mrb[1].mxu0 }
 0xd8b   : > { %v3817_v36 = vadd.f32 %v3816_v38, %v3746_v57  ;;  %v4442_v46 = vpop.f32.mrb[1].mxu1 }
 0xd8d   : > { %v3827_v29 = vadd.f32 %v4291_v34, %v3817_v36 }
 0xd8f   : > { %v4292_v18 = vmul.f32 -1.442695, %v3827_v29 }
 0xd91   : > { %4839 = vpow2.f32 %v4292_v18 }
 0xd9b   : > { %v4840_v50 = vpop.eup %4839 }
 0xd9c   : > { %v3831_v11 = vadd.f32 1.0, %v4840_v50 }
 0xd9e   : > { %4841 = vrcp.f32 %v3831_v11 }
 0xda8   : > { %v4842_v47 = vpop.eup %4841 }
 0xda9   : > { %3835 = vst.msk [vmem:[#allocation24] sm:$0xff] %vm3834_vm10, %v4842_v47 }
 0xdaa PF: > { %s5263_s1 = smov [#allocation24]  }
 0xdab   : > { %s3843_s25 = sshll.u32 %s5263_s1, 4  ;;  %s3844_s25 = int_to_ptr.vmem [resolvable:$true] %s3843_s25 }
 0xdac   : > { %s5127_s2 = scalar_lea.vmem %s3844_s25, 128  ;;  %p5134_p4 = scmp.lt.s32.totalorder %s3844_s25, %s3844_s25 }
 0xdad   : > { %p5128_p3 = scmp.ne.s32.totalorder %s3844_s25, %s5127_s2  ;;  %p5135_p13 = scmp.lt.s32.totalorder %s5127_s2, %s5127_s2 }
 0xdaf   : > { %p5129_p12 = pnand %p5128_p3, %p1131_p0  ;;  %p5136_p10 = por %p5135_p13, %p5134_p4 }
 0xdb1   : > { %p5130_p5 = pneg %p5129_p12 }
 0xdb3   : > { %p5137_p7 = pnand %p5136_p10, %p5130_p5 }
 0xdb5   : > { %5140 = shalt.err (!%p5137_p7)
}
 0xdb6   : > { %s8978_s24 = sld [smem:[#allocation305_spill]] }
 0xdbc   : > { %s8979_s3 = smov %s8978_s24  ;;  %s5141_s26 = scalar_lea.hbm %s8978_s24, 128 }
 0xdbd   : > { %p5142_p6 = scmp.ne.s32.totalorder %s8979_s3, %s5141_s26  ;;  %p5147_p11 = scmp.lt.u32.totalorder %s5141_s26, %s8979_s3 }
 0xdbf   : > { %p5143_p9 = pnand %p5142_p6, %p1131_p0 }
 0xdc1   : > { %p5144_p1 = pneg %p5143_p9 }
 0xdc3   : > { %p5149_p2 = pnand %p5147_p11, %p5144_p1 }
 0xdc5   : > { %5152 = shalt.err (!%p5149_p2)
}
 0xdc6   : > { %4528 = dma.vmem_to_hbm [thread:$0]  (%p1131_p0), %s3844_s25, 128, %s8979_s3, [#allocation9]  }
 0xdc7   : > { %5210 = dma.done.wait (%p1131_p0), [#allocation9], 128  }
 0xdc8   : > { %5212 = vsyncadd (%p1131_p0), [#allocation9], 4294967168 }
 0xdc9 PF: > { %p31_p8 = scmp.ge.s32.totalorder %s5622_s18, 5   ;;  %s8980_s19 = smov %s5219_s20 }
 0xdca   : > { %s8981_s20 = smov %s5223_s21  ;;  %s8982_s21 = smov %s5640_s30 }
 0xdcb   : > { %s8983_s22 = smov %s5231_s23  ;;  %s8984_s23 = smov %s5235_s10 }
 0xdcc   : > { %s8985_s10 = smov %s5632_s12  ;;  %s8986_s24 = smov %s5622_s18 }
 0xdcd   :  { %33 = sbr.rel (!%p31_p8) target bundleno = 17 (0x11), region = 174 }
 0xdd4   :  { %3856 = vsyncpa [#allocation8], 1 }
 0xdd5   :  { %3858 = vsyncpa [#allocation8 + $0x1], 1 }
 0xdd6   :  { %3859 = vsyncpa [#allocation11], 1 }
 0xdd7   :  { %3861 = vsyncpa [#allocation11 + $0x1], 1 }
 0xdd8   :  { %3862 = vsyncpa [#allocation14], 1 }
 0xdd9   :  { %3863 = vsyncpa [#allocation17], 1 }
 0xdda   :  { %3864 = vsyncpa [#allocation20], 1 }
 0xddb   :  { %3865 = vsyncpa [#allocation23], 1 }
 0xddc   :  { %3866 = vsyncpa [#allocation9], 1 }
 0xddd   :  { %3868 = vsyncpa [#allocation9 + $0x1], 1 }

</bundles_post_ra>
